<compile_context>
chip_gen: v7x
topology: tpu7x:2x2x1
jax: 0.10.0
libtpu: 0.0.40
codegen_flags: <defaults>
</compile_context>

<pallas_src>
import jax
import jax.numpy as jnp
from jax.experimental import pallas as pl
from jax.experimental.pallas import tpu as pltpu

L2N_EPS = 1e-6
GEM_EPS = 1e-6
GEM_P = 3.0   # TODO(synk): learnable GeM exponent p is frozen at 3.0 here.


def _round_up(n, m):
    return ((n + m - 1) // m) * m


# ---------------------------------------------------------------------------
# Fused forward: conv1 -> ReLU -> conv2 -> ReLU -> GeM -> fc_cls/fc_mul -> L2N
# ---------------------------------------------------------------------------
def image_retrieval_net_forward(x_nchw, params):
    N, Cin, H, W = x_nchw.shape
    C1 = params["w1"].shape[-1]
    C2 = params["w2"].shape[-1]
    ncls = params["wc"].shape[-1]
    nmul = params["wm"].shape[-1]

    cdt = jnp.bfloat16                   # MXU operand dtype (f32 accumulation)
    C2P = _round_up(C2, 128)             # lane-dense channel width for conv2/head
    KCP = _round_up(ncls, 128)           # lane-dense fc_cls output width
    KMP = _round_up(nmul, 128)           # lane-dense fc_mul output width

    # Row-tile height: largest divisor of H that is <= 8.  Keeps the VMEM working
    # set bounded / size-robust and exercises the cross-tile GeM accumulation.
    TH = min(H, 8)
    while H % TH:
        TH -= 1
    n_tiles = H // TH

    # Flattened-spatial geometry (all Python constants, captured by the kernel).
    Wp = W + 4                           # width after pad-2 on both sides
    R_in = (TH + 4) * Wp                 # real slab rows (flat spatial) per tile
    SLACK = 16                           # over-read slack for the flat-shift trick
    G1E = (TH + 2) * Wp + 8              # conv1 halo output grid (+ slack rows)
    G2 = TH * Wp                         # conv2 output grid (only cols < W are real)

    # ---- layout prep (glue, done once in XLA) ------------------------------
    x = jnp.transpose(x_nchw, (0, 2, 3, 1)).astype(cdt)        # NCHW -> NHWC, bf16
    xp = jnp.pad(x, ((0, 0), (2, 2), (2, 2), (0, 0)))          # pad 2: both convs' halos
    x_flat = xp.reshape(N * (H + 4) * Wp, Cin)                 # flat spatial rows

    w1 = params["w1"].reshape(9, Cin, C1).astype(cdt)
    b1 = params["b1"].reshape(1, C1).astype(jnp.float32)
    w2 = jnp.pad(params["w2"].reshape(9, C1, C2),
                 ((0, 0), (0, 0), (0, C2P - C2))).astype(cdt)
    b2 = jnp.pad(params["b2"], (0, C2P - C2)).reshape(1, C2P).astype(jnp.float32)
    wc = jnp.pad(params["wc"], ((0, C2P - C2), (0, KCP - ncls))).astype(jnp.float32)
    bc = jnp.pad(params["bc"], (0, KCP - ncls)).reshape(1, KCP).astype(jnp.float32)
    wm = jnp.pad(params["wm"], ((0, C2P - C2), (0, KMP - nmul))).astype(jnp.float32)
    bm = jnp.pad(params["bm"], (0, KMP - nmul)).reshape(1, KMP).astype(jnp.float32)

    # Per-position row-index / column-validity tables for the flattened grids
    # (precomputed outside the kernel: avoids in-kernel integer div/mod).
    q1 = jnp.arange(G1E, dtype=jnp.int32)
    rowidx1 = (q1 // Wp).astype(jnp.float32).reshape(G1E, 1)
    colmask1 = (((q1 % Wp) >= 1) & ((q1 % Wp) <= W) & ((q1 // Wp) <= TH + 1)
                ).astype(jnp.float32).reshape(G1E, 1)
    q2 = jnp.arange(G2, dtype=jnp.int32)
    colmask2 = ((q2 % Wp) < W).astype(jnp.float32).reshape(G2, 1)

    # -------------------------------------------------------------------------
    # Kernel body.  Flat-spatial trick: a 3x3 tap (dh, dw) of a row-major padded
    # image with row stride Wp is just a +/- (dh*Wp + dw) row shift, so each conv
    # is 9 shifted matmuls against a (Cin, Cout) weight block.  Positions whose
    # shift wraps a row (or reads the slack rows) only ever land in columns that
    # are masked to zero before they are consumed.
    # -------------------------------------------------------------------------
    def kernel(x_hbm, w1_ref, b1_ref, w2_ref, b2_ref,
               wc_ref, bc_ref, wm_ref, bm_ref,
               rowidx_ref, cmask1_ref, cmask2_ref,
               o_ref, cls_ref, mul_ref,
               slab_ref, pool_ref):
        bidx = pl.program_id(0)
        tidx = pl.program_id(1)

        @pl.when(tidx == 0)
        def _init():
            pool_ref[...] = jnp.zeros_like(pool_ref)

        # ---- manual DMA of the halo'd input row-slab for this tile ----------
        start = bidx * ((H + 4) * Wp) + tidx * (TH * Wp)
        pltpu.sync_copy(x_hbm.at[pl.ds(start, R_in), :],
                        slab_ref.at[pl.ds(0, R_in), :])
        # zero the over-read slack rows (they only ever feed masked positions)
        slab_ref[pl.ds(R_in, SLACK), :] = jnp.zeros((SLACK, Cin), cdt)

        # ---- conv1 (3x3, pad 1) + ReLU over the halo'd region ----------------
        acc1 = jnp.zeros((G1E, C1), jnp.float32)
        for dh in range(3):
            for dw in range(3):
                off = dh * Wp + dw
                patch = slab_ref[off:off + G1E, :]
                acc1 = acc1 + jnp.dot(patch, w1_ref[dh * 3 + dw],
                                      preferred_element_type=jnp.float32)
        h1 = jnp.maximum(acc1 + b1_ref[...], 0.0)

        # Zero the halo rows/cols that lie outside the real feature map: this IS
        # conv2's zero padding (and also kills any wrap/slack garbage).
        rglob = rowidx_ref[...] + (tidx * TH - 1).astype(jnp.float32)
        valid1 = ((cmask1_ref[...] > 0.5)
                  & (rglob >= 0.0) & (rglob <= float(H - 1)))
        h1 = jnp.where(valid1, h1, 0.0).astype(cdt)            # bf16 MXU operand

        # ---- conv2 (3x3, pad 1) + ReLU ---------------------------------------
        acc2 = jnp.zeros((G2, C2P), jnp.float32)
        for dh in range(3):
            for dw in range(3):
                off = dh * Wp + dw
                patch = h1[off:off + G2, :]
                acc2 = acc2 + jnp.dot(patch, w2_ref[dh * 3 + dw],
                                      preferred_element_type=jnp.float32)
        h2 = jnp.maximum(acc2 + b2_ref[...], 0.0)

        # ---- GeM pooling (p=3): accumulate sum(clamp(x, eps)^3) across tiles --
        xc = jnp.maximum(h2, GEM_EPS)
        cube = jnp.where(cmask2_ref[...] > 0.5, xc * xc * xc, 0.0)
        pool_ref[...] += jnp.sum(cube, axis=0, keepdims=True)

        # ---- epilogue on the last row tile: GeM^(1/p), fc_cls, fc_mul, L2N ----
        @pl.when(tidx == pl.num_programs(1) - 1)
        def _finalize():
            m = pool_ref[...] * (1.0 / float(H * W))
            pooled = jnp.exp(jnp.log(m) * (1.0 / GEM_P))       # cube root via EUP
            lane = jax.lax.broadcasted_iota(jnp.int32, (1, C2P), 1)
            pooled = jnp.where(lane < C2, pooled, 0.0)         # exact-zero pad lanes
            cls = jnp.dot(pooled, wc_ref[...],
                          preferred_element_type=jnp.float32) + bc_ref[...]
            mul = jnp.dot(pooled, wm_ref[...],
                          preferred_element_type=jnp.float32) + bm_ref[...]
            nrm = jnp.sqrt(jnp.sum(pooled * pooled, axis=1, keepdims=True))
            o = pooled * pl.reciprocal(nrm + L2N_EPS, approx=True)
            o_ref[...] = o[None].astype(o_ref.dtype)
            cls_ref[...] = cls[None].astype(cls_ref.dtype)
            mul_ref[...] = mul[None].astype(mul_ref.dtype)

    grid = (N, n_tiles)
    o_pad, cls_pad, mul_pad = pl.pallas_call(
        kernel,
        out_shape=(jax.ShapeDtypeStruct((N, 1, C2P), jnp.float32),
                   jax.ShapeDtypeStruct((N, 1, KCP), jnp.float32),
                   jax.ShapeDtypeStruct((N, 1, KMP), jnp.float32)),
        grid_spec=pltpu.PrefetchScalarGridSpec(
            num_scalar_prefetch=0,
            grid=grid,
            in_specs=[
                pl.BlockSpec(memory_space=pl.ANY),                    # x (stays in HBM)
                pl.BlockSpec((9, Cin, C1), lambda b, i: (0, 0, 0)),   # w1
                pl.BlockSpec((1, C1), lambda b, i: (0, 0)),           # b1
                pl.BlockSpec((9, C1, C2P), lambda b, i: (0, 0, 0)),   # w2 (padded)
                pl.BlockSpec((1, C2P), lambda b, i: (0, 0)),          # b2 (padded)
                pl.BlockSpec((C2P, KCP), lambda b, i: (0, 0)),        # wc (padded)
                pl.BlockSpec((1, KCP), lambda b, i: (0, 0)),          # bc (padded)
                pl.BlockSpec((C2P, KMP), lambda b, i: (0, 0)),        # wm (padded)
                pl.BlockSpec((1, KMP), lambda b, i: (0, 0)),          # bm (padded)
                pl.BlockSpec((G1E, 1), lambda b, i: (0, 0)),          # rowidx1
                pl.BlockSpec((G1E, 1), lambda b, i: (0, 0)),          # colmask1
                pl.BlockSpec((G2, 1), lambda b, i: (0, 0)),           # colmask2
            ],
            out_specs=(
                pl.BlockSpec((1, 1, C2P), lambda b, i: (b, 0, 0)),
                pl.BlockSpec((1, 1, KCP), lambda b, i: (b, 0, 0)),
                pl.BlockSpec((1, 1, KMP), lambda b, i: (b, 0, 0)),
            ),
            scratch_shapes=[
                pltpu.VMEM((R_in + SLACK, Cin), cdt),                 # input row-slab
                pltpu.VMEM((1, C2P), jnp.float32),                    # GeM accumulator
            ]),
        compiler_params=pltpu.CompilerParams(
            dimension_semantics=("parallel", "arbitrary")),
    )(x_flat, w1, b1, w2, b2, wc, bc, wm, bm, rowidx1, colmask1, colmask2)

    # slice the lane-dense slabs back to the module's logical widths
    o = o_pad.reshape(N, C2P)[:, :C2]
    cls = cls_pad.reshape(N, KCP)[:, :ncls]
    cls_mul = mul_pad.reshape(N, KMP)[:, :nmul]
    # TODO(synk): graph=True branch (sigmoid-weighted per-class feature maps, GCN,
    # per-sample loop) not implemented -- the GCN class is undefined in the reference.
    return o, cls, cls_mul


# ---------------------------------------------------------------------------
# Pure-JAX reference (for a loose-tolerance self-check; kernel uses bf16 operands)
# ---------------------------------------------------------------------------
def reference_forward(x_nchw, params):
    x = jnp.transpose(x_nchw, (0, 2, 3, 1))

    def conv_relu(h, w, b):
        y = jax.lax.conv_general_dilated(
            h, w, window_strides=(1, 1), padding="SAME",
            dimension_numbers=("NHWC", "HWIO", "NHWC"))
        return jnp.maximum(y + b, 0.0)

    h = conv_relu(x, params["w1"], params["b1"])
    h = conv_relu(h, params["w2"], params["b2"])
    pooled = jnp.mean(jnp.maximum(h, GEM_EPS) ** GEM_P, axis=(1, 2)) ** (1.0 / GEM_P)
    cls = pooled @ params["wc"] + params["bc"]
    mul = pooled @ params["wm"] + params["bm"]
    o = pooled / (jnp.sqrt(jnp.sum(pooled * pooled, axis=1, keepdims=True)) + L2N_EPS)
    return o, cls, mul


def init_params(key, cin=4, c1=16, c2=32, ncls=8, nmul=10):
    ks = jax.random.split(key, 6)

    def lin(k, fan_in, shape):
        return jax.random.normal(k, shape, jnp.float32) / jnp.sqrt(float(fan_in))

    return dict(
        # conv weights in (kh, kw, Cin, Cout); fc weights in (in, out)
        w1=lin(ks[0], 9 * cin, (3, 3, cin, c1)),
        b1=jnp.zeros((c1,), jnp.float32),
        w2=lin(ks[1], 9 * c1, (3, 3, c1, c2)),
        b2=jnp.zeros((c2,), jnp.float32),
        wc=lin(ks[2], c2, (c2, ncls)),
        bc=lin(ks[3], c2, (ncls,)),
        wm=lin(ks[4], c2, (c2, nmul)),
        bm=lin(ks[5], c2, (nmul,)),
    )


if __name__ == "__main__":
    key = jax.random.PRNGKey(0)
    kx, kp = jax.random.split(key)
    x = jax.random.normal(kx, (2, 4, 16, 16), jnp.float32)   # NCHW, like PyTorch
    params = init_params(kp)

    fwd = jax.jit(image_retrieval_net_forward)
    o, cls, cls_mul = fwd(x, params)
    jax.block_until_ready((o, cls, cls_mul))

    assert o.shape == (2, 32) and cls.shape == (2, 8) and cls_mul.shape == (2, 10)

    # loose-tolerance check vs the f32 XLA reference (kernel matmuls run in bf16)
    ro, rc, rm = jax.jit(reference_forward)(x, params)
    for got, want in ((o, ro), (cls, rc), (cls_mul, rm)):
        err = float(jnp.max(jnp.abs(got - want)))
        assert err < 1e-1, f"kernel/reference mismatch: max abs err = {err}"

    print("KERNEL_OK")
</pallas_src>

<mosaic_0001>
module attributes {stable_mosaic.version = 11 : i64} {
  func.func @kernel(%arg0: i32, %arg1: i32, %arg2: memref<800x4xbf16, #tpu.memory_space<any>>, %arg3: memref<9x4x16xbf16, #tpu.memory_space<vmem>>, %arg4: memref<1x16xf32, #tpu.memory_space<vmem>>, %arg5: memref<9x16x128xbf16, #tpu.memory_space<vmem>>, %arg6: memref<1x128xf32, #tpu.memory_space<vmem>>, %arg7: memref<128x128xf32, #tpu.memory_space<vmem>>, %arg8: memref<1x128xf32, #tpu.memory_space<vmem>>, %arg9: memref<128x128xf32, #tpu.memory_space<vmem>>, %arg10: memref<1x128xf32, #tpu.memory_space<vmem>>, %arg11: memref<208x1xf32, #tpu.memory_space<vmem>>, %arg12: memref<208x1xf32, #tpu.memory_space<vmem>>, %arg13: memref<160x1xf32, #tpu.memory_space<vmem>>, %arg14: memref<1x1x128xf32, #tpu.memory_space<vmem>>, %arg15: memref<1x1x128xf32, #tpu.memory_space<vmem>>, %arg16: memref<1x1x128xf32, #tpu.memory_space<vmem>>, %arg17: memref<256x4xbf16, #tpu.memory_space<vmem>>, %arg18: memref<1x128xf32, #tpu.memory_space<vmem>>) attributes {dimension_semantics = [#tpu.dimension_semantics<parallel>, #tpu.dimension_semantics<arbitrary>], iteration_bounds = array<i64: 2, 2>, scalar_prefetch = 0 : i64, scratch_operands = 2 : i64, tpu.core_type = #tpu.core_type<tc>, window_params = [{}, {pipeline_mode = #tpu.pipeline_mode<synchronous>, transform_indices = @transform_1, window_bounds = array<i64: 9, 4, 16>}, {pipeline_mode = #tpu.pipeline_mode<synchronous>, transform_indices = @transform_2, window_bounds = array<i64: 1, 16>}, {pipeline_mode = #tpu.pipeline_mode<synchronous>, transform_indices = @transform_3, window_bounds = array<i64: 9, 16, 128>}, {pipeline_mode = #tpu.pipeline_mode<synchronous>, transform_indices = @transform_4, window_bounds = array<i64: 1, 128>}, {pipeline_mode = #tpu.pipeline_mode<synchronous>, transform_indices = @transform_5, window_bounds = array<i64: 128, 128>}, {pipeline_mode = #tpu.pipeline_mode<synchronous>, transform_indices = @transform_6, window_bounds = array<i64: 1, 128>}, {pipeline_mode = #tpu.pipeline_mode<synchronous>, transform_indices = @transform_7, window_bounds = array<i64: 128, 128>}, {pipeline_mode = #tpu.pipeline_mode<synchronous>, transform_indices = @transform_8, window_bounds = array<i64: 1, 128>}, {pipeline_mode = #tpu.pipeline_mode<synchronous>, transform_indices = @transform_9, window_bounds = array<i64: 208, 1>}, {pipeline_mode = #tpu.pipeline_mode<synchronous>, transform_indices = @transform_10, window_bounds = array<i64: 208, 1>}, {pipeline_mode = #tpu.pipeline_mode<synchronous>, transform_indices = @transform_11, window_bounds = array<i64: 160, 1>}, {transform_indices = @transform_12, window_bounds = array<i64: 1, 1, 128>}, {transform_indices = @transform_13, window_bounds = array<i64: 1, 1, 128>}, {transform_indices = @transform_14, window_bounds = array<i64: 1, 1, 128>}]} {
    %c0_i32 = arith.constant 0 : i32
    %0 = arith.cmpi eq, %arg1, %c0_i32 : i32
    %1 = arith.extui %0 : i1 to i32
    %c0_i32_0 = arith.constant 0 : i32
    %2 = arith.cmpi ne, %1, %c0_i32_0 : i32
    scf.if %2 {
      %cst_105 = arith.constant 0.000000e+00 : f32
      %149 = vector.broadcast %cst_105 : f32 to vector<1x128xf32>
      %c0_106 = arith.constant 0 : index
      %c0_107 = arith.constant 0 : index
      %150 = vector.load %arg18[%c0_106, %c0_107] : memref<1x128xf32, #tpu.memory_space<vmem>>, vector<1x128xf32>
      tpu.vector_store %arg18[%c0_106, %c0_107], %149 {strides = array<i32>} : memref<1x128xf32, #tpu.memory_space<vmem>>, vector<1x128xf32>,
    } else {
    }
    %c400_i32 = arith.constant 400 : i32
    %3 = arith.muli %arg0, %c400_i32 : i32
    %c160_i32 = arith.constant 160 : i32
    %4 = arith.muli %arg1, %c160_i32 : i32
    %5 = arith.addi %3, %4 : i32
    "tpu.region"() ({
      %149 = tpu.sem_alloc : memref<!tpu.dma_semaphore, #tpu.memory_space<semaphore_mem>>
      %c0_i32_105 = arith.constant 0 : i32
      %150 = tpu.memref_slice %arg2[%5, %c0_i32_105] : memref<800x4xbf16, #tpu.memory_space<any>> -> memref<240x4xbf16, #tpu.memory_space<any>>
      %c0_i32_106 = arith.constant 0 : i32
      %c0_i32_107 = arith.constant 0 : i32
      %151 = tpu.memref_slice %arg17[%c0_i32_106, %c0_i32_107] : memref<256x4xbf16, #tpu.memory_space<vmem>> -> memref<240x4xbf16, #tpu.memory_space<vmem>>
      tpu.enqueue_dma source(%150 : memref<240x4xbf16, #tpu.memory_space<any>>) target(%151 : memref<240x4xbf16, #tpu.memory_space<vmem>>) target_semaphore(%149 : memref<!tpu.dma_semaphore, #tpu.memory_space<semaphore_mem>>)
      %c0_i32_108 = arith.constant 0 : i32
      %152 = tpu.memref_slice %arg2[%5, %c0_i32_108] : memref<800x4xbf16, #tpu.memory_space<any>> -> memref<240x4xbf16, #tpu.memory_space<any>>
      %c0_i32_109 = arith.constant 0 : i32
      %c0_i32_110 = arith.constant 0 : i32
      %153 = tpu.memref_slice %arg17[%c0_i32_109, %c0_i32_110] : memref<256x4xbf16, #tpu.memory_space<vmem>> -> memref<240x4xbf16, #tpu.memory_space<vmem>>
      tpu.wait_dma2 semaphore(%149 : memref<!tpu.dma_semaphore, #tpu.memory_space<semaphore_mem>>) src(%152 : memref<240x4xbf16, #tpu.memory_space<any>>) dst(%153 : memref<240x4xbf16, #tpu.memory_space<vmem>>)
      tpu.yield
    }) : () -> ()
    %cst = arith.constant 0.000000e+00 : bf16
    %6 = vector.broadcast %cst : bf16 to vector<16x4xbf16>
    %c240 = arith.constant 240 : index
    %c0 = arith.constant 0 : index
    %7 = vector.load %arg17[%c240, %c0] : memref<256x4xbf16, #tpu.memory_space<vmem>>, vector<16x4xbf16>
    tpu.vector_store %arg17[%c240, %c0], %6 {strides = array<i32>} : memref<256x4xbf16, #tpu.memory_space<vmem>>, vector<16x4xbf16>,
    %cst_1 = arith.constant 0.000000e+00 : f32
    %8 = vector.broadcast %cst_1 : f32 to vector<208x16xf32>
    %c0_2 = arith.constant 0 : index
    %c0_3 = arith.constant 0 : index
    %9 = vector.load %arg17[%c0_2, %c0_3] : memref<256x4xbf16, #tpu.memory_space<vmem>>, vector<208x4xbf16>
    %c0_4 = arith.constant 0 : index
    %c0_5 = arith.constant 0 : index
    %c0_6 = arith.constant 0 : index
    %10 = vector.load %arg3[%c0_4, %c0_5, %c0_6] : memref<9x4x16xbf16, #tpu.memory_space<vmem>>, vector<1x4x16xbf16>
    %11 = vector.shape_cast %10 : vector<1x4x16xbf16> to vector<4x16xbf16>
    %cst_7 = arith.constant dense<0.000000e+00> : vector<208x16xf32>
    %12 = tpu.matmul %9, %11, %cst_7 {dimension_numbers = #tpu.dot_dimension_numbers<[1], [0], [0], [1], [0, 0, 1, 1], [], []>} : vector<208x4xbf16>, vector<4x16xbf16>, vector<208x16xf32> -> vector<208x16xf32>
    %13 = arith.addf %8, %12 : vector<208x16xf32>
    %c1 = arith.constant 1 : index
    %c0_8 = arith.constant 0 : index
    %14 = vector.load %arg17[%c1, %c0_8] : memref<256x4xbf16, #tpu.memory_space<vmem>>, vector<208x4xbf16>
    %c1_9 = arith.constant 1 : index
    %c0_10 = arith.constant 0 : index
    %c0_11 = arith.constant 0 : index
    %15 = vector.load %arg3[%c1_9, %c0_10, %c0_11] : memref<9x4x16xbf16, #tpu.memory_space<vmem>>, vector<1x4x16xbf16>
    %16 = vector.shape_cast %15 : vector<1x4x16xbf16> to vector<4x16xbf16>
    %cst_12 = arith.constant dense<0.000000e+00> : vector<208x16xf32>
    %17 = tpu.matmul %14, %16, %cst_12 {dimension_numbers = #tpu.dot_dimension_numbers<[1], [0], [0], [1], [0, 0, 1, 1], [], []>} : vector<208x4xbf16>, vector<4x16xbf16>, vector<208x16xf32> -> vector<208x16xf32>
    %18 = arith.addf %13, %17 : vector<208x16xf32>
    %c2 = arith.constant 2 : index
    %c0_13 = arith.constant 0 : index
    %19 = vector.load %arg17[%c2, %c0_13] : memref<256x4xbf16, #tpu.memory_space<vmem>>, vector<208x4xbf16>
    %c2_14 = arith.constant 2 : index
    %c0_15 = arith.constant 0 : index
    %c0_16 = arith.constant 0 : index
    %20 = vector.load %arg3[%c2_14, %c0_15, %c0_16] : memref<9x4x16xbf16, #tpu.memory_space<vmem>>, vector<1x4x16xbf16>
    %21 = vector.shape_cast %20 : vector<1x4x16xbf16> to vector<4x16xbf16>
    %cst_17 = arith.constant dense<0.000000e+00> : vector<208x16xf32>
    %22 = tpu.matmul %19, %21, %cst_17 {dimension_numbers = #tpu.dot_dimension_numbers<[1], [0], [0], [1], [0, 0, 1, 1], [], []>} : vector<208x4xbf16>, vector<4x16xbf16>, vector<208x16xf32> -> vector<208x16xf32>
    %23 = arith.addf %18, %22 : vector<208x16xf32>
    %c20 = arith.constant 20 : index
    %c0_18 = arith.constant 0 : index
    %24 = vector.load %arg17[%c20, %c0_18] : memref<256x4xbf16, #tpu.memory_space<vmem>>, vector<208x4xbf16>
    %c3 = arith.constant 3 : index
    %c0_19 = arith.constant 0 : index
    %c0_20 = arith.constant 0 : index
    %25 = vector.load %arg3[%c3, %c0_19, %c0_20] : memref<9x4x16xbf16, #tpu.memory_space<vmem>>, vector<1x4x16xbf16>
    %26 = vector.shape_cast %25 : vector<1x4x16xbf16> to vector<4x16xbf16>
    %cst_21 = arith.constant dense<0.000000e+00> : vector<208x16xf32>
    %27 = tpu.matmul %24, %26, %cst_21 {dimension_numbers = #tpu.dot_dimension_numbers<[1], [0], [0], [1], [0, 0, 1, 1], [], []>} : vector<208x4xbf16>, vector<4x16xbf16>, vector<208x16xf32> -> vector<208x16xf32>
    %28 = arith.addf %23, %27 : vector<208x16xf32>
    %c21 = arith.constant 21 : index
    %c0_22 = arith.constant 0 : index
    %29 = vector.load %arg17[%c21, %c0_22] : memref<256x4xbf16, #tpu.memory_space<vmem>>, vector<208x4xbf16>
    %c4 = arith.constant 4 : index
    %c0_23 = arith.constant 0 : index
    %c0_24 = arith.constant 0 : index
    %30 = vector.load %arg3[%c4, %c0_23, %c0_24] : memref<9x4x16xbf16, #tpu.memory_space<vmem>>, vector<1x4x16xbf16>
    %31 = vector.shape_cast %30 : vector<1x4x16xbf16> to vector<4x16xbf16>
    %cst_25 = arith.constant dense<0.000000e+00> : vector<208x16xf32>
    %32 = tpu.matmul %29, %31, %cst_25 {dimension_numbers = #tpu.dot_dimension_numbers<[1], [0], [0], [1], [0, 0, 1, 1], [], []>} : vector<208x4xbf16>, vector<4x16xbf16>, vector<208x16xf32> -> vector<208x16xf32>
    %33 = arith.addf %28, %32 : vector<208x16xf32>
    %c22 = arith.constant 22 : index
    %c0_26 = arith.constant 0 : index
    %34 = vector.load %arg17[%c22, %c0_26] : memref<256x4xbf16, #tpu.memory_space<vmem>>, vector<208x4xbf16>
    %c5 = arith.constant 5 : index
    %c0_27 = arith.constant 0 : index
    %c0_28 = arith.constant 0 : index
    %35 = vector.load %arg3[%c5, %c0_27, %c0_28] : memref<9x4x16xbf16, #tpu.memory_space<vmem>>, vector<1x4x16xbf16>
    %36 = vector.shape_cast %35 : vector<1x4x16xbf16> to vector<4x16xbf16>
    %cst_29 = arith.constant dense<0.000000e+00> : vector<208x16xf32>
    %37 = tpu.matmul %34, %36, %cst_29 {dimension_numbers = #tpu.dot_dimension_numbers<[1], [0], [0], [1], [0, 0, 1, 1], [], []>} : vector<208x4xbf16>, vector<4x16xbf16>, vector<208x16xf32> -> vector<208x16xf32>
    %38 = arith.addf %33, %37 : vector<208x16xf32>
    %c40 = arith.constant 40 : index
    %c0_30 = arith.constant 0 : index
    %39 = vector.load %arg17[%c40, %c0_30] : memref<256x4xbf16, #tpu.memory_space<vmem>>, vector<208x4xbf16>
    %c6 = arith.constant 6 : index
    %c0_31 = arith.constant 0 : index
    %c0_32 = arith.constant 0 : index
    %40 = vector.load %arg3[%c6, %c0_31, %c0_32] : memref<9x4x16xbf16, #tpu.memory_space<vmem>>, vector<1x4x16xbf16>
    %41 = vector.shape_cast %40 : vector<1x4x16xbf16> to vector<4x16xbf16>
    %cst_33 = arith.constant dense<0.000000e+00> : vector<208x16xf32>
    %42 = tpu.matmul %39, %41, %cst_33 {dimension_numbers = #tpu.dot_dimension_numbers<[1], [0], [0], [1], [0, 0, 1, 1], [], []>} : vector<208x4xbf16>, vector<4x16xbf16>, vector<208x16xf32> -> vector<208x16xf32>
    %43 = arith.addf %38, %42 : vector<208x16xf32>
    %c41 = arith.constant 41 : index
    %c0_34 = arith.constant 0 : index
    %44 = vector.load %arg17[%c41, %c0_34] : memref<256x4xbf16, #tpu.memory_space<vmem>>, vector<208x4xbf16>
    %c7 = arith.constant 7 : index
    %c0_35 = arith.constant 0 : index
    %c0_36 = arith.constant 0 : index
    %45 = vector.load %arg3[%c7, %c0_35, %c0_36] : memref<9x4x16xbf16, #tpu.memory_space<vmem>>, vector<1x4x16xbf16>
    %46 = vector.shape_cast %45 : vector<1x4x16xbf16> to vector<4x16xbf16>
    %cst_37 = arith.constant dense<0.000000e+00> : vector<208x16xf32>
    %47 = tpu.matmul %44, %46, %cst_37 {dimension_numbers = #tpu.dot_dimension_numbers<[1], [0], [0], [1], [0, 0, 1, 1], [], []>} : vector<208x4xbf16>, vector<4x16xbf16>, vector<208x16xf32> -> vector<208x16xf32>
    %48 = arith.addf %43, %47 : vector<208x16xf32>
    %c42 = arith.constant 42 : index
    %c0_38 = arith.constant 0 : index
    %49 = vector.load %arg17[%c42, %c0_38] : memref<256x4xbf16, #tpu.memory_space<vmem>>, vector<208x4xbf16>
    %c8 = arith.constant 8 : index
    %c0_39 = arith.constant 0 : index
    %c0_40 = arith.constant 0 : index
    %50 = vector.load %arg3[%c8, %c0_39, %c0_40] : memref<9x4x16xbf16, #tpu.memory_space<vmem>>, vector<1x4x16xbf16>
    %51 = vector.shape_cast %50 : vector<1x4x16xbf16> to vector<4x16xbf16>
    %cst_41 = arith.constant dense<0.000000e+00> : vector<208x16xf32>
    %52 = tpu.matmul %49, %51, %cst_41 {dimension_numbers = #tpu.dot_dimension_numbers<[1], [0], [0], [1], [0, 0, 1, 1], [], []>} : vector<208x4xbf16>, vector<4x16xbf16>, vector<208x16xf32> -> vector<208x16xf32>
    %53 = arith.addf %48, %52 : vector<208x16xf32>
    %c0_42 = arith.constant 0 : index
    %c0_43 = arith.constant 0 : index
    %54 = vector.load %arg4[%c0_42, %c0_43] : memref<1x16xf32, #tpu.memory_space<vmem>>, vector<1x16xf32>
    %55 = vector.broadcast %54 : vector<1x16xf32> to vector<208x16xf32>
    %56 = arith.addf %53, %55 : vector<208x16xf32>
    %cst_44 = arith.constant 0.000000e+00 : f32
    %57 = vector.broadcast %cst_44 : f32 to vector<208x16xf32>
    %58 = arith.maximumf %56, %57 : vector<208x16xf32>
    %c0_45 = arith.constant 0 : index
    %c0_46 = arith.constant 0 : index
    %59 = vector.load %arg11[%c0_45, %c0_46] : memref<208x1xf32, #tpu.memory_space<vmem>>, vector<208x1xf32>
    %c8_i32 = arith.constant 8 : i32
    %60 = arith.muli %arg1, %c8_i32 : i32
    %c1_i32 = arith.constant 1 : i32
    %61 = arith.subi %60, %c1_i32 : i32
    %62 = arith.sitofp %61 : i32 to f32
    %63 = vector.broadcast %62 : f32 to vector<208x1xf32>
    %64 = arith.addf %59, %63 : vector<208x1xf32>
    %c0_47 = arith.constant 0 : index
    %c0_48 = arith.constant 0 : index
    %65 = vector.load %arg12[%c0_47, %c0_48] : memref<208x1xf32, #tpu.memory_space<vmem>>, vector<208x1xf32>
    %cst_49 = arith.constant 5.000000e-01 : f32
    %66 = vector.broadcast %cst_49 : f32 to vector<208x1xf32>
    %67 = arith.cmpf ogt, %65, %66 : vector<208x1xf32>
    %cst_50 = arith.constant 0.000000e+00 : f32
    %68 = vector.broadcast %cst_50 : f32 to vector<208x1xf32>
    %69 = arith.cmpf oge, %64, %68 : vector<208x1xf32>
    %70 = arith.andi %67, %69 : vector<208x1xi1>
    %cst_51 = arith.constant 1.500000e+01 : f32
    %71 = vector.broadcast %cst_51 : f32 to vector<208x1xf32>
    %72 = arith.cmpf ole, %64, %71 : vector<208x1xf32>
    %73 = arith.andi %70, %72 : vector<208x1xi1>
    %cst_52 = arith.constant 0.000000e+00 : f32
    %74 = vector.shape_cast %73 : vector<208x1xi1> to vector<208x1xi1>
    %75 = vector.broadcast %74 : vector<208x1xi1> to vector<208x16xi1>
    %76 = vector.broadcast %cst_52 : f32 to vector<208x16xf32>
    %77 = arith.select %75, %58, %76 : vector<208x16xi1>, vector<208x16xf32>
    %78 = arith.truncf %77 : vector<208x16xf32> to vector<208x16xbf16>
    %cst_53 = arith.constant 0.000000e+00 : f32
    %79 = vector.broadcast %cst_53 : f32 to vector<160x128xf32>
    %80 = vector.extract_strided_slice %78 {offsets = [0, 0], sizes = [160, 16], strides = [1, 1]} : vector<208x16xbf16> to vector<160x16xbf16>
    %c0_54 = arith.constant 0 : index
    %c0_55 = arith.constant 0 : index
    %c0_56 = arith.constant 0 : index
    %81 = vector.load %arg5[%c0_54, %c0_55, %c0_56] : memref<9x16x128xbf16, #tpu.memory_space<vmem>>, vector<1x16x128xbf16>
    %82 = vector.shape_cast %81 : vector<1x16x128xbf16> to vector<16x128xbf16>
    %cst_57 = arith.constant dense<0.000000e+00> : vector<160x128xf32>
    %83 = tpu.matmul %80, %82, %cst_57 {dimension_numbers = #tpu.dot_dimension_numbers<[1], [0], [0], [1], [0, 0, 1, 1], [], []>} : vector<160x16xbf16>, vector<16x128xbf16>, vector<160x128xf32> -> vector<160x128xf32>
    %84 = arith.addf %79, %83 : vector<160x128xf32>
    %85 = vector.extract_strided_slice %78 {offsets = [1, 0], sizes = [160, 16], strides = [1, 1]} : vector<208x16xbf16> to vector<160x16xbf16>
    %c1_58 = arith.constant 1 : index
    %c0_59 = arith.constant 0 : index
    %c0_60 = arith.constant 0 : index
    %86 = vector.load %arg5[%c1_58, %c0_59, %c0_60] : memref<9x16x128xbf16, #tpu.memory_space<vmem>>, vector<1x16x128xbf16>
    %87 = vector.shape_cast %86 : vector<1x16x128xbf16> to vector<16x128xbf16>
    %cst_61 = arith.constant dense<0.000000e+00> : vector<160x128xf32>
    %88 = tpu.matmul %85, %87, %cst_61 {dimension_numbers = #tpu.dot_dimension_numbers<[1], [0], [0], [1], [0, 0, 1, 1], [], []>} : vector<160x16xbf16>, vector<16x128xbf16>, vector<160x128xf32> -> vector<160x128xf32>
    %89 = arith.addf %84, %88 : vector<160x128xf32>
    %90 = vector.extract_strided_slice %78 {offsets = [2, 0], sizes = [160, 16], strides = [1, 1]} : vector<208x16xbf16> to vector<160x16xbf16>
    %c2_62 = arith.constant 2 : index
    %c0_63 = arith.constant 0 : index
    %c0_64 = arith.constant 0 : index
    %91 = vector.load %arg5[%c2_62, %c0_63, %c0_64] : memref<9x16x128xbf16, #tpu.memory_space<vmem>>, vector<1x16x128xbf16>
    %92 = vector.shape_cast %91 : vector<1x16x128xbf16> to vector<16x128xbf16>
    %cst_65 = arith.constant dense<0.000000e+00> : vector<160x128xf32>
    %93 = tpu.matmul %90, %92, %cst_65 {dimension_numbers = #tpu.dot_dimension_numbers<[1], [0], [0], [1], [0, 0, 1, 1], [], []>} : vector<160x16xbf16>, vector<16x128xbf16>, vector<160x128xf32> -> vector<160x128xf32>
    %94 = arith.addf %89, %93 : vector<160x128xf32>
    %95 = vector.extract_strided_slice %78 {offsets = [20, 0], sizes = [160, 16], strides = [1, 1]} : vector<208x16xbf16> to vector<160x16xbf16>
    %c3_66 = arith.constant 3 : index
    %c0_67 = arith.constant 0 : index
    %c0_68 = arith.constant 0 : index
    %96 = vector.load %arg5[%c3_66, %c0_67, %c0_68] : memref<9x16x128xbf16, #tpu.memory_space<vmem>>, vector<1x16x128xbf16>
    %97 = vector.shape_cast %96 : vector<1x16x128xbf16> to vector<16x128xbf16>
    %cst_69 = arith.constant dense<0.000000e+00> : vector<160x128xf32>
    %98 = tpu.matmul %95, %97, %cst_69 {dimension_numbers = #tpu.dot_dimension_numbers<[1], [0], [0], [1], [0, 0, 1, 1], [], []>} : vector<160x16xbf16>, vector<16x128xbf16>, vector<160x128xf32> -> vector<160x128xf32>
    %99 = arith.addf %94, %98 : vector<160x128xf32>
    %100 = vector.extract_strided_slice %78 {offsets = [21, 0], sizes = [160, 16], strides = [1, 1]} : vector<208x16xbf16> to vector<160x16xbf16>
    %c4_70 = arith.constant 4 : index
    %c0_71 = arith.constant 0 : index
    %c0_72 = arith.constant 0 : index
    %101 = vector.load %arg5[%c4_70, %c0_71, %c0_72] : memref<9x16x128xbf16, #tpu.memory_space<vmem>>, vector<1x16x128xbf16>
    %102 = vector.shape_cast %101 : vector<1x16x128xbf16> to vector<16x128xbf16>
    %cst_73 = arith.constant dense<0.000000e+00> : vector<160x128xf32>
    %103 = tpu.matmul %100, %102, %cst_73 {dimension_numbers = #tpu.dot_dimension_numbers<[1], [0], [0], [1], [0, 0, 1, 1], [], []>} : vector<160x16xbf16>, vector<16x128xbf16>, vector<160x128xf32> -> vector<160x128xf32>
    %104 = arith.addf %99, %103 : vector<160x128xf32>
    %105 = vector.extract_strided_slice %78 {offsets = [22, 0], sizes = [160, 16], strides = [1, 1]} : vector<208x16xbf16> to vector<160x16xbf16>
    %c5_74 = arith.constant 5 : index
    %c0_75 = arith.constant 0 : index
    %c0_76 = arith.constant 0 : index
    %106 = vector.load %arg5[%c5_74, %c0_75, %c0_76] : memref<9x16x128xbf16, #tpu.memory_space<vmem>>, vector<1x16x128xbf16>
    %107 = vector.shape_cast %106 : vector<1x16x128xbf16> to vector<16x128xbf16>
    %cst_77 = arith.constant dense<0.000000e+00> : vector<160x128xf32>
    %108 = tpu.matmul %105, %107, %cst_77 {dimension_numbers = #tpu.dot_dimension_numbers<[1], [0], [0], [1], [0, 0, 1, 1], [], []>} : vector<160x16xbf16>, vector<16x128xbf16>, vector<160x128xf32> -> vector<160x128xf32>
    %109 = arith.addf %104, %108 : vector<160x128xf32>
    %110 = vector.extract_strided_slice %78 {offsets = [40, 0], sizes = [160, 16], strides = [1, 1]} : vector<208x16xbf16> to vector<160x16xbf16>
    %c6_78 = arith.constant 6 : index
    %c0_79 = arith.constant 0 : index
    %c0_80 = arith.constant 0 : index
    %111 = vector.load %arg5[%c6_78, %c0_79, %c0_80] : memref<9x16x128xbf16, #tpu.memory_space<vmem>>, vector<1x16x128xbf16>
    %112 = vector.shape_cast %111 : vector<1x16x128xbf16> to vector<16x128xbf16>
    %cst_81 = arith.constant dense<0.000000e+00> : vector<160x128xf32>
    %113 = tpu.matmul %110, %112, %cst_81 {dimension_numbers = #tpu.dot_dimension_numbers<[1], [0], [0], [1], [0, 0, 1, 1], [], []>} : vector<160x16xbf16>, vector<16x128xbf16>, vector<160x128xf32> -> vector<160x128xf32>
    %114 = arith.addf %109, %113 : vector<160x128xf32>
    %115 = vector.extract_strided_slice %78 {offsets = [41, 0], sizes = [160, 16], strides = [1, 1]} : vector<208x16xbf16> to vector<160x16xbf16>
    %c7_82 = arith.constant 7 : index
    %c0_83 = arith.constant 0 : index
    %c0_84 = arith.constant 0 : index
    %116 = vector.load %arg5[%c7_82, %c0_83, %c0_84] : memref<9x16x128xbf16, #tpu.memory_space<vmem>>, vector<1x16x128xbf16>
    %117 = vector.shape_cast %116 : vector<1x16x128xbf16> to vector<16x128xbf16>
    %cst_85 = arith.constant dense<0.000000e+00> : vector<160x128xf32>
    %118 = tpu.matmul %115, %117, %cst_85 {dimension_numbers = #tpu.dot_dimension_numbers<[1], [0], [0], [1], [0, 0, 1, 1], [], []>} : vector<160x16xbf16>, vector<16x128xbf16>, vector<160x128xf32> -> vector<160x128xf32>
    %119 = arith.addf %114, %118 : vector<160x128xf32>
    %120 = vector.extract_strided_slice %78 {offsets = [42, 0], sizes = [160, 16], strides = [1, 1]} : vector<208x16xbf16> to vector<160x16xbf16>
    %c8_86 = arith.constant 8 : index
    %c0_87 = arith.constant 0 : index
    %c0_88 = arith.constant 0 : index
    %121 = vector.load %arg5[%c8_86, %c0_87, %c0_88] : memref<9x16x128xbf16, #tpu.memory_space<vmem>>, vector<1x16x128xbf16>
    %122 = vector.shape_cast %121 : vector<1x16x128xbf16> to vector<16x128xbf16>
    %cst_89 = arith.constant dense<0.000000e+00> : vector<160x128xf32>
    %123 = tpu.matmul %120, %122, %cst_89 {dimension_numbers = #tpu.dot_dimension_numbers<[1], [0], [0], [1], [0, 0, 1, 1], [], []>} : vector<160x16xbf16>, vector<16x128xbf16>, vector<160x128xf32> -> vector<160x128xf32>
    %124 = arith.addf %119, %123 : vector<160x128xf32>
    %c0_90 = arith.constant 0 : index
    %c0_91 = arith.constant 0 : index
    %125 = vector.load %arg6[%c0_90, %c0_91] : memref<1x128xf32, #tpu.memory_space<vmem>>, vector<1x128xf32>
    %126 = vector.broadcast %125 : vector<1x128xf32> to vector<160x128xf32>
    %127 = arith.addf %124, %126 : vector<160x128xf32>
    %cst_92 = arith.constant 0.000000e+00 : f32
    %128 = vector.broadcast %cst_92 : f32 to vector<160x128xf32>
    %129 = arith.maximumf %127, %128 : vector<160x128xf32>
    %cst_93 = arith.constant 9.99999997E-7 : f32
    %130 = vector.broadcast %cst_93 : f32 to vector<160x128xf32>
    %131 = arith.maximumf %129, %130 : vector<160x128xf32>
    %c0_94 = arith.constant 0 : index
    %c0_95 = arith.constant 0 : index
    %132 = vector.load %arg13[%c0_94, %c0_95] : memref<160x1xf32, #tpu.memory_space<vmem>>, vector<160x1xf32>
    %cst_96 = arith.constant 5.000000e-01 : f32
    %133 = vector.broadcast %cst_96 : f32 to vector<160x1xf32>
    %134 = arith.cmpf ogt, %132, %133 : vector<160x1xf32>
    %135 = arith.mulf %131, %131 : vector<160x128xf32>
    %136 = arith.mulf %135, %131 : vector<160x128xf32>
    %cst_97 = arith.constant 0.000000e+00 : f32
    %137 = vector.shape_cast %134 : vector<160x1xi1> to vector<160x1xi1>
    %138 = vector.broadcast %137 : vector<160x1xi1> to vector<160x128xi1>
    %139 = vector.broadcast %cst_97 : f32 to vector<160x128xf32>
    %140 = arith.select %138, %136, %139 : vector<160x128xi1>, vector<160x128xf32>
    %c0_98 = arith.constant 0 : index
    %c0_99 = arith.constant 0 : index
    %141 = vector.load %arg18[%c0_98, %c0_99] : memref<1x128xf32, #tpu.memory_space<vmem>>, vector<1x128xf32>
    %cst_100 = arith.constant dense<0.000000e+00> : vector<128xf32>
    %142 = vector.multi_reduction <add>, %140, %cst_100 [0] : vector<160x128xf32> to vector<128xf32>
    %143 = vector.shape_cast %142 : vector<128xf32> to vector<1x128xf32>
    %144 = arith.addf %141, %143 : vector<1x128xf32>
    %c0_101 = arith.constant 0 : index
    %c0_102 = arith.constant 0 : index
    %145 = vector.load %arg18[%c0_101, %c0_102] : memref<1x128xf32, #tpu.memory_space<vmem>>, vector<1x128xf32>
    tpu.vector_store %arg18[%c0_101, %c0_102], %144 {strides = array<i32>} : memref<1x128xf32, #tpu.memory_space<vmem>>, vector<1x128xf32>,
    %c1_i32_103 = arith.constant 1 : i32
    %146 = arith.cmpi eq, %arg1, %c1_i32_103 : i32
    %147 = arith.extui %146 : i1 to i32
    %c0_i32_104 = arith.constant 0 : i32
    %148 = arith.cmpi ne, %147, %c0_i32_104 : i32
    scf.if %148 {
      %c0_105 = arith.constant 0 : index
      %c0_106 = arith.constant 0 : index
      %149 = vector.load %arg18[%c0_105, %c0_106] : memref<1x128xf32, #tpu.memory_space<vmem>>, vector<1x128xf32>
      %cst_107 = arith.constant 3.906250e-03 : f32
      %150 = vector.broadcast %cst_107 : f32 to vector<1x128xf32>
      %151 = arith.mulf %149, %150 : vector<1x128xf32>
      %152 = math.log %151 : vector<1x128xf32>
      %cst_108 = arith.constant 0.333333343 : f32
      %153 = vector.broadcast %cst_108 : f32 to vector<1x128xf32>
      %154 = arith.mulf %152, %153 : vector<1x128xf32>
      %155 = math.exp %154 : vector<1x128xf32>
      %156 = tpu.iota {dimensions = array<i32: 1>} : vector<1x128xi32>
      %c32_i32 = arith.constant 32 : i32
      %157 = vector.broadcast %c32_i32 : i32 to vector<1x128xi32>
      %158 = arith.cmpi slt, %156, %157 : vector<1x128xi32>
      %cst_109 = arith.constant 0.000000e+00 : f32
      %159 = vector.broadcast %cst_109 : f32 to vector<1x128xf32>
      %160 = arith.select %158, %155, %159 : vector<1x128xi1>, vector<1x128xf32>
      %c0_110 = arith.constant 0 : index
      %c0_111 = arith.constant 0 : index
      %161 = vector.load %arg7[%c0_110, %c0_111] : memref<128x128xf32, #tpu.memory_space<vmem>>, vector<128x128xf32>
      %cst_112 = arith.constant dense<0.000000e+00> : vector<1x128xf32>
      %162 = tpu.matmul %160, %161, %cst_112 {dimension_numbers = #tpu.dot_dimension_numbers<[1], [0], [0], [1], [0, 0, 1, 1], [], []>} : vector<1x128xf32>, vector<128x128xf32>, vector<1x128xf32> -> vector<1x128xf32>
      %c0_113 = arith.constant 0 : index
      %c0_114 = arith.constant 0 : index
      %163 = vector.load %arg8[%c0_113, %c0_114] : memref<1x128xf32, #tpu.memory_space<vmem>>, vector<1x128xf32>
      %164 = arith.addf %162, %163 : vector<1x128xf32>
      %c0_115 = arith.constant 0 : index
      %c0_116 = arith.constant 0 : index
      %165 = vector.load %arg9[%c0_115, %c0_116] : memref<128x128xf32, #tpu.memory_space<vmem>>, vector<128x128xf32>
      %cst_117 = arith.constant dense<0.000000e+00> : vector<1x128xf32>
      %166 = tpu.matmul %160, %165, %cst_117 {dimension_numbers = #tpu.dot_dimension_numbers<[1], [0], [0], [1], [0, 0, 1, 1], [], []>} : vector<1x128xf32>, vector<128x128xf32>, vector<1x128xf32> -> vector<1x128xf32>
      %c0_118 = arith.constant 0 : index
      %c0_119 = arith.constant 0 : index
      %167 = vector.load %arg10[%c0_118, %c0_119] : memref<1x128xf32, #tpu.memory_space<vmem>>, vector<1x128xf32>
      %168 = arith.addf %166, %167 : vector<1x128xf32>
      %169 = arith.mulf %160, %160 : vector<1x128xf32>
      %cst_120 = arith.constant dense<0.000000e+00> : vector<1xf32>
      %170 = vector.multi_reduction <add>, %169, %cst_120 [1] : vector<1x128xf32> to vector<1xf32>
      %171 = vector.shape_cast %170 : vector<1xf32> to vector<1x1xf32>
      %172 = math.sqrt %171 : vector<1x1xf32>
      %cst_121 = arith.constant 9.99999997E-7 : f32
      %173 = vector.broadcast %cst_121 : f32 to vector<1x1xf32>
      %174 = arith.addf %172, %173 : vector<1x1xf32>
      %175 = tpu.reciprocal %174 {approx = true} : vector<1x1xf32> -> vector<1x1xf32>
      %176 = vector.broadcast %175 : vector<1x1xf32> to vector<1x128xf32>
      %177 = arith.mulf %160, %176 : vector<1x128xf32>
      %178 = vector.shape_cast %177 : vector<1x128xf32> to vector<1x1x128xf32>
      %c0_122 = arith.constant 0 : index
      %c0_123 = arith.constant 0 : index
      %c0_124 = arith.constant 0 : index
      %179 = vector.load %arg14[%c0_122, %c0_123, %c0_124] : memref<1x1x128xf32, #tpu.memory_space<vmem>>, vector<1x1x128xf32>
      tpu.vector_store %arg14[%c0_122, %c0_123, %c0_124], %178 {strides = array<i32>} : memref<1x1x128xf32, #tpu.memory_space<vmem>>, vector<1x1x128xf32>,
      %180 = vector.shape_cast %164 : vector<1x128xf32> to vector<1x1x128xf32>
      %c0_125 = arith.constant 0 : index
      %c0_126 = arith.constant 0 : index
      %c0_127 = arith.constant 0 : index
      %181 = vector.load %arg15[%c0_125, %c0_126, %c0_127] : memref<1x1x128xf32, #tpu.memory_space<vmem>>, vector<1x1x128xf32>
      tpu.vector_store %arg15[%c0_125, %c0_126, %c0_127], %180 {strides = array<i32>} : memref<1x1x128xf32, #tpu.memory_space<vmem>>, vector<1x1x128xf32>,
      %182 = vector.shape_cast %168 : vector<1x128xf32> to vector<1x1x128xf32>
      %c0_128 = arith.constant 0 : index
      %c0_129 = arith.constant 0 : index
      %c0_130 = arith.constant 0 : index
      %183 = vector.load %arg16[%c0_128, %c0_129, %c0_130] : memref<1x1x128xf32, #tpu.memory_space<vmem>>, vector<1x1x128xf32>
      tpu.vector_store %arg16[%c0_128, %c0_129, %c0_130], %182 {strides = array<i32>} : memref<1x1x128xf32, #tpu.memory_space<vmem>>, vector<1x1x128xf32>,
    } else {
    }
    return
  }
  func.func @transform_1(%arg0: i32, %arg1: i32) -> (i32, i32, i32) {
    %c0_i32 = arith.constant 0 : i32
    %c0_i32_0 = arith.constant 0 : i32
    %c0_i32_1 = arith.constant 0 : i32
    %c0_i32_2 = arith.constant 0 : i32
    return %c0_i32, %c0_i32_0, %c0_i32_1 : i32, i32, i32
  }
  func.func @transform_2(%arg0: i32, %arg1: i32) -> (i32, i32) {
    %c0_i32 = arith.constant 0 : i32
    %c0_i32_0 = arith.constant 0 : i32
    %c0_i32_1 = arith.constant 0 : i32
    return %c0_i32, %c0_i32_0 : i32, i32
  }
  func.func @transform_3(%arg0: i32, %arg1: i32) -> (i32, i32, i32) {
    %c0_i32 = arith.constant 0 : i32
    %c0_i32_0 = arith.constant 0 : i32
    %c0_i32_1 = arith.constant 0 : i32
    %c0_i32_2 = arith.constant 0 : i32
    return %c0_i32, %c0_i32_0, %c0_i32_1 : i32, i32, i32
  }
  func.func @transform_4(%arg0: i32, %arg1: i32) -> (i32, i32) {
    %c0_i32 = arith.constant 0 : i32
    %c0_i32_0 = arith.constant 0 : i32
    %c0_i32_1 = arith.constant 0 : i32
    return %c0_i32, %c0_i32_0 : i32, i32
  }
  func.func @transform_5(%arg0: i32, %arg1: i32) -> (i32, i32) {
    %c0_i32 = arith.constant 0 : i32
    %c0_i32_0 = arith.constant 0 : i32
    %c0_i32_1 = arith.constant 0 : i32
    return %c0_i32, %c0_i32_0 : i32, i32
  }
  func.func @transform_6(%arg0: i32, %arg1: i32) -> (i32, i32) {
    %c0_i32 = arith.constant 0 : i32
    %c0_i32_0 = arith.constant 0 : i32
    %c0_i32_1 = arith.constant 0 : i32
    return %c0_i32, %c0_i32_0 : i32, i32
  }
  func.func @transform_7(%arg0: i32, %arg1: i32) -> (i32, i32) {
    %c0_i32 = arith.constant 0 : i32
    %c0_i32_0 = arith.constant 0 : i32
    %c0_i32_1 = arith.constant 0 : i32
    return %c0_i32, %c0_i32_0 : i32, i32
  }
  func.func @transform_8(%arg0: i32, %arg1: i32) -> (i32, i32) {
    %c0_i32 = arith.constant 0 : i32
    %c0_i32_0 = arith.constant 0 : i32
    %c0_i32_1 = arith.constant 0 : i32
    return %c0_i32, %c0_i32_0 : i32, i32
  }
  func.func @transform_9(%arg0: i32, %arg1: i32) -> (i32, i32) {
    %c0_i32 = arith.constant 0 : i32
    %c0_i32_0 = arith.constant 0 : i32
    %c0_i32_1 = arith.constant 0 : i32
    return %c0_i32, %c0_i32_0 : i32, i32
  }
  func.func @transform_10(%arg0: i32, %arg1: i32) -> (i32, i32) {
    %c0_i32 = arith.constant 0 : i32
    %c0_i32_0 = arith.constant 0 : i32
    %c0_i32_1 = arith.constant 0 : i32
    return %c0_i32, %c0_i32_0 : i32, i32
  }
  func.func @transform_11(%arg0: i32, %arg1: i32) -> (i32, i32) {
    %c0_i32 = arith.constant 0 : i32
    %c0_i32_0 = arith.constant 0 : i32
    %c0_i32_1 = arith.constant 0 : i32
    return %c0_i32, %c0_i32_0 : i32, i32
  }
  func.func @transform_12(%arg0: i32, %arg1: i32) -> (i32, i32, i32) {
    %c0_i32 = arith.constant 0 : i32
    %c0_i32_0 = arith.constant 0 : i32
    %c0_i32_1 = arith.constant 0 : i32
    return %arg0, %c0_i32, %c0_i32_0 : i32, i32, i32
  }
  func.func @transform_13(%arg0: i32, %arg1: i32) -> (i32, i32, i32) {
    %c0_i32 = arith.constant 0 : i32
    %c0_i32_0 = arith.constant 0 : i32
    %c0_i32_1 = arith.constant 0 : i32
    return %arg0, %c0_i32, %c0_i32_0 : i32, i32, i32
  }
  func.func @transform_14(%arg0: i32, %arg1: i32) -> (i32, i32, i32) {
    %c0_i32 = arith.constant 0 : i32
    %c0_i32_0 = arith.constant 0 : i32
    %c0_i32_1 = arith.constant 0 : i32
    return %arg0, %c0_i32, %c0_i32_0 : i32, i32, i32
  }
}

</mosaic_0001>

<bundles_post_ra>
// kernel: image_retrieval_net_forward.1
= control target key start
LH: loop header
LB: loop body
LE: loop exit
PB: predicated region body
PF: predicated region fallthrough
CT: control target
= control target key end

     0   :  { %s10402_s0 = inlined_call_operand.vmem [shape: bf16[800,4], index: 0, kind: input, shape index: {}]   ;;  %s10403_s1 = inlined_call_operand.vmem [shape: bf16[9,4,16], index: 1, kind: input, shape index: {}]   ;;  %s10404_s2 = inlined_call_operand.vmem [shape: f32[1,16], index: 2, kind: input, shape index: {}]   ;;  %s10405_s3 = inlined_call_operand.vmem [shape: bf16[9,16,128], index: 3, kind: input, shape index: {}]   ;;  %s10406_s4 = inlined_call_operand.vmem [shape: f32[1,128], index: 4, kind: input, shape index: {}]   ;;  %s10407_s5 = inlined_call_operand.vmem [shape: f32[128,128], index: 5, kind: input, shape index: {}]   ;;  %s10408_s6 = inlined_call_operand.vmem [shape: f32[1,128], index: 6, kind: input, shape index: {}]   ;;  %s10409_s7 = inlined_call_operand.vmem [shape: f32[128,128], index: 7, kind: input, shape index: {}]   ;;  %s10410_s8 = inlined_call_operand.vmem [shape: f32[1,128], index: 8, kind: input, shape index: {}]   ;;  %s10411_s9 = inlined_call_operand.vmem [shape: f32[208,1], index: 9, kind: input, shape index: {}]   ;;  %s10412_s10 = inlined_call_operand.vmem [shape: f32[208,1], index: 10, kind: input, shape index: {}]   ;;  %s10413_s11 = inlined_call_operand.vmem [shape: f32[160,1], index: 11, kind: input, shape index: {}]   ;;  %s10414_s12 = inlined_call_operand.hbm [shape: f32[2,1,128], index: 12, kind: output, shape index: {0}]   ;;  %s10415_s13 = inlined_call_operand.hbm [shape: f32[2,1,128], index: 13, kind: output, shape index: {1}]   ;;  %s10416_s14 = inlined_call_operand.hbm [shape: f32[2,1,128], index: 14, kind: output, shape index: {2}]  }
   0x1   :  { %10463 = sst [smem:[#allocation46_spill]] %s10402_s0 }
   0x2   :  { %10464 = sst [smem:[#allocation47_spill]] %s10403_s1 }
   0x3   :  { %20 = vsyncpa [#allocation5], 0 }
   0x4   :  { %22 = vsyncpa [#allocation5 + $0x1], 0 }
   0x5   :  { %23 = vsyncpa [#allocation7], 0 }
   0x6   :  { %25 = vsyncpa [#allocation7 + $0x1], 0  ;;  %s7668_s29 = smov 0   ;;  %s7670_s30 = smov 0  }
   0x7   :  { %s7672_s15 = smov 0   ;;  %s7674_s16 = smov 0  }
   0x8   :  { %s7676_s17 = smov 0   ;;  %s7678_s18 = smov 0  }
   0x9   :  { %s7680_s19 = smov 0   ;;  %s7682_s20 = smov 0  }
   0xa LB: > { %10465 = sst [smem:[#allocation14_spill]] %s7553_s29  ;;  %s10417_s21 = sadd.s32 4294967295, %s7581_s20   ;;  %s7581_s20 = sphi %s7682_s20, %s31_s20   ;;  %s7577_s19 = sphi %s7680_s19, %s10691_s19   ;;  %s7573_s18 = sphi %s7678_s18, %s10690_s18   ;;  %s7569_s17 = sphi %s7676_s17, %s10689_s17   ;;  %s7565_s16 = sphi %s7674_s16, %s10688_s16   ;;  %s7561_s15 = sphi %s7672_s15, %s10687_s15   ;;  %s7557_s30 = sphi %s7670_s30, %s10686_s30   ;;  %s7553_s29 = sphi %s7668_s29, %s10685_s29  }
   0xb   : > { %10466 = sst [smem:[#allocation15_spill]] %s7557_s30  ;;  %s10418_s22 = sadd.s32 4294967294, %s7581_s20  }
   0xc   : > { %10467 = sst [smem:[#allocation16_spill]] %s7561_s15  ;;  %s40_s23 = sadd.s32 1, %s7573_s18 }
   0xd   : > { %10468 = sst [smem:[#allocation17_spill]] %s7573_s18  ;;  %p41_p0 = scmp.ge.s32.totalorder %s40_s23, 2 }
   0xe   : > { %10469 = sst [smem:[#allocation18_spill]] %s7577_s19  ;;  %s43_s24 = sadd.s32 1, %s7577_s19 }
   0xf   : > { %p291_p1 = scmp.ne.s32.totalorder %s7561_s15, %s7557_s30  ;;  %p292_p2 = scmp.eq.s32.totalorder %s10417_s21, 3 }
  0x10   : > { %s10693_s23 = smov (%p41_p0, %s40_s23), 0  ;;  %s10695_s24 = smov (!%p41_p0, %s43_s24), %s7577_s19 }
  0x11   : > { %10470 = sst [smem:[#allocation19_spill]] %s10693_s23  ;;  %p7719_p3 = por %p292_p2, %p291_p1 }
  0x12   : > { %p297_p4 = scmp.ne.s32.totalorder %s7557_s30, %s7553_s29  ;;  %p45_p5 = scmp.ge.s32.totalorder %s10695_s24, 2 }
  0x13   : > { %p298_p6 = scmp.eq.s32.totalorder %s10418_s22, 3  ;;  %p5835_p7 = scmp.ge.s32.totalorder %s7581_s20, 1 }
  0x14   : > { %p401_p8 = scmp.lt.s32.totalorder %s7581_s20, 5  ;;  %s10697_s24 = smov (%p45_p5, %s10695_s24), 0 }
  0x15   : > { %10472 = sst [smem:[#allocation20_spill]] %s10697_s24  ;;  %p7731_p9 = por %p298_p6, %p297_p4 }
  0x16   : > { %p402_p10 = pnand %p5835_p7, %p401_p8  ;;  %s278_s27 = ssub.s32 %s7577_s19, %s10697_s24 }
  0x17   : > { %s10473_s26 = scalar_select %p7731_p9, 1, 0 }
  0x18   : > { %s281_s28 = sadd.s32 1, %s7561_s15  ;;  %p279_p11 = scmp.eq.s32.totalorder %s278_s27, 0 }
  0x19   : > { %10474 = sst [smem:[#allocation21_spill]] %s10473_s26  ;;  %405 = sbr.rel (%p402_p10) target bundleno = 1820 (0x71c), region = 64 }
  0x1a   : > { %s7739_s21 = scalar_select %p279_p11, %s7561_s15, %s281_s28  }
  0x1c   : > { %10475 = sst [smem:[#allocation22_spill]] %s7739_s21 }
  0x20   : > { %s7742_s23 = sand.u32 1, %s7557_s30   ;;  %p5836_p12 = scmp.ne.s32.totalorder %s7565_s16, 0 }
  0x21   : > { %s10462_s22 = scalar_lea.vmem [#allocation4], %s7742_s23  ;;  %s440_s18 = scalar_lea.vmem [#allocation6], %s7742_s23  ;;  %v7583_v0 = vmov (!%p5836_p12), 0.0  }
  0x22   : > { %451 = sbr.rel (%p5836_p12) target bundleno = 41 (0x29), region = 68  ;;  %452 = vst [vmem:[#allocation3] sm:$0x1] (!%p5836_p12), %v7583_v0 }
  0x29 PF: > { %s453_s27 = smul.u32 400, %s7569_s17 }
  0x2a   : > { %s454_s28 = smul.u32 160, %s7565_s16 }
  0x2c   : > { %s455_s24 = sadd.s32 %s454_s28, %s453_s27 }
  0x2d   : > { %s456_s19 = sshra.s32 %s455_s24, 3  ;;  %s10476_s0 = sld [smem:[#allocation46_spill]] }
  0x2e   : > { %s5837_s21 = sshll.u32 %s456_s19, 2 }
  0x33   : > { %s459_s26 = scalar_lea.vmem %s10476_s0, %s5837_s21 }
  0x34   : > { %v492_v1 = vld [vmem:[%s459_s26] sm:$0xff]  ;;  %v494_v2 = vld [vmem:[%s459_s26 + $0x8] sm:$0xff]  ;;  %v496_v3 = vld [vmem:[%s459_s26 + $0x10] sm:$0xff] }
  0x35   : > { %493 = vst [vmem:[#allocation2] sm:$0xff] %v492_v1  ;;  %495 = vst [vmem:[#allocation2 + $0x8] sm:$0xff] %v494_v2  ;;  %v498_v4 = vld [vmem:[%s459_s26 + $0x18] sm:$0xff]  ;;  %v500_v5 = vld [vmem:[%s459_s26 + $0x20] sm:$0xff] }
  0x36   : > { %497 = vst [vmem:[#allocation2 + $0x10] sm:$0xff] %v496_v3  ;;  %v502_v6 = vld [vmem:[%s459_s26 + $0x28] sm:$0xff]  ;;  %499 = vst [vmem:[#allocation2 + $0x18] sm:$0xff] %v498_v4  ;;  %v504_v7 = vld [vmem:[%s459_s26 + $0x30] sm:$0xff] }
  0x37   : > { %501 = vst [vmem:[#allocation2 + $0x20] sm:$0xff] %v500_v5  ;;  %503 = vst [vmem:[#allocation2 + $0x28] sm:$0xff] %v502_v6  ;;  %v506_v8 = vld [vmem:[%s459_s26 + $0x38] sm:$0xff]  ;;  %v508_v9 = vld [vmem:[%s459_s26 + $0x40] sm:$0xff] }
  0x38   : > { %505 = vst [vmem:[#allocation2 + $0x30] sm:$0xff] %v504_v7  ;;  %507 = vst [vmem:[#allocation2 + $0x38] sm:$0xff] %v506_v8  ;;  %v510_v10 = vld [vmem:[%s459_s26 + $0x48] sm:$0xff]  ;;  %v512_v11 = vld [vmem:[%s459_s26 + $0x50] sm:$0xff] }
  0x39   : > { %509 = vst [vmem:[#allocation2 + $0x40] sm:$0xff] %v508_v9  ;;  %v514_v12 = vld [vmem:[%s459_s26 + $0x58] sm:$0xff]  ;;  %511 = vst [vmem:[#allocation2 + $0x48] sm:$0xff] %v510_v10  ;;  %v516_v13 = vld [vmem:[%s459_s26 + $0x60] sm:$0xff] }
  0x3a   : > { %513 = vst [vmem:[#allocation2 + $0x50] sm:$0xff] %v512_v11  ;;  %515 = vst [vmem:[#allocation2 + $0x58] sm:$0xff] %v514_v12  ;;  %v518_v14 = vld [vmem:[%s459_s26 + $0x68] sm:$0xff]  ;;  %v520_v15 = vld [vmem:[%s459_s26 + $0x70] sm:$0xff] }
  0x3b   : > { %517 = vst [vmem:[#allocation2 + $0x60] sm:$0xff] %v516_v13  ;;  %519 = vst [vmem:[#allocation2 + $0x68] sm:$0xff] %v518_v14 }
  0x3c   : > { %521 = vst [vmem:[#allocation2 + $0x70] sm:$0xff] %v520_v15 }
  0x3d   : > { %529 = vsyncadd [#allocation9], 1920 }
  0x3e   : > { %7541 = dma.done.wait [#allocation9], 1920 }
  0x3f   : > { %7542 = vsyncadd [#allocation9], 4294965376  ;;  %s10477_s1 = sld [smem:[#allocation47_spill]]  ;;  %vm701_vm0 = vcmask 1041408   ;;  %v10448_v17 = vmov 0.0   ;;  %vm7585_vm1 = vmmov 0  }
  0x40   : > { %6349 = vmatprep.subr.bf16.mxu0 %v10448_v17  ;;  %6351 = vmatprep.mubr.msk.bf16.mxu0 %vm7585_vm1, %v10448_v17  ;;  %v7760_v19 = vld [vmem:[#allocation2] sm:$0xff]  ;;  %v7762_v20 = vld [vmem:[#allocation2 + $0x8] sm:$0xff]  ;;  %v7769_v24 = vld [vmem:[#allocation2 + $0x10] sm:$0xff]  ;;  %vm553_vm2 = vsmask.f32 7424  ;;  %vm534_vm3 = vcmask 31744  }
  0x41   : > { %v555_v21 = vshrl.u32 %v7760_v19, 16  ;;  %v557_v22 = vshll.u32 %v7760_v19, 16  ;;  %v562_v23 = vshll.u32 %v7762_v20, 16  ;;  %7151 = vmatprep.subr.bf16.mxu1 %v10448_v17  ;;  %6525 = vmatprep.mubr.msk.bf16.mxu1 %vm7585_vm1, %v10448_v17  ;;  %v566_v29 = vshrl.u32 %v7762_v20, 16  ;;  %v7785_v35 = vld [vmem:[#allocation2 + $0x18] sm:$0xff]  ;;  %v7798_v41 = vld [vmem:[#allocation2 + $0x20] sm:$0xff] }
  0x42   : > { %v10446_v30 = vshll.u32 %v7769_v24, 16  ;;  %v10447_v37 = vshrl.u32 %v7769_v24, 16  ;;  %v10444_v38 = vshll.u32 %v7785_v35, 16  ;;  %v10445_v43 = vshrl.u32 %v7785_v35, 16  ;;  %v7810_v47 = vld [vmem:[#allocation2 + $0x28] sm:$0xff]  ;;  %v7822_v53 = vld [vmem:[#allocation2 + $0x30] sm:$0xff] }
  0x43   : > { %v559_v25 = vrot.slane %v557_v22, 1  ;;  %v564_v26 = vrot.slane %v562_v23, 1  ;;  %v10442_v44 = vshll.u32 %v7798_v41, 16  ;;  %v10443_v49 = vshrl.u32 %v7798_v41, 16  ;;  %v7834_v59 = vld [vmem:[#allocation2 + $0x38] sm:$0xff]  ;;  %v7846_v1 = vld [vmem:[#allocation2 + $0x40] sm:$0xff] }
  0x44   : > { %v572_v34 = vrot.slane %v10446_v30, 1  ;;  %v580_v40 = vrot.slane %v10444_v38, 1  ;;  %v10440_v50 = vshll.u32 %v7810_v47, 16  ;;  %v10441_v55 = vshrl.u32 %v7810_v47, 16  ;;  %v7858_v7 = vld [vmem:[#allocation2 + $0x48] sm:$0xff]  ;;  %v7870_v13 = vld [vmem:[#allocation2 + $0x50] sm:$0xff] }
  0x45   : > { %v5838_v16 = vld [vmem:[%s10477_s1 + $0x2] sm:$0x3]  ;;  %v549_v27 = vld [vmem:[%s10477_s1] sm:$0x3]  ;;  %v560_v28 = vor.u32 %v559_v25, %v555_v21  ;;  %v568_v33 = vor.u32 %v566_v29, %v564_v26  ;;  %v588_v46 = vrot.slane %v10442_v44, 1  ;;  %v10438_v56 = vshll.u32 %v7822_v53, 16 }
  0x46   : > { %v703_v18 = vsel %vm701_vm0, %v5838_v16, 0  ;;  %v869_v31 = vsel %vm701_vm0, %v549_v27, 0  ;;  %v576_v39 = vor.u32 %v10447_v37, %v572_v34  ;;  %v584_v45 = vor.u32 %v10445_v43, %v580_v40  ;;  %v7882_v22 = vld [vmem:[#allocation2 + $0x58] sm:$0xff]  ;;  %v7894_v29 = vld [vmem:[#allocation2 + $0x60] sm:$0xff]  ;;  %s5964_s19 = sshll.u32 %s7565_s16, 3  ;;  %p6082_p13 = scmp.ne.s32.totalorder %s7565_s16, 1 }
  0x47   : > { %6350 = vmatpush3.bf16.msra.mxu0 %v703_v18  ;;  %v565_v32 = vsel %vm553_vm2, %v560_v28, %v564_v26  ;;  %v573_v36 = vsel %vm553_vm2, %v568_v33, %v572_v34  ;;  %v592_v51 = vor.u32 %v10443_v49, %v588_v46  ;;  %v596_v52 = vrot.slane %v10440_v50, 1  ;;  %v5879_v34 = vld [vmem:[%s10477_s1 + $0x6] sm:$0x3]  ;;  %s5965_s21 = sadd.s32 4294967295, %s5964_s19  ;;  %s10676_s19 = scalar_lea.vmem (!%p6082_p13), [#allocation8], %s7742_s23 }
  0x48   : > { %6403 = vmatprep.subr.bf16.mxu0 %v10448_v17  ;;  %v581_v42 = vsel %vm553_vm2, %v576_v39, %v580_v40  ;;  %v589_v48 = vsel %vm553_vm2, %v584_v45, %v588_v46  ;;  %v604_v58 = vrot.slane %v10438_v56, 1  ;;  %v10439_v61 = vshrl.u32 %v7822_v53, 16  ;;  %s3015_s24 = scvt.s32.f32 %s5965_s21 }
  0x49   : > { %v597_v54 = vsel %vm553_vm2, %v592_v51, %v596_v52  ;;  %v600_v57 = vor.u32 %v10441_v55, %v596_v52  ;;  %v10436_v62 = vshll.u32 %v7834_v59, 16  ;;  %v10437_v3 = vshrl.u32 %v7834_v59, 16 }
  0x4a   : > { %6352 = vmatmul.mubr.msk.bf16.vlgmr.msra.gmra.mrb[0].mxu0 %vm534_vm3, %v565_v32  ;;  %v608_v63 = vor.u32 %v10439_v61, %v604_v58  ;;  %v10434_v4 = vshll.u32 %v7846_v1, 16  ;;  %v10435_v9 = vshrl.u32 %v7846_v1, 16  ;;  %v10432_v10 = vshll.u32 %v7858_v7, 16 }
  0x4b   : > { %6404 = vmatpush3.bf16.msra.mxu0 %v869_v31  ;;  %6355 = vmatprep.mubr.msk.bf16.mxu0 %vm7585_vm1, %v10448_v17  ;;  %v605_v60 = vsel %vm553_vm2, %v600_v57, %v604_v58  ;;  %v612_v0 = vrot.slane %v10436_v62, 1  ;;  %v10433_v15 = vshrl.u32 %v7858_v7, 16  ;;  %v10430_v16 = vshll.u32 %v7870_v13, 16  ;;  %v5865_v57 = vld [vmem:[%s10477_s1 + $0x4] sm:$0x3] }
  0x4c   : > { %6457 = vmatprep.subr.bf16.mxu0 %v10448_v17  ;;  %v620_v6 = vrot.slane %v10434_v4, 1  ;;  %v628_v12 = vrot.slane %v10432_v10, 1  ;;  %v10431_v25 = vshrl.u32 %v7870_v13, 16  ;;  %v10428_v26 = vshll.u32 %v7882_v22, 16 }
  0x4d   : > { %v613_v2 = vsel %vm553_vm2, %v608_v63, %v612_v0  ;;  %v616_v5 = vor.u32 %v10437_v3, %v612_v0  ;;  %v636_v21 = vrot.slane %v10430_v16, 1  ;;  %v10429_v32 = vshrl.u32 %v7882_v22, 16 }
  0x4e   : > { %v624_v11 = vor.u32 %v10435_v9, %v620_v6  ;;  %v632_v18 = vor.u32 %v10433_v15, %v628_v12  ;;  %v644_v28 = vrot.slane %v10428_v26, 1  ;;  %v10426_v33 = vshll.u32 %v7894_v29, 16 }
  0x4f   : > { %v621_v8 = vsel %vm553_vm2, %v616_v5, %v620_v6  ;;  %v640_v27 = vor.u32 %v10431_v25, %v636_v21  ;;  %v7910_v40 = vsel %vm701_vm0, %v5879_v34, 0  ;;  %v10427_v46 = vshrl.u32 %v7894_v29, 16  ;;  %v8008_v34 = vld [vmem:[#allocation2 + $0x68] sm:$0xff]  ;;  %v8218_v25 = vld [vmem:[#allocation2 + $0x70] sm:$0x7] }
  0x50   : > { %v629_v14 = vsel %vm553_vm2, %v624_v11, %v628_v12  ;;  %v637_v23 = vsel %vm553_vm2, %v632_v18, %v636_v21  ;;  %v652_v39 = vrot.slane %v10426_v33, 1  ;;  %7152 = vmatpush3.bf16.msra.mxu1 %v7910_v40  ;;  %v1093_v58 = vsel %vm701_vm0, %v5865_v57, 0 }
  0x51   : > { %v645_v31 = vsel %vm553_vm2, %v640_v27, %v644_v28  ;;  %6619 = vmatprep.subr.bf16.mxu1 %v10448_v17  ;;  %v1296_v63 = vrot.slane %v7810_v47, 2  ;;  %vm10455_vm4 = vcmask 1045504   ;;  %v1300_v5 = vrot.slane %v7834_v59, 2 }
  0x52   : > { %6356 = vmatmul.mubr.msk.bf16.gmra.mrb[4].mxu0 %vm534_vm3, %v573_v36  ;;  %v648_v36 = vor.u32 %v10429_v32, %v644_v28  ;;  %v656_v51 = vor.u32 %v10427_v46, %v652_v39  ;;  %v1304_v12 = vrot.slane %v7858_v7, 2  ;;  %v1306_v18 = vrot.slane %v7870_v13, 2 }
  0x53   : > { %6359 = vmatprep.mubr.msk.bf16.mxu0 %vm7585_vm1, %v10448_v17  ;;  %v1310_v28 = vrot.slane %v7894_v29, 2  ;;  %v1027_v57 = vrot.slane %v7762_v20, 1  ;;  %vm10456_vm5 = vcmask 1046528   ;;  %vm10454_vm6 = vcmask 1044480  }
  0x54   : > { %v653_v45 = vsel %vm553_vm2, %v648_v36, %v652_v39  ;;  %v1307_v21 = vsel %vm10455_vm4, %v1304_v12, %v1306_v18  ;;  %v1312_v36 = vrot.slane %v8008_v34, 2  ;;  %v1882_v46 = vrot.slane %v7894_v29, 3 }
  0x55   : > { %v1884_v32 = vrot.slane %v8008_v34, 3  ;;  %vm2123_vm7 = vcmask 1043456   ;;  %vm10457_vm8 = vsmask.f32 3328  ;;  %vm1524_vm9 = vsmask.f32 5376 }
  0x56   : > { %v1313_v39 = vsel %vm10455_vm4, %v1310_v28, %v1312_v36  ;;  %vm2695_vm10 = vcmask 1042432  }
  0x5a   : > { %6360 = vmatmul.mubr.msk.bf16.gmra.mrb[8].mxu0 %vm534_vm3, %v581_v42  ;;  %v7912_v42 = vld [vmem:[#allocation2 + $0x68] sm:$0x1] }
  0x5b   : > { %6363 = vmatprep.mubr.msk.bf16.mxu0 %vm7585_vm1, %v10448_v17 }
  0x62   : > { %6364 = vmatmul.mubr.msk.bf16.gmra.mrb[12].mxu0 %vm534_vm3, %v589_v48  ;;  %v658_v48 = vshll.u32 %v7912_v42, 16 }
  0x63   : > { %6367 = vmatprep.mubr.msk.bf16.mxu0 %vm7585_vm1, %v10448_v17 }
  0x64   : > { %v660_v52 = vrot.slane %v658_v48, 1 }
  0x6a   : > { %6368 = vmatmul.mubr.msk.bf16.gmra.mrb[16].mxu0 %vm534_vm3, %v597_v54  ;;  %v661_v54 = vsel %vm553_vm2, %v656_v51, %v660_v52  ;;  %v1008_v52 = vld [vmem:[#allocation2] sm:$0xfe] }
  0x6b   : > { %6371 = vmatprep.mubr.msk.bf16.mxu0 %vm7585_vm1, %v10448_v17 }
  0x72   : > { %6372 = vmatmul.mubr.msk.bf16.gmra.mrb[20].mxu0 %vm534_vm3, %v605_v60  ;;  %v1294_v60 = vrot.slane %v7798_v41, 2 }
  0x73   : > { %6375 = vmatprep.mubr.msk.bf16.mxu0 %vm7585_vm1, %v10448_v17 }
  0x74   : > { %v1297_v0 = vsel %vm10455_vm4, %v1294_v60, %v1296_v63 }
  0x75   : > { %6526 = vmatmul.mubr.msk.bf16.vlgmr.msra.gmra.mrb[0].mxu1 %vm534_vm3, %v1297_v0 }
  0x76   : > { %6529 = vmatprep.mubr.msk.bf16.mxu1 %vm7585_vm1, %v10448_v17 }
  0x7a   : > { %6376 = vmatmul.mubr.msk.bf16.gmra.mrb[24].mxu0 %vm534_vm3, %v613_v2  ;;  %v1298_v2 = vrot.slane %v7822_v53, 2 }
  0x7b   : > { %6379 = vmatprep.mubr.msk.bf16.mxu0 %vm7585_vm1, %v10448_v17 }
  0x7c   : > { %v1301_v6 = vsel %vm10455_vm4, %v1298_v2, %v1300_v5 }
  0x82   : > { %6380 = vmatmul.mubr.msk.bf16.gmra.mrb[28].mxu0 %vm534_vm3, %v621_v8  ;;  %v1302_v8 = vrot.slane %v7846_v1, 2 }
  0x83   : > { %6383 = vmatprep.mubr.msk.bf16.mxu0 %vm7585_vm1, %v10448_v17 }
  0x84   : > { %v1303_v11 = vsel %vm10455_vm4, %v1300_v5, %v1302_v8  ;;  %v1862_v5 = vrot.slane %v7769_v24, 3 }
  0x8a   : > { %6384 = vmatmul.mubr.msk.bf16.gmra.mrb[32].mxu0 %vm534_vm3, %v629_v14  ;;  %v1305_v14 = vsel %vm10455_vm4, %v1302_v8, %v1304_v12 }
  0x8b   : > { %6387 = vmatprep.mubr.msk.bf16.mxu0 %vm7585_vm1, %v10448_v17 }
  0x92   : > { %6388 = vmatmul.mubr.msk.bf16.gmra.mrb[36].mxu0 %vm534_vm3, %v637_v23  ;;  %v1308_v23 = vrot.slane %v7882_v22, 2 }
  0x93   : > { %6391 = vmatprep.mubr.msk.bf16.mxu0 %vm7585_vm1, %v10448_v17 }
  0x94   : > { %v1309_v27 = vsel %vm10455_vm4, %v1306_v18, %v1308_v23  ;;  %v1864_v18 = vrot.slane %v7785_v35, 3 }
  0x9a   : > { %6392 = vmatmul.mubr.msk.bf16.gmra.mrb[40].mxu0 %vm534_vm3, %v645_v31  ;;  %v1311_v31 = vsel %vm10455_vm4, %v1308_v23, %v1310_v28  ;;  %v1865_v23 = vsel %vm10454_vm6, %v1862_v5, %v1864_v18 }
  0x9b   : > { %6395 = vmatprep.mubr.msk.bf16.mxu0 %vm7585_vm1, %v10448_v17 }
  0xa2   : > { %6396 = vmatmul.mubr.msk.bf16.gmra.mrb[44].mxu0 %vm534_vm3, %v653_v45  ;;  %v1271_v45 = vld [vmem:[#allocation2 + $0x70] sm:$0x3] }
  0xa3   : > { %6399 = vmatprep.mubr.msk.bf16.mxu0 %vm7585_vm1, %v10448_v17  ;;  %v1314_v48 = vrot.slane %v1271_v45, 2  ;;  %v1866_v45 = vrot.slane %v7798_v41, 3 }
  0xa5   : > { %v1315_v51 = vsel %vm10455_vm4, %v1312_v36, %v1314_v48  ;;  %v1033_v48 = vrot.slane %v7798_v41, 1 }
  0xaa   : > { %6400 = vmatmul.mubr.msk.bf16.gmra.mrb[48].mxu0 %vm534_vm3, %v661_v54  ;;  %v1026_v54 = vrot.slane %v1008_v52, 1 }
  0xab   : > { %6405 = vmatprep.mubr.msk.bf16.mxu0 %vm7585_vm1, %v10448_v17 }
  0xb2   : > { %6406 = vmatmul.mubr.msk.bf16.vlgmr.msra.gmra.mrb[52].mxu0 %vm534_vm3, %v7760_v19  ;;  %v1299_v19 = vsel %vm10455_vm4, %v1296_v63, %v1298_v2  ;;  %v5907_v63 = vld [vmem:[%s10477_s1 + $0xa] sm:$0x3] }
  0xb3   : > { %6458 = vmatpush3.bf16.msra.mxu0 %v1093_v58  ;;  %6409 = vmatprep.mubr.msk.bf16.mxu0 %vm7585_vm1, %v10448_v17  ;;  %v1028_v58 = vsel %vm10456_vm5, %v1026_v54, %v1027_v57  ;;  %v1928_v0 = vsel %vm701_vm0, %v5907_v63, 0  ;;  %v1855_v2 = vld [vmem:[#allocation2 + $0x8] sm:$0xf8] }
  0xb4   : > { %6511 = vmatprep.subr.bf16.mxu0 %v10448_v17  ;;  %6530 = vmatmul.mubr.msk.bf16.gmra.mrb[4].mxu1 %vm534_vm3, %v1299_v19  ;;  %v1861_v19 = vrot.slane %v1855_v2, 3  ;;  %v1035_v2 = vrot.slane %v7810_v47, 1 }
  0xb5   : > { %6533 = vmatprep.mubr.msk.bf16.mxu1 %vm7585_vm1, %v10448_v17  ;;  %6620 = vmatpush3.bf16.msra.mxu1 %v1928_v0  ;;  %v1868_v0 = vrot.slane %v7810_v47, 3 }
  0xb6   : > { %6727 = vmatprep.subr.bf16.mxu1 %v10448_v17 }
  0xba   : > { %6410 = vmatmul.mubr.msk.bf16.gmra.mrb[56].mxu0 %vm534_vm3, %v7762_v20  ;;  %v1029_v20 = vrot.slane %v7769_v24, 1 }
  0xbb   : > { %6413 = vmatprep.mubr.msk.bf16.mxu0 %vm7585_vm1, %v10448_v17 }
  0xbc   : > { %6534 = vmatmul.mubr.msk.bf16.gmra.mrb[8].mxu1 %vm534_vm3, %v1301_v6  ;;  %v1863_v6 = vsel %vm10454_vm6, %v1861_v19, %v1862_v5  ;;  %v1869_v19 = vsel %vm10454_vm6, %v1866_v45, %v1868_v0 }
  0xbd   : > { %6537 = vmatprep.mubr.msk.bf16.mxu1 %vm7585_vm1, %v10448_v17 }
  0xc2   : > { %6414 = vmatmul.mubr.msk.bf16.gmra.mrb[60].mxu0 %vm534_vm3, %v7769_v24 }
  0xc3   : > { %6417 = vmatprep.mubr.msk.bf16.mxu0 %vm7585_vm1, %v10448_v17 }
  0xc4   : > { %6538 = vmatmul.mubr.msk.bf16.gmra.mrb[12].mxu1 %vm534_vm3, %v1303_v11 }
  0xc5   : > { %6541 = vmatprep.mubr.msk.bf16.mxu1 %vm7585_vm1, %v10448_v17 }
  0xca   : > { %6418 = vmatmul.mubr.msk.bf16.gmra.mrb[64].mxu0 %vm534_vm3, %v7785_v35 }
  0xcb   : > { %6421 = vmatprep.mubr.msk.bf16.mxu0 %vm7585_vm1, %v10448_v17 }
  0xcc   : > { %6542 = vmatmul.mubr.msk.bf16.gmra.mrb[16].mxu1 %vm534_vm3, %v1305_v14 }
  0xcd   : > { %6545 = vmatprep.mubr.msk.bf16.mxu1 %vm7585_vm1, %v10448_v17 }
  0xd2   : > { %6422 = vmatmul.mubr.msk.bf16.gmra.mrb[68].mxu0 %vm534_vm3, %v7798_v41 }
  0xd3   : > { %6425 = vmatprep.mubr.msk.bf16.mxu0 %vm7585_vm1, %v10448_v17 }
  0xd4   : > { %6546 = vmatmul.mubr.msk.bf16.gmra.mrb[20].mxu1 %vm534_vm3, %v1307_v21  ;;  %v1031_v21 = vrot.slane %v7785_v35, 1 }
  0xd5   : > { %6549 = vmatprep.mubr.msk.bf16.mxu1 %vm7585_vm1, %v10448_v17 }
  0xd6   : > { %v1032_v36 = vsel %vm10456_vm5, %v1029_v20, %v1031_v21 }
  0xda   : > { %6426 = vmatmul.mubr.msk.bf16.gmra.mrb[72].mxu0 %vm534_vm3, %v7810_v47 }
  0xdb   : > { %6429 = vmatprep.mubr.msk.bf16.mxu0 %vm7585_vm1, %v10448_v17 }
  0xdc   : > { %6550 = vmatmul.mubr.msk.bf16.gmra.mrb[24].mxu1 %vm534_vm3, %v1309_v27 }
  0xdd   : > { %6553 = vmatprep.mubr.msk.bf16.mxu1 %vm7585_vm1, %v10448_v17 }
  0xe2   : > { %6430 = vmatmul.mubr.msk.bf16.gmra.mrb[76].mxu0 %vm534_vm3, %v7822_v53 }
  0xe3   : > { %6433 = vmatprep.mubr.msk.bf16.mxu0 %vm7585_vm1, %v10448_v17 }
  0xe4   : > { %6554 = vmatmul.mubr.msk.bf16.gmra.mrb[28].mxu1 %vm534_vm3, %v1311_v31 }
  0xe5   : > { %6557 = vmatprep.mubr.msk.bf16.mxu1 %vm7585_vm1, %v10448_v17 }
  0xea   : > { %6434 = vmatmul.mubr.msk.bf16.gmra.mrb[80].mxu0 %vm534_vm3, %v7834_v59 }
  0xeb   : > { %6437 = vmatprep.mubr.msk.bf16.mxu0 %vm7585_vm1, %v10448_v17 }
  0xec   : > { %6558 = vmatmul.mubr.msk.bf16.gmra.mrb[32].mxu1 %vm534_vm3, %v1313_v39 }
  0xed   : > { %6561 = vmatprep.mubr.msk.bf16.mxu1 %vm7585_vm1, %v10448_v17 }
  0xf2   : > { %6438 = vmatmul.mubr.msk.bf16.gmra.mrb[84].mxu0 %vm534_vm3, %v7846_v1 }
  0xf3   : > { %6441 = vmatprep.mubr.msk.bf16.mxu0 %vm7585_vm1, %v10448_v17 }
  0xf4   : > { %6562 = vmatmul.mubr.msk.bf16.gmra.mrb[36].mxu1 %vm534_vm3, %v1315_v51  ;;  %v1867_v51 = vsel %vm10454_vm6, %v1864_v18, %v1866_v45  ;;  %v1037_v18 = vrot.slane %v7822_v53, 1 }
  0xf5   : > { %6621 = vmatprep.mubr.msk.bf16.mxu1 %vm7585_vm1, %v10448_v17 }
  0xfa   : > { %6442 = vmatmul.mubr.msk.bf16.gmra.mrb[88].mxu0 %vm534_vm3, %v7858_v7 }
  0xfb   : > { %6445 = vmatprep.mubr.msk.bf16.mxu0 %vm7585_vm1, %v10448_v17 }
  0xfc   : > { %6622 = vmatmul.mubr.msk.bf16.vlgmr.msra.gmra.mrb[40].mxu1 %vm534_vm3, %v1863_v6 }
  0xfd   : > { %6625 = vmatprep.mubr.msk.bf16.mxu1 %vm7585_vm1, %v10448_v17 }
 0x102   : > { %6446 = vmatmul.mubr.msk.bf16.gmra.mrb[92].mxu0 %vm534_vm3, %v7870_v13 }
 0x103   : > { %6449 = vmatprep.mubr.msk.bf16.mxu0 %vm7585_vm1, %v10448_v17 }
 0x104   : > { %6626 = vmatmul.mubr.msk.bf16.gmra.mrb[44].mxu1 %vm534_vm3, %v1865_v23 }
 0x105   : > { %6629 = vmatprep.mubr.msk.bf16.mxu1 %vm7585_vm1, %v10448_v17 }
 0x10a   : > { %6450 = vmatmul.mubr.msk.bf16.gmra.mrb[96].mxu0 %vm534_vm3, %v7882_v22 }
 0x10b   : > { %6453 = vmatprep.mubr.msk.bf16.mxu0 %vm7585_vm1, %v10448_v17 }
 0x10c   : > { %6630 = vmatmul.mubr.msk.bf16.gmra.mrb[48].mxu1 %vm534_vm3, %v1867_v51  ;;  %v1039_v51 = vrot.slane %v7834_v59, 1 }
 0x10d   : > { %6633 = vmatprep.mubr.msk.bf16.mxu1 %vm7585_vm1, %v10448_v17 }
 0x112   : > { %6454 = vmatmul.mubr.msk.bf16.gmra.mrb[100].mxu0 %vm534_vm3, %v7894_v29 }
 0x113   : > { %6459 = vmatprep.mubr.msk.bf16.mxu0 %vm7585_vm1, %v10448_v17 }
 0x114   : > { %6634 = vmatmul.mubr.msk.bf16.gmra.mrb[52].mxu1 %vm534_vm3, %v1869_v19 }
 0x115   : > { %6637 = vmatprep.mubr.msk.bf16.mxu1 %vm7585_vm1, %v10448_v17 }
 0x11a   : > { %6460 = vmatmul.mubr.msk.bf16.vlgmr.msra.gmra.mrb[104].mxu0 %vm534_vm3, %v1028_v58  ;;  %v1034_v58 = vsel %vm10456_vm5, %v1031_v21, %v1033_v48 }
 0x11b   : > { %6512 = vmatpush3.bf16.msra.mxu0 %v7910_v40  ;;  %6463 = vmatprep.mubr.msk.bf16.mxu0 %vm7585_vm1, %v10448_v17  ;;  %v1030_v40 = vsel %vm10456_vm5, %v1027_v57, %v1029_v20 }
 0x11c   : > { %6565 = vmatprep.subr.bf16.mxu0 %v10448_v17 }
 0x11d   : > { %v8055_v8 = vpop.f32.mrb[0].mxu0 }
 0x11e   : > { %v6353_v11 = vpop.f32.mrb[1].mxu0 }
 0x11f   : > { %v8059_v12 = vpop.f32.mrb[2].mxu0  ;;  %v1036_v11 = vsel %vm10456_vm5, %v1033_v48, %v1035_v2  ;;  %v1872_v48 = vrot.slane %v7834_v59, 3 }
 0x120   : > { %v6354_v14 = vpop.f32.mrb[3].mxu0 }
 0x121   : > { %v1870_v14 = vrot.slane %v7822_v53, 3 }
 0x122   : > { %6464 = vmatmul.mubr.msk.bf16.gmra.mrb[108].mxu0 %vm534_vm3, %v1030_v40 }
 0x123   : > { %6467 = vmatprep.mubr.msk.bf16.mxu0 %vm7585_vm1, %v10448_v17  ;;  %v1871_v21 = vsel %vm10454_vm6, %v1868_v0, %v1870_v14 }
 0x124   : > { %6638 = vmatmul.mubr.msk.bf16.gmra.mrb[56].mxu1 %vm534_vm3, %v1871_v21 }
 0x125   : > { %v8069_v27 = vpop.f32.mrb[4].mxu0  ;;  %6641 = vmatprep.mubr.msk.bf16.mxu1 %vm7585_vm1, %v10448_v17 }
 0x126   : > { %v6357_v28 = vpop.f32.mrb[5].mxu0 }
 0x127   : > { %v8073_v31 = vpop.f32.mrb[6].mxu0 }
 0x128   : > { %v6358_v39 = vpop.f32.mrb[7].mxu0 }
 0x129   : > { %v1038_v39 = vsel %vm10456_vm5, %v1035_v2, %v1037_v18  ;;  %v1040_v2 = vsel %vm10456_vm5, %v1037_v18, %v1039_v51 }
 0x12a   : > { %6468 = vmatmul.mubr.msk.bf16.gmra.mrb[112].mxu0 %vm534_vm3, %v1032_v36 }
 0x12b   : > { %6471 = vmatprep.mubr.msk.bf16.mxu0 %vm7585_vm1, %v10448_v17 }
 0x12d   : > { %v8083_v52 = vpop.f32.mrb[8].mxu0 }
 0x12e   : > { %v6361_v54 = vpop.f32.mrb[9].mxu0 }
 0x12f   : > { %v8087_v57 = vpop.f32.mrb[10].mxu0  ;;  %v1873_v54 = vsel %vm10454_vm6, %v1870_v14, %v1872_v48 }
 0x130   : > { %v6362_v63 = vpop.f32.mrb[11].mxu0  ;;  %6642 = vmatmul.mubr.msk.bf16.gmra.mrb[60].mxu1 %vm534_vm3, %v1873_v54 }
 0x131   : > { %6645 = vmatprep.mubr.msk.bf16.mxu1 %vm7585_vm1, %v10448_v17 }
 0x132   : > { %6472 = vmatmul.mubr.msk.bf16.gmra.mrb[116].mxu0 %vm534_vm3, %v1034_v58 }
 0x133   : > { %6475 = vmatprep.mubr.msk.bf16.mxu0 %vm7585_vm1, %v10448_v17 }
 0x135   : > { %v8097_v5 = vpop.f32.mrb[12].mxu0 }
 0x136   : > { %v6365_v20 = vpop.f32.mrb[13].mxu0 }
 0x137   : > { %v8101_v6 = vpop.f32.mrb[14].mxu0  ;;  %v1874_v20 = vrot.slane %v7846_v1, 3 }
 0x138   : > { %v6366_v40 = vpop.f32.mrb[15].mxu0 }
 0x139   : > { %v1875_v40 = vsel %vm10454_vm6, %v1872_v48, %v1874_v20  ;;  %v1043_v48 = vrot.slane %v7858_v7, 1 }
 0x13a   : > { %6476 = vmatmul.mubr.msk.bf16.gmra.mrb[120].mxu0 %vm534_vm3, %v1036_v11  ;;  %v1041_v11 = vrot.slane %v7846_v1, 1  ;;  %6646 = vmatmul.mubr.msk.bf16.gmra.mrb[64].mxu1 %vm534_vm3, %v1875_v40 }
 0x13b   : > { %6479 = vmatprep.mubr.msk.bf16.mxu0 %vm7585_vm1, %v10448_v17  ;;  %6649 = vmatprep.mubr.msk.bf16.mxu1 %vm7585_vm1, %v10448_v17 }
 0x13d   : > { %v8111_v23 = vpop.f32.mrb[16].mxu0 }
 0x13e   : > { %v6369_v28 = vpop.f32.mrb[17].mxu0 }
 0x13f   : > { %v8115_v36 = vpop.f32.mrb[18].mxu0  ;;  %v1042_v28 = vsel %vm10456_vm5, %v1039_v51, %v1041_v11 }
 0x140   : > { %v6370_v45 = vpop.f32.mrb[19].mxu0 }
 0x141   : > { %v1876_v45 = vrot.slane %v7858_v7, 3 }
 0x142   : > { %6480 = vmatmul.mubr.msk.bf16.gmra.mrb[124].mxu0 %vm534_vm3, %v1038_v39 }
 0x143   : > { %6483 = vmatprep.mubr.msk.bf16.mxu0 %vm7585_vm1, %v10448_v17  ;;  %v1877_v54 = vsel %vm10454_vm6, %v1874_v20, %v1876_v45  ;;  %v1045_v20 = vrot.slane %v7870_v13, 1 }
 0x144   : > { %6650 = vmatmul.mubr.msk.bf16.gmra.mrb[68].mxu1 %vm534_vm3, %v1877_v54 }
 0x145   : > { %v8125_v58 = vpop.f32.mrb[20].mxu0  ;;  %6653 = vmatprep.mubr.msk.bf16.mxu1 %vm7585_vm1, %v10448_v17 }
 0x146   : > { %v6373_v63 = vpop.f32.mrb[21].mxu0 }
 0x147   : > { %v8129_v0 = vpop.f32.mrb[22].mxu0 }
 0x148   : > { %v6374_v19 = vpop.f32.mrb[23].mxu0 }
 0x149   : > { %v1044_v19 = vsel %vm10456_vm5, %v1041_v11, %v1043_v48 }
 0x14a   : > { %6484 = vmatmul.mubr.msk.bf16.gmra.mrb[128].mxu0 %vm534_vm3, %v1040_v2 }
 0x14b   : > { %6487 = vmatprep.mubr.msk.bf16.mxu0 %vm7585_vm1, %v10448_v17 }
 0x14d   : > { %v8139_v14 = vpop.f32.mrb[24].mxu0 }
 0x14e   : > { %v6377_v18 = vpop.f32.mrb[25].mxu0 }
 0x14f   : > { %v8143_v21 = vpop.f32.mrb[26].mxu0  ;;  %v1878_v18 = vrot.slane %v7870_v13, 3 }
 0x150   : > { %v6378_v39 = vpop.f32.mrb[27].mxu0 }
 0x152   : > { %6488 = vmatmul.mubr.msk.bf16.gmra.mrb[132].mxu0 %vm534_vm3, %v1042_v28  ;;  %v1879_v28 = vsel %vm10454_vm6, %v1876_v45, %v1878_v18  ;;  %v1047_v45 = vrot.slane %v7882_v22, 1 }
 0x153   : > { %6491 = vmatprep.mubr.msk.bf16.mxu0 %vm7585_vm1, %v10448_v17  ;;  %6654 = vmatmul.mubr.msk.bf16.gmra.mrb[72].mxu1 %vm534_vm3, %v1879_v28 }
 0x154   : > { %6657 = vmatprep.mubr.msk.bf16.mxu1 %vm7585_vm1, %v10448_v17 }
 0x155   : > { %v8153_v63 = vpop.f32.mrb[28].mxu0 }
 0x156   : > { %v6381_v51 = vpop.f32.mrb[29].mxu0 }
 0x157   : > { %v8157_v2 = vpop.f32.mrb[30].mxu0  ;;  %v1046_v51 = vsel %vm10456_vm5, %v1043_v48, %v1045_v20 }
 0x158   : > { %v6382_v40 = vpop.f32.mrb[31].mxu0 }
 0x159   : > { %v1880_v40 = vrot.slane %v7882_v22, 3 }
 0x15a   : > { %6492 = vmatmul.mubr.msk.bf16.gmra.mrb[136].mxu0 %vm534_vm3, %v1044_v19 }
 0x15b   : > { %6495 = vmatprep.mubr.msk.bf16.mxu0 %vm7585_vm1, %v10448_v17  ;;  %v1881_v28 = vsel %vm10454_vm6, %v1878_v18, %v1880_v40  ;;  %v1049_v18 = vrot.slane %v7894_v29, 1 }
 0x15c   : > { %6658 = vmatmul.mubr.msk.bf16.gmra.mrb[76].mxu1 %vm534_vm3, %v1881_v28  ;;  %v1883_v28 = vsel %vm10454_vm6, %v1880_v40, %v1882_v46  ;;  %v1051_v40 = vrot.slane %v7912_v42, 1  ;;  %v1886_v42 = vrot.slane %v8218_v25, 3 }
 0x15d   : > { %v8167_v39 = vpop.f32.mrb[32].mxu0  ;;  %6661 = vmatprep.mubr.msk.bf16.mxu1 %vm7585_vm1, %v10448_v17 }
 0x15e   : > { %v6385_v11 = vpop.f32.mrb[33].mxu0  ;;  %v1052_v34 = vsel %vm10456_vm5, %v1049_v18, %v1051_v40  ;;  %v1887_v40 = vsel %vm10454_vm6, %v1884_v32, %v1886_v42 }
 0x15f   : > { %v8171_v54 = vpop.f32.mrb[34].mxu0 }
 0x160   : > { %v6386_v19 = vpop.f32.mrb[35].mxu0 }
 0x161   : > { %v1048_v19 = vsel %vm10456_vm5, %v1045_v20, %v1047_v45 }
 0x162   : > { %6496 = vmatmul.mubr.msk.bf16.gmra.mrb[140].mxu0 %vm534_vm3, %v1046_v51 }
 0x163   : > { %6499 = vmatprep.mubr.msk.bf16.mxu0 %vm7585_vm1, %v10448_v17 }
 0x164   : > { %6662 = vmatmul.mubr.msk.bf16.gmra.mrb[80].mxu1 %vm534_vm3, %v1883_v28  ;;  %v1885_v28 = vsel %vm10454_vm6, %v1882_v46, %v1884_v32 }
 0x165   : > { %v8181_v33 = vpop.f32.mrb[36].mxu0  ;;  %6665 = vmatprep.mubr.msk.bf16.mxu1 %vm7585_vm1, %v10448_v17 }
 0x166   : > { %v6389_v48 = vpop.f32.mrb[37].mxu0 }
 0x167   : > { %v8185_v11 = vpop.f32.mrb[38].mxu0 }
 0x168   : > { %v6390_v51 = vpop.f32.mrb[39].mxu0 }
 0x169   : > { %v1050_v51 = vsel %vm10456_vm5, %v1047_v45, %v1049_v18  ;;  %v5893_v18 = vld [vmem:[%s10477_s1 + $0x8] sm:$0x3] }
 0x16a   : > { %6500 = vmatmul.mubr.msk.bf16.gmra.mrb[144].mxu0 %vm534_vm3, %v1048_v19  ;;  %v1690_v3 = vsel %vm701_vm0, %v5893_v18, 0 }
 0x16b   : > { %6503 = vmatprep.mubr.msk.bf16.mxu0 %vm7585_vm1, %v10448_v17 }
 0x16c   : > { %6666 = vmatmul.mubr.msk.bf16.gmra.mrb[84].mxu1 %vm534_vm3, %v1885_v28  ;;  %v1290_v28 = vrot.slane %v7769_v24, 2 }
 0x16d   : > { %v8195_v26 = vpop.f32.mrb[40].mxu0  ;;  %6669 = vmatprep.mubr.msk.bf16.mxu1 %vm7585_vm1, %v10448_v17 }
 0x16e   : > { %v6393_v20 = vpop.f32.mrb[41].mxu0 }
 0x16f   : > { %v8199_v48 = vpop.f32.mrb[42].mxu0 }
 0x170   : > { %v6394_v19 = vpop.f32.mrb[43].mxu0 }
 0x171   : > { %v8216_v19 = vld [vmem:[#allocation2 + $0x8] sm:$0xfc] }
 0x172   : > { %6504 = vmatmul.mubr.msk.bf16.gmra.mrb[148].mxu0 %vm534_vm3, %v1050_v51  ;;  %v1289_v46 = vrot.slane %v8216_v19, 2  ;;  %v1526_v43 = vshrl.u32 %v8216_v19, 16  ;;  %v1529_v30 = vshll.u32 %v8216_v19, 16 }
 0x173   : > { %6507 = vmatprep.mubr.msk.bf16.mxu0 %vm7585_vm1, %v10448_v17 }
 0x174   : > { %6670 = vmatmul.mubr.msk.bf16.gmra.mrb[88].mxu1 %vm534_vm3, %v1887_v40  ;;  %v1291_v42 = vsel %vm10455_vm4, %v1289_v46, %v1290_v28  ;;  %v5935_v40 = vld [vmem:[%s10477_s1 + $0xe] sm:$0x3]  ;;  %v1531_v19 = vrot.slane %v1529_v30, 3 }
 0x175   : > { %v8209_v16 = vpop.f32.mrb[44].mxu0  ;;  %6729 = vmatprep.mubr.msk.bf16.mxu1 %vm7585_vm1, %v10448_v17  ;;  %v2525_v44 = vsel %vm701_vm0, %v5935_v40, 0 }
 0x176   : > { %v6397_v45 = vpop.f32.mrb[45].mxu0  ;;  %6728 = vmatpush3.bf16.msra.mxu1 %v2525_v44 }
 0x177   : > { %v8213_v20 = vpop.f32.mrb[46].mxu0  ;;  %v2093_v45 = vld [vmem:[#allocation2 + $0x10] sm:$0xf0] }
 0x178   : > { %v6398_v51 = vpop.f32.mrb[47].mxu0  ;;  %v2364_v15 = vshll.u32 %v2093_v45, 16  ;;  %v2124_v56 = vrot.slane %v2093_v45, 4 }
 0x179   : > { %v8231_v51 = vld [vmem:[#allocation2 + $0x18] sm:$0xff] }
 0x17a   : > { %6508 = vmatmul.mubr.msk.bf16.gmra.mrb[152].mxu0 %vm534_vm3, %v1052_v34  ;;  %v2361_v34 = vshrl.u32 %v2093_v45, 16  ;;  %v2369_v4 = vshrl.u32 %v8231_v51, 16  ;;  %v2372_v9 = vshll.u32 %v8231_v51, 16  ;;  %v2125_v61 = vrot.slane %v8231_v51, 4 }
 0x17b   : > { %6513 = vmatprep.mubr.msk.bf16.mxu0 %vm7585_vm1, %v10448_v17  ;;  %v2366_v49 = vrot.slane %v2364_v15, 5  ;;  %v8256_v15 = vld [vmem:[#allocation2 + $0x20] sm:$0xff] }
 0x17c   : > { %v2363_v50 = vrot.slane %v2361_v34, 4  ;;  %v8249_v18 = vsel %vm2123_vm7, %v2124_v56, %v2125_v61  ;;  %v2374_v38 = vrot.slane %v2372_v9, 5  ;;  %v2381_v9 = vshll.u32 %v8256_v15, 16 }
 0x17d   : > { %v8233_v10 = vpop.f32.mrb[48].mxu0 }
 0x17e   : > { %v6401_v62 = vpop.f32.mrb[49].mxu0  ;;  %v2367_v46 = vor.u32 %v2366_v49, %v2363_v50 }
 0x17f   : > { %v8240_v32 = vpop.f32.mrb[50].mxu0  ;;  %v2371_v62 = vrot.slane %v2369_v4, 4  ;;  %v2378_v4 = vshrl.u32 %v8256_v15, 16 }
 0x180   : > { %v6402_v55 = vpop.f32.mrb[51].mxu0 }
 0x181   : > { %v1292_v55 = vrot.slane %v7785_v35, 2  ;;  %v2375_v45 = vor.u32 %v2374_v38, %v2371_v62  ;;  %v2380_v40 = vrot.slane %v2378_v4, 4  ;;  %v2383_v62 = vrot.slane %v2381_v9, 5  ;;  %v8285_v4 = vld [vmem:[#allocation2 + $0x28] sm:$0xff] }
 0x182   : > { %6514 = vmatmul.mubr.msk.bf16.vlgmr.msra.gmra.mrb[156].mxu0 %vm534_vm3, %v1291_v42  ;;  %v2127_v42 = vrot.slane %v8256_v15, 4 }
 0x183   : > { %6566 = vmatpush3.bf16.msra.mxu0 %v1690_v3  ;;  %6517 = vmatprep.mubr.msk.bf16.mxu0 %vm7585_vm1, %v10448_v17  ;;  %v2376_v56 = vsel %vm10457_vm8, %v2367_v46, %v2375_v45  ;;  %v1293_v38 = vsel %vm10455_vm4, %v1290_v28, %v1292_v55  ;;  %v8266_v3 = vpop.f32.mrb[0].mxu1  ;;  %v2384_v28 = vor.u32 %v2383_v62, %v2380_v40  ;;  %v1528_v62 = vrot.slane %v1526_v43, 2 }
 0x184   : > { %6673 = vmatprep.subr.bf16.mxu0 %v10448_v17  ;;  %6730 = vmatmul.mubr.msk.bf16.vlgmr.msra.gmra.mrb[92].mxu1 %vm534_vm3, %v2376_v56  ;;  %10478 = vst [vmem:[#allocation23_spill] sm:$0xff] %v8266_v3  ;;  %v8277_v56 = vsel %vm2123_vm7, %v2125_v61, %v2127_v42  ;;  %v1295_v61 = vsel %vm10455_vm4, %v1292_v55, %v1294_v60  ;;  %v2129_v55 = vrot.slane %v8285_v4, 4 }
 0x185   : > { %v905_v44 = vpop.f32.mrb[52].mxu0  ;;  %6733 = vmatprep.mubr.msk.bf16.mxu1 %vm7585_vm1, %v10448_v17  ;;  %10480 = vst [vmem:[#allocation25_spill] sm:$0xff] %v8277_v56 }
 0x186   : > { %v6407_v34 = vpop.f32.mrb[53].mxu0  ;;  %v8262_v49 = vadd.f32 %v905_v44, %v8055_v8  ;;  %v6527_v8 = vpop.f32.mrb[1].mxu1 }
 0x187   : > { %v908_v50 = vpop.f32.mrb[54].mxu0  ;;  %v8274_v44 = vpop.f32.mrb[2].mxu1 }
 0x188   : > { %v6408_v46 = vpop.f32.mrb[55].mxu0  ;;  %v8272_v34 = vadd.f32 %v908_v50, %v8059_v12  ;;  %10479 = vst [vmem:[#allocation24_spill] sm:$0xff] %v8274_v44  ;;  %v6528_v37 = vpop.f32.mrb[3].mxu1  ;;  %v2385_v12 = vsel %vm10457_vm8, %v2375_v45, %v2384_v28  ;;  %v2387_v50 = vshrl.u32 %v8285_v4, 16  ;;  %v10484_v44 = vmov 0.0  }
 0x189   : > { %v10481_v37 = vshrl.u32 %v7769_v24, 16  ;;  %v8300_v60 = vpop.f32.mrb[4].mxu1 }
 0x18a   : > { %6518 = vmatmul.mubr.msk.bf16.gmra.mrb[160].mxu0 %vm534_vm3, %v1293_v38  ;;  %v2390_v38 = vshll.u32 %v8285_v4, 16  ;;  %10483 = vst [vmem:[#allocation26_spill] sm:$0xff] %v8300_v60  ;;  %v2389_v30 = vrot.slane %v2387_v50, 4  ;;  %v1532_v60 = vor.u32 %v1531_v19, %v1528_v62 }
 0x18b   : > { %6521 = vmatprep.mubr.msk.bf16.mxu0 %vm7585_vm1, %v10448_v17  ;;  %v1536_v46 = vrot.slane %v10481_v37, 2  ;;  %v10482_v17 = vshll.u32 %v7769_v24, 16 }
 0x18c   : > { %6734 = vmatmul.mubr.msk.bf16.gmra.mrb[96].mxu1 %vm534_vm3, %v2385_v12  ;;  %v2392_v43 = vrot.slane %v2390_v38, 5  ;;  %v8311_v12 = vsel %vm2123_vm7, %v2127_v42, %v2129_v55  ;;  %v5921_v42 = vld [vmem:[%s10477_s1 + $0xc] sm:$0x3] }
 0x18d   : > { %v913_v9 = vpop.f32.mrb[56].mxu0  ;;  %v1539_v56 = vrot.slane %v10482_v17, 3  ;;  %6737 = vmatprep.mubr.msk.bf16.mxu1 %vm7585_vm1, %v10484_v44  ;;  %10486 = vst [vmem:[#allocation28_spill] sm:$0xff] %v8311_v12 }
 0x18e   : > { %v6411_v40 = vpop.f32.mrb[57].mxu0  ;;  %v8295_v8 = vadd.f32 %v913_v9, %v8069_v27  ;;  %v6531_v27 = vpop.f32.mrb[5].mxu1  ;;  %v2393_v17 = vor.u32 %v2392_v43, %v2389_v30 }
 0x18f   : > { %v916_v45 = vpop.f32.mrb[58].mxu0  ;;  %v8308_v9 = vpop.f32.mrb[6].mxu1  ;;  %v1540_v50 = vor.u32 %v1539_v56, %v1536_v46  ;;  %v10488_v56 = vshll.u32 %v7785_v35, 16 }
 0x190   : > { %v6412_v40 = vpop.f32.mrb[59].mxu0  ;;  %v8306_v37 = vadd.f32 %v916_v45, %v8073_v31  ;;  %10485 = vst [vmem:[#allocation27_spill] sm:$0xff] %v8308_v9  ;;  %v6532_v24 = vpop.f32.mrb[7].mxu1  ;;  %v2394_v38 = vsel %vm10457_vm8, %v2384_v28, %v2393_v17  ;;  %v8317_v31 = vld [vmem:[#allocation2 + $0x30] sm:$0xff] }
 0x191   : > { %v2396_v30 = vshrl.u32 %v8317_v31, 16  ;;  %v10487_v40 = vshrl.u32 %v7785_v35, 16  ;;  %v1548_v62 = vrot.slane %v10488_v56, 3  ;;  %v1541_v46 = vsel %vm1524_vm9, %v1532_v60, %v1540_v50  ;;  %v8333_v24 = vpop.f32.mrb[8].mxu1 }
 0x192   : > { %6522 = vmatmul.mubr.msk.bf16.gmra.mrb[164].mxu0 %vm534_vm3, %v1295_v61  ;;  %v2399_v61 = vshll.u32 %v8317_v31, 16  ;;  %10489 = vst [vmem:[#allocation29_spill] sm:$0xff] %v8333_v24  ;;  %v2131_v12 = vrot.slane %v8317_v31, 4  ;;  %v2191_v35 = vsel %vm701_vm0, %v5921_v42, 0 }
 0x193   : > { %6567 = vmatprep.mubr.msk.bf16.mxu0 %vm7585_vm1, %v10484_v44  ;;  %v1545_v27 = vrot.slane %v10487_v40, 2 }
 0x194   : > { %6738 = vmatmul.mubr.msk.bf16.gmra.mrb[100].mxu1 %vm534_vm3, %v2394_v38  ;;  %v2401_v40 = vrot.slane %v2399_v61, 5  ;;  %v8345_v60 = vsel %vm2123_vm7, %v2129_v55, %v2131_v12 }
 0x195   : > { %v921_v45 = vpop.f32.mrb[60].mxu0  ;;  %6741 = vmatprep.mubr.msk.bf16.mxu1 %vm7585_vm1, %v10484_v44  ;;  %v1549_v24 = vor.u32 %v1548_v62, %v1545_v27 }
 0x196   : > { %v6415_v43 = vpop.f32.mrb[61].mxu0  ;;  %v8329_v28 = vadd.f32 %v921_v45, %v8083_v52  ;;  %v6535_v45 = vpop.f32.mrb[9].mxu1 }
 0x197   : > { %v924_v19 = vpop.f32.mrb[62].mxu0  ;;  %v2398_v43 = vrot.slane %v2396_v30, 4  ;;  %v8342_v38 = vpop.f32.mrb[10].mxu1 }
 0x198   : > { %v6416_v9 = vpop.f32.mrb[63].mxu0  ;;  %v8340_v52 = vadd.f32 %v924_v19, %v8087_v57  ;;  %v6536_v3 = vpop.f32.mrb[11].mxu1  ;;  %v8352_v57 = vld [vmem:[#allocation2 + $0x38] sm:$0xff]  ;;  %v1550_v19 = vsel %vm1524_vm9, %v1540_v50, %v1549_v24 }
 0x199   : > { %v2402_v56 = vor.u32 %v2401_v40, %v2398_v43  ;;  %v2405_v30 = vshrl.u32 %v8352_v57, 16  ;;  %v2408_v55 = vshll.u32 %v8352_v57, 16  ;;  %v10490_v3 = vshrl.u32 %v7798_v41, 16  ;;  %v8365_v40 = vpop.f32.mrb[12].mxu1 }
 0x19a   : > { %6568 = vmatmul.mubr.msk.bf16.vlgmr.msra.gmra.mrb[168].mxu0 %vm534_vm3, %v1541_v46  ;;  %v10491_v46 = vshll.u32 %v7798_v41, 16  ;;  %10492 = vst [vmem:[#allocation30_spill] sm:$0xff] %v8365_v40 }
 0x19b   : > { %6674 = vmatpush3.bf16.msra.mxu0 %v2191_v35  ;;  %6571 = vmatprep.mubr.msk.bf16.mxu0 %vm7585_vm1, %v10484_v44  ;;  %v2403_v9 = vsel %vm10457_vm8, %v2393_v17, %v2402_v56  ;;  %v1554_v27 = vrot.slane %v10490_v3, 2  ;;  %v2133_v35 = vrot.slane %v8352_v57, 4  ;;  %v2407_v50 = vrot.slane %v2405_v30, 4 }
 0x19c   : > { %6781 = vmatprep.subr.bf16.mxu0 %v10484_v44  ;;  %6742 = vmatmul.mubr.msk.bf16.gmra.mrb[104].mxu1 %vm534_vm3, %v2403_v9  ;;  %v1557_v43 = vrot.slane %v10491_v46, 3  ;;  %v2410_v45 = vrot.slane %v2408_v55, 5  ;;  %v8382_v55 = vld [vmem:[#allocation2 + $0x40] sm:$0xff] }
 0x19d   : > { %v929_v42 = vpop.f32.mrb[64].mxu0  ;;  %6745 = vmatprep.mubr.msk.bf16.mxu1 %vm7585_vm1, %v10484_v44  ;;  %v8376_v9 = vsel %vm2123_vm7, %v2131_v12, %v2133_v35 }
 0x19e   : > { %v6419_v61 = vpop.f32.mrb[65].mxu0  ;;  %v8360_v62 = vadd.f32 %v929_v42, %v8097_v5  ;;  %v6539_v5 = vpop.f32.mrb[13].mxu1  ;;  %10494 = vst [vmem:[#allocation32_spill] sm:$0xff] %v8376_v9  ;;  %v2411_v41 = vor.u32 %v2410_v45, %v2407_v50  ;;  %v1558_v40 = vor.u32 %v1557_v43, %v1554_v27  ;;  %v2135_v9 = vrot.slane %v8382_v55, 4 }
 0x19f   : > { %v932_v17 = vpop.f32.mrb[66].mxu0  ;;  %v8373_v42 = vpop.f32.mrb[14].mxu1  ;;  %v10496_v5 = vshll.u32 %v7810_v47, 16 }
 0x1a0   : > { %v6420_v61 = vpop.f32.mrb[67].mxu0  ;;  %v8371_v3 = vadd.f32 %v932_v17, %v8101_v6  ;;  %10493 = vst [vmem:[#allocation31_spill] sm:$0xff] %v8373_v42  ;;  %v6540_v46 = vpop.f32.mrb[15].mxu1  ;;  %v2412_v30 = vsel %vm10457_vm8, %v2402_v56, %v2411_v41  ;;  %v2414_v17 = vshrl.u32 %v8382_v55, 16  ;;  %v1559_v27 = vsel %vm1524_vm9, %v1549_v24, %v1558_v40 }
 0x1a1   : > { %v2417_v61 = vshll.u32 %v8382_v55, 16  ;;  %v1566_v46 = vrot.slane %v10496_v5, 3  ;;  %v8395_v43 = vpop.f32.mrb[16].mxu1 }
 0x1a2   : > { %6572 = vmatmul.mubr.msk.bf16.gmra.mrb[172].mxu0 %vm534_vm3, %v1550_v19  ;;  %v10495_v19 = vshrl.u32 %v7810_v47, 16  ;;  %10497 = vst [vmem:[#allocation33_spill] sm:$0xff] %v8395_v43  ;;  %v6543_v47 = vpop.f32.mrb[17].mxu1 }
 0x1a3   : > { %6575 = vmatprep.mubr.msk.bf16.mxu0 %vm7585_vm1, %v10484_v44  ;;  %v8403_v5 = vpop.f32.mrb[18].mxu1 }
 0x1a4   : > { %v1563_v45 = vrot.slane %v10495_v19, 2  ;;  %6746 = vmatmul.mubr.msk.bf16.gmra.mrb[108].mxu1 %vm534_vm3, %v2412_v30  ;;  %10498 = vst [vmem:[#allocation34_spill] sm:$0xff] %v8403_v5  ;;  %v8406_v30 = vsel %vm2123_vm7, %v2133_v35, %v2135_v9  ;;  %v6544_v42 = vpop.f32.mrb[19].mxu1 }
 0x1a5   : > { %v937_v6 = vpop.f32.mrb[68].mxu0  ;;  %6749 = vmatprep.mubr.msk.bf16.mxu1 %vm7585_vm1, %v10484_v44  ;;  %10499 = vst [vmem:[#allocation35_spill] sm:$0xff] %v8406_v30  ;;  %v10500_v42 = vshrl.u32 %v7822_v53, 16 }
 0x1a6   : > { %v8387_v12 = vadd.f32 %v937_v6, %v8111_v23  ;;  %v6423_v50 = vpop.f32.mrb[69].mxu0  ;;  %v2416_v23 = vrot.slane %v2414_v17, 4  ;;  %v2419_v6 = vrot.slane %v2417_v61, 5  ;;  %v1567_v43 = vor.u32 %v1566_v46, %v1563_v45  ;;  %v8412_v61 = vld [vmem:[#allocation2 + $0x48] sm:$0xff] }
 0x1a7   : > { %v940_v56 = vpop.f32.mrb[70].mxu0  ;;  %v1572_v45 = vrot.slane %v10500_v42, 2  ;;  %v8425_v47 = vpop.f32.mrb[20].mxu1  ;;  %v2137_v30 = vrot.slane %v8412_v61, 4 }
 0x1a8   : > { %v8401_v50 = vadd.f32 %v940_v56, %v8115_v36  ;;  %v6424_v19 = vpop.f32.mrb[71].mxu0  ;;  %v2420_v24 = vor.u32 %v2419_v6, %v2416_v23  ;;  %v2423_v56 = vshrl.u32 %v8412_v61, 16  ;;  %10502 = vst [vmem:[#allocation36_spill] sm:$0xff] %v8425_v47  ;;  %v6547_v42 = vpop.f32.mrb[21].mxu1 }
 0x1a9   : > { %v2426_v19 = vshll.u32 %v8412_v61, 16  ;;  %v8433_v5 = vpop.f32.mrb[22].mxu1  ;;  %v10506_v42 = vshll.u32 %v7834_v59, 16 }
 0x1aa   : > { %6576 = vmatmul.mubr.msk.bf16.gmra.mrb[176].mxu0 %vm534_vm3, %v1559_v27  ;;  %v2421_v17 = vsel %vm10457_vm8, %v2411_v41, %v2420_v24  ;;  %v1568_v27 = vsel %vm1524_vm9, %v1558_v40, %v1567_v43  ;;  %v10501_v41 = vshll.u32 %v7822_v53, 16  ;;  %10503 = vst [vmem:[#allocation37_spill] sm:$0xff] %v8433_v5 }
 0x1ab   : > { %6579 = vmatprep.mubr.msk.bf16.mxu0 %vm7585_vm1, %v10484_v44 }
 0x1ac   : > { %6750 = vmatmul.mubr.msk.bf16.gmra.mrb[112].mxu1 %vm534_vm3, %v2421_v17  ;;  %v1575_v6 = vrot.slane %v10501_v41, 3  ;;  %v8436_v17 = vsel %vm2123_vm7, %v2135_v9, %v2137_v30  ;;  %v6548_v41 = vpop.f32.mrb[23].mxu1 }
 0x1ad   : > { %v945_v36 = vpop.f32.mrb[72].mxu0  ;;  %6753 = vmatprep.mubr.msk.bf16.mxu1 %vm7585_vm1, %v10484_v44  ;;  %10504 = vst [vmem:[#allocation38_spill] sm:$0xff] %v8436_v17  ;;  %v1584_v41 = vrot.slane %v10506_v42, 3 }
 0x1ae   : > { %v8417_v35 = vadd.f32 %v945_v36, %v8125_v58  ;;  %v6427_v23 = vpop.f32.mrb[73].mxu0  ;;  %v2425_v58 = vrot.slane %v2423_v56, 4  ;;  %v2428_v36 = vrot.slane %v2426_v19, 5  ;;  %v1576_v47 = vor.u32 %v1575_v6, %v1572_v45  ;;  %v8442_v19 = vld [vmem:[#allocation2 + $0x50] sm:$0xff] }
 0x1af   : > { %v948_v46 = vpop.f32.mrb[74].mxu0  ;;  %v8455_v6 = vpop.f32.mrb[24].mxu1  ;;  %v2139_v17 = vrot.slane %v8442_v19, 4 }
 0x1b0   : > { %v8431_v40 = vadd.f32 %v948_v46, %v8129_v0  ;;  %v6428_v23 = vpop.f32.mrb[75].mxu0  ;;  %v2429_v53 = vor.u32 %v2428_v36, %v2425_v58  ;;  %v2432_v46 = vshrl.u32 %v8442_v19, 16  ;;  %v1577_v45 = vsel %vm1524_vm9, %v1567_v43, %v1576_v47  ;;  %10507 = vst [vmem:[#allocation39_spill] sm:$0xff] %v8455_v6 }
 0x1b1   : > { %v2435_v23 = vshll.u32 %v8442_v19, 16 }
 0x1b2   : > { %6580 = vmatmul.mubr.msk.bf16.gmra.mrb[180].mxu0 %vm534_vm3, %v1568_v27  ;;  %v2430_v56 = vsel %vm10457_vm8, %v2420_v24, %v2429_v53  ;;  %v10505_v27 = vshrl.u32 %v7834_v59, 16  ;;  %v6551_v59 = vpop.f32.mrb[25].mxu1 }
 0x1b3   : > { %6583 = vmatprep.mubr.msk.bf16.mxu0 %vm7585_vm1, %v10484_v44  ;;  %v8463_v42 = vpop.f32.mrb[26].mxu1 }
 0x1b4   : > { %v1581_v36 = vrot.slane %v10505_v27, 2  ;;  %6754 = vmatmul.mubr.msk.bf16.gmra.mrb[116].mxu1 %vm534_vm3, %v2430_v56  ;;  %10508 = vst [vmem:[#allocation40_spill] sm:$0xff] %v8463_v42  ;;  %v8466_v56 = vsel %vm2123_vm7, %v2137_v30, %v2139_v17  ;;  %v6552_v5 = vpop.f32.mrb[27].mxu1 }
 0x1b5   : > { %v953_v0 = vpop.f32.mrb[76].mxu0  ;;  %6757 = vmatprep.mubr.msk.bf16.mxu1 %vm7585_vm1, %v10484_v44  ;;  %10509 = vst [vmem:[#allocation41_spill] sm:$0xff] %v8466_v56  ;;  %v10510_v5 = vshrl.u32 %v7846_v1, 16 }
 0x1b6   : > { %v8447_v9 = vadd.f32 %v953_v0, %v8139_v14  ;;  %v6431_v58 = vpop.f32.mrb[77].mxu0  ;;  %v2434_v14 = vrot.slane %v2432_v46, 4  ;;  %v2437_v0 = vrot.slane %v2435_v23, 5  ;;  %v1585_v6 = vor.u32 %v1584_v41, %v1581_v36  ;;  %v8472_v23 = vld [vmem:[#allocation2 + $0x58] sm:$0xff] }
 0x1b7   : > { %v956_v24 = vpop.f32.mrb[78].mxu0  ;;  %v1590_v36 = vrot.slane %v10510_v5, 2  ;;  %v8485_v59 = vpop.f32.mrb[28].mxu1  ;;  %v10450_v56 = vrot.slane %v8472_v23, 4 }
 0x1b8   : > { %v8461_v58 = vadd.f32 %v956_v24, %v8143_v21  ;;  %v6432_v27 = vpop.f32.mrb[79].mxu0  ;;  %v2438_v43 = vor.u32 %v2437_v0, %v2434_v14  ;;  %v2441_v24 = vshrl.u32 %v8472_v23, 16  ;;  %10512 = vst [vmem:[#allocation42_spill] sm:$0xff] %v8485_v59  ;;  %v6555_v5 = vpop.f32.mrb[29].mxu1 }
 0x1b9   : > { %v2444_v27 = vshll.u32 %v8472_v23, 16  ;;  %v8493_v42 = vpop.f32.mrb[30].mxu1 }
 0x1ba   : > { %6584 = vmatmul.mubr.msk.bf16.gmra.mrb[184].mxu0 %vm534_vm3, %v1577_v45  ;;  %v2439_v46 = vsel %vm10457_vm8, %v2429_v53, %v2438_v43  ;;  %v1586_v45 = vsel %vm1524_vm9, %v1576_v47, %v1585_v6  ;;  %v10511_v53 = vshll.u32 %v7846_v1, 16  ;;  %10513 = vst [vmem:[#allocation43_spill] sm:$0xff] %v8493_v42  ;;  %v8498_v1 = vsel %vm2123_vm7, %v2139_v17, %v10450_v56  ;;  %v6556_v59 = vpop.f32.mrb[31].mxu1  ;;  %v2104_v56 = vld [vmem:[#allocation2 + $0x68] sm:$0xff] }
 0x1bb   : > { %6587 = vmatprep.mubr.msk.bf16.mxu0 %vm7585_vm1, %v10484_v44  ;;  %v10514_v17 = vshrl.u32 %v7858_v7, 16 }
 0x1bc   : > { %6758 = vmatmul.mubr.msk.bf16.gmra.mrb[120].mxu1 %vm534_vm3, %v2439_v46  ;;  %v1593_v0 = vrot.slane %v10511_v53, 3  ;;  %v2103_v53 = vld [vmem:[#allocation2 + $0x60] sm:$0xff] }
 0x1bd   : > { %v961_v21 = vpop.f32.mrb[80].mxu0  ;;  %6761 = vmatprep.mubr.msk.bf16.mxu1 %vm7585_vm1, %v10484_v44 }
 0x1be   : > { %v8477_v30 = vadd.f32 %v961_v21, %v8153_v63  ;;  %v6435_v14 = vpop.f32.mrb[81].mxu0  ;;  %v2443_v63 = vrot.slane %v2441_v24, 4  ;;  %v2446_v21 = vrot.slane %v2444_v27, 5  ;;  %v1594_v24 = vor.u32 %v1593_v0, %v1590_v36 }
 0x1bf   : > { %v964_v41 = vpop.f32.mrb[82].mxu0  ;;  %v8513_v0 = vpop.f32.mrb[32].mxu1 }
 0x1c0   : > { %v8491_v47 = vadd.f32 %v964_v41, %v8157_v2  ;;  %v6436_v14 = vpop.f32.mrb[83].mxu0  ;;  %v2447_v46 = vor.u32 %v2446_v21, %v2443_v63  ;;  %v2450_v41 = vshrl.u32 %v2103_v53, 16  ;;  %v1599_v63 = vrot.slane %v10514_v17, 2  ;;  %10516 = vst [vmem:[#allocation44_spill] sm:$0xff] %v8513_v0 }
 0x1c1   : > { %v2453_v14 = vshll.u32 %v2103_v53, 16  ;;  %v1595_v36 = vsel %vm1524_vm9, %v1585_v6, %v1594_v24  ;;  %v2462_v0 = vshll.u32 %v2104_v56, 16 }
 0x1c2   : > { %6588 = vmatmul.mubr.msk.bf16.gmra.mrb[188].mxu0 %vm534_vm3, %v1586_v45  ;;  %v2448_v2 = vsel %vm10457_vm8, %v2438_v43, %v2447_v46  ;;  %v10515_v45 = vshll.u32 %v7858_v7, 16  ;;  %v2452_v43 = vrot.slane %v2450_v41, 4 }
 0x1c3   : > { %6591 = vmatprep.mubr.msk.bf16.mxu0 %vm7585_vm1, %v10484_v44 }
 0x1c4   : > { %v1602_v21 = vrot.slane %v10515_v45, 3  ;;  %6762 = vmatmul.mubr.msk.bf16.gmra.mrb[124].mxu1 %vm534_vm3, %v2448_v2 }
 0x1c5   : > { %v969_v27 = vpop.f32.mrb[84].mxu0  ;;  %6765 = vmatprep.mubr.msk.bf16.mxu1 %vm7585_vm1, %v10484_v44 }
 0x1c6   : > { %v8505_v5 = vadd.f32 %v969_v27, %v8167_v39  ;;  %v6439_v42 = vpop.f32.mrb[85].mxu0  ;;  %v2455_v39 = vrot.slane %v2453_v14, 5  ;;  %v6559_v27 = vpop.f32.mrb[33].mxu1  ;;  %v1603_v2 = vor.u32 %v1602_v21, %v1599_v63  ;;  %v2459_v14 = vshrl.u32 %v2104_v56, 16 }
 0x1c7   : > { %v972_v59 = vpop.f32.mrb[86].mxu0  ;;  %v8520_v17 = vpop.f32.mrb[34].mxu1  ;;  %v10517_v63 = vshrl.u32 %v7870_v13, 16 }
 0x1c8   : > { %v8518_v42 = vadd.f32 %v972_v59, %v8171_v54  ;;  %v6440_v53 = vpop.f32.mrb[87].mxu0  ;;  %v2456_v7 = vor.u32 %v2455_v39, %v2452_v43  ;;  %v6560_v45 = vpop.f32.mrb[35].mxu1  ;;  %v10518_v43 = vshll.u32 %v7870_v13, 16  ;;  %v2461_v56 = vrot.slane %v2459_v14, 4 }
 0x1c9   : > { %v1604_v53 = vsel %vm1524_vm9, %v1594_v24, %v1603_v2  ;;  %v1608_v21 = vrot.slane %v10517_v63, 2 }
 0x1ca   : > { %6592 = vmatmul.mubr.msk.bf16.gmra.mrb[192].mxu0 %vm534_vm3, %v1595_v36  ;;  %v2457_v6 = vsel %vm10457_vm8, %v2447_v46, %v2456_v7  ;;  %v1611_v39 = vrot.slane %v10518_v43, 3  ;;  %v8535_v46 = vpop.f32.mrb[36].mxu1  ;;  %v2105_v43 = vld [vmem:[#allocation2 + $0x70] sm:$0xff] }
 0x1cb   : > { %6595 = vmatprep.mubr.msk.bf16.mxu0 %vm7585_vm1, %v10484_v44  ;;  %10519 = vst [vmem:[#allocation45_spill] sm:$0xff] %v8535_v46  ;;  %v6563_v45 = vpop.f32.mrb[37].mxu1  ;;  %v2471_v46 = vshll.u32 %v2105_v43, 16 }
 0x1cc   : > { %6766 = vmatmul.mubr.msk.bf16.gmra.mrb[128].mxu1 %vm534_vm3, %v2457_v6  ;;  %v8542_v6 = vpop.f32.mrb[38].mxu1  ;;  %v1612_v13 = vor.u32 %v1611_v39, %v1608_v21  ;;  %v10520_v21 = vshrl.u32 %v7882_v22, 16 }
 0x1cd   : > { %v977_v41 = vpop.f32.mrb[88].mxu0  ;;  %6769 = vmatprep.mubr.msk.bf16.mxu1 %vm7585_vm1, %v10484_v44 }
 0x1ce   : > { %v8527_v54 = vadd.f32 %v977_v41, %v8181_v33  ;;  %v6443_v59 = vpop.f32.mrb[89].mxu0  ;;  %v2464_v33 = vrot.slane %v2462_v0, 5  ;;  %v2468_v0 = vshrl.u32 %v2105_v43, 16  ;;  %v1617_v39 = vrot.slane %v10520_v21, 2 }
 0x1cf   : > { %v980_v36 = vpop.f32.mrb[90].mxu0  ;;  %v6564_v59 = vpop.f32.mrb[39].mxu1 }
 0x1d0   : > { %v8540_v27 = vadd.f32 %v980_v36, %v8185_v11  ;;  %v6444_v24 = vpop.f32.mrb[91].mxu0  ;;  %v2465_v41 = vor.u32 %v2464_v33, %v2461_v56  ;;  %v10452_v11 = vmov 0   ;;  %v2470_v45 = vrot.slane %v2468_v0, 4 }
 0x1d1   : > { %535 = vst.msk [vmem:[#allocation2 + $0x78] sm:$0xff] %vm534_vm3, %v10452_v11  ;;  %7402 = vset.pattern.permute.xlu1 %v10452_v11  ;;  %7401 = vset.pattern.permute.xlu0 %v10452_v11  ;;  %v1613_v24 = vsel %vm1524_vm9, %v1603_v2, %v1612_v13  ;;  %v2473_v59 = vrot.slane %v2471_v46, 5  ;;  %v3045_v11 = vld [vmem:[%s10412_s10 + $0x10] sm:$0xff] }
 0x1d2   : > { %6596 = vmatmul.mubr.msk.bf16.gmra.mrb[196].mxu0 %vm534_vm3, %v1604_v53  ;;  %v2466_v63 = vsel %vm10457_vm8, %v2456_v7, %v2465_v41  ;;  %v10521_v7 = vshll.u32 %v7882_v22, 16  ;;  %vm3071_vm11 = vcmp.gt.f32.partialorder %v3045_v11, 0.5  ;;  %v2988_v11 = vld [vmem:[%s10411_s9 + $0x8] sm:$0xff] }
 0x1d3   : > { %6599 = vmatprep.mubr.msk.bf16.mxu0 %vm7585_vm1, %v10484_v44 }
 0x1d4   : > { %v1620_v56 = vrot.slane %v10521_v7, 3  ;;  %6770 = vmatmul.mubr.msk.bf16.gmra.mrb[132].mxu1 %vm534_vm3, %v2466_v63 }
 0x1d5   : > { %v985_v14 = vpop.f32.mrb[92].mxu0  ;;  %6773 = vmatprep.mubr.msk.bf16.mxu1 %vm7585_vm1, %v10484_v44 }
 0x1d6   : > { %v8553_v53 = vadd.f32 %v985_v14, %v8195_v26  ;;  %v6447_v36 = vpop.f32.mrb[93].mxu0  ;;  %v2474_v14 = vor.u32 %v2473_v59, %v2470_v45 }
 0x1d7   : > { %v988_v33 = vpop.f32.mrb[94].mxu0  ;;  %v1621_v36 = vor.u32 %v1620_v56, %v1617_v39  ;;  %v10522_v39 = vshrl.u32 %v7894_v29, 16 }
 0x1d8   : > { %v8564_v26 = vadd.f32 %v988_v33, %v8199_v48  ;;  %v6448_v43 = vpop.f32.mrb[95].mxu0  ;;  %v2475_v22 = vsel %vm10457_vm8, %v2465_v41, %v2474_v14  ;;  %v2356_v63 = vld [vmem:[#allocation2 + $0x78] sm:$0x1f] }
 0x1d9   : > { %v2477_v21 = vshrl.u32 %v2356_v63, 16  ;;  %v2480_v7 = vshll.u32 %v2356_v63, 16  ;;  %v1622_v48 = vsel %vm1524_vm9, %v1612_v13, %v1621_v36  ;;  %v1626_v56 = vrot.slane %v10522_v39, 2 }
 0x1da   : > { %6600 = vmatmul.mubr.msk.bf16.gmra.mrb[200].mxu0 %vm534_vm3, %v1613_v24  ;;  %v10523_v24 = vshll.u32 %v7894_v29, 16 }
 0x1db   : > { %6603 = vmatprep.mubr.msk.bf16.mxu0 %vm7585_vm1, %v10484_v44  ;;  %v2479_v41 = vrot.slane %v2477_v21, 4  ;;  %v2482_v59 = vrot.slane %v2480_v7, 5 }
 0x1dc   : > { %6774 = vmatmul.mubr.msk.bf16.gmra.mrb[136].mxu1 %vm534_vm3, %v2475_v22  ;;  %v1629_v45 = vrot.slane %v10523_v24, 3  ;;  %v7412_v22 = vld [vmem:[#allocation2 + $0x68] sm:$0xff] }
 0x1dd   : > { %v993_v2 = vpop.f32.mrb[96].mxu0  ;;  %6777 = vmatprep.mubr.msk.bf16.mxu1 %vm7585_vm1, %v10484_v44  ;;  %v2483_v63 = vor.u32 %v2482_v59, %v2479_v41  ;;  %v1636_v29 = vshll.u32 %v7412_v22, 16 }
 0x1de   : > { %v8571_v0 = vadd.f32 %v993_v2, %v8209_v16  ;;  %v6451_v46 = vpop.f32.mrb[97].mxu0  ;;  %v1630_v13 = vor.u32 %v1629_v45, %v1626_v56  ;;  %v1633_v2 = vshrl.u32 %v7412_v22, 16  ;;  %v1645_v45 = vshll.u32 %v8218_v25, 16 }
 0x1df   : > { %v996_v33 = vpop.f32.mrb[98].mxu0  ;;  %v2484_v46 = vsel %vm10457_vm8, %v2474_v14, %v2483_v63  ;;  %v1638_v24 = vrot.slane %v1636_v29, 3 }
 0x1e0   : > { %v8582_v16 = vadd.f32 %v996_v33, %v8213_v20  ;;  %v6452_v43 = vpop.f32.mrb[99].mxu0  ;;  %v1631_v33 = vsel %vm1524_vm9, %v1621_v36, %v1630_v13  ;;  %v1647_v29 = vrot.slane %v1645_v45, 3 }
 0x1e1   : > { %v2699_v43 = vrot.slane %v8256_v15, 5 }
 0x1e2   : > { %6604 = vmatmul.mubr.msk.bf16.gmra.mrb[204].mxu0 %vm534_vm3, %v1622_v48  ;;  %v1635_v48 = vrot.slane %v1633_v2, 2 }
 0x1e3   : > { %6607 = vmatprep.mubr.msk.bf16.mxu0 %vm7585_vm1, %v10484_v44 }
 0x1e4   : > { %6778 = vmatmul.mubr.msk.bf16.gmra.mrb[140].mxu1 %vm534_vm3, %v2484_v46  ;;  %v1639_v14 = vor.u32 %v1638_v24, %v1635_v48  ;;  %v10451_v46 = vrot.slane %v8231_v51, 5 }
 0x1e5   : > { %v1001_v39 = vpop.f32.mrb[100].mxu0 }
 0x1e6   : > { %v8589_v21 = vadd.f32 %v1001_v39, %v8233_v10  ;;  %v6455_v7 = vpop.f32.mrb[101].mxu0  ;;  %v1642_v10 = vshrl.u32 %v8218_v25, 16  ;;  %v1640_v22 = vsel %vm1524_vm9, %v1630_v13, %v1639_v14  ;;  %v8607_v39 = vpop.f32.mrb[40].mxu1 }
 0x1e7   : > { %v1004_v20 = vpop.f32.mrb[102].mxu0 }
 0x1e8   : > { %v8594_v41 = vadd.f32 %v1004_v20, %v8240_v32  ;;  %v6456_v56 = vpop.f32.mrb[103].mxu0  ;;  %v1644_v2 = vrot.slane %v1642_v10, 2  ;;  %v6623_v20 = vpop.f32.mrb[41].mxu1 }
 0x1e9   : > { %v8612_v15 = vpop.f32.mrb[42].mxu1 }
 0x1ea   : > { %6608 = vmatmul.mubr.msk.bf16.gmra.mrb[208].mxu0 %vm534_vm3, %v1631_v33  ;;  %v6624_v13 = vpop.f32.mrb[43].mxu1  ;;  %v1648_v33 = vor.u32 %v1647_v29, %v1644_v2 }
 0x1eb   : > { %6611 = vmatprep.mubr.msk.bf16.mxu0 %vm7585_vm1, %v10484_v44 }
 0x1ec   : > { %v1649_v45 = vsel %vm1524_vm9, %v1639_v14, %v1648_v33  ;;  %v5949_v14 = vld [vmem:[%s10477_s1 + $0x10] sm:$0x3] }
 0x1ed   : > { %v1129_v59 = vpop.f32.mrb[104].mxu0 }
 0x1ee   : > { %v8603_v36 = vadd.f32 %v1129_v59, %v8262_v49  ;;  %v6461_v63 = vpop.f32.mrb[105].mxu0  ;;  %v8617_v49 = vsel %vm2695_vm10, %v10451_v46, %v2699_v43  ;;  %v8627_v59 = vpop.f32.mrb[44].mxu1 }
 0x1ef   : > { %v1132_v32 = vpop.f32.mrb[106].mxu0 }
 0x1f0   : > { %v8610_v7 = vadd.f32 %v1132_v32, %v8272_v34  ;;  %v6462_v25 = vpop.f32.mrb[107].mxu0  ;;  %v2701_v34 = vrot.slane %v8285_v4, 5 }
 0x1f2   : > { %6612 = vmatmul.mubr.msk.bf16.gmra.mrb[212].mxu0 %vm534_vm3, %v1640_v22  ;;  %v6627_v22 = vpop.f32.mrb[45].mxu1  ;;  %v8635_v2 = vsel %vm2695_vm10, %v2699_v43, %v2701_v34 }
 0x1f3   : > { %6615 = vmatprep.mubr.msk.bf16.mxu0 %vm7585_vm1, %v10484_v44  ;;  %v8632_v25 = vpop.f32.mrb[46].mxu1 }
 0x1f4   : > { %v6628_v4 = vpop.f32.mrb[47].mxu1 }
 0x1f5   : > { %v1137_v48 = vpop.f32.mrb[108].mxu0  ;;  %v8647_v43 = vpop.f32.mrb[48].mxu1 }
 0x1f6   : > { %v8624_v24 = vadd.f32 %v1137_v48, %v8295_v8  ;;  %v6465_v56 = vpop.f32.mrb[109].mxu0 }
 0x1f7   : > { %v1140_v10 = vpop.f32.mrb[110].mxu0  ;;  %v2763_v56 = vsel %vm701_vm0, %v5949_v14, 0 }
 0x1f8   : > { %v8630_v63 = vadd.f32 %v1140_v10, %v8306_v37  ;;  %v6466_v32 = vpop.f32.mrb[111].mxu0  ;;  %v2703_v37 = vrot.slane %v8317_v31, 5  ;;  %v6631_v10 = vpop.f32.mrb[49].mxu1 }
 0x1fa   : > { %6616 = vmatmul.mubr.msk.bf16.gmra.mrb[216].mxu0 %vm534_vm3, %v1649_v45  ;;  %v8653_v45 = vpop.f32.mrb[50].mxu1  ;;  %v8656_v32 = vsel %vm2695_vm10, %v2701_v34, %v2703_v37 }
 0x1fb   : > { %6675 = vmatprep.mubr.msk.bf16.mxu0 %vm7585_vm1, %v10484_v44  ;;  %v6632_v31 = vpop.f32.mrb[51].mxu1 }
 0x1fc   : > { %v8664_v14 = vpop.f32.mrb[52].mxu1  ;;  %v10525_v31 = vld [vmem:[#allocation24_spill] sm:$0xff] }
 0x1fd   : > { %v1145_v8 = vpop.f32.mrb[112].mxu0 }
 0x1fe   : > { %v8645_v29 = vadd.f32 %v1145_v8, %v8329_v28  ;;  %v6469_v20 = vpop.f32.mrb[113].mxu0 }
 0x1ff   : > { %v1148_v13 = vpop.f32.mrb[114].mxu0  ;;  %v10524_v20 = vld [vmem:[#allocation23_spill] sm:$0xff] }
 0x200   : > { %v8650_v33 = vadd.f32 %v1148_v13, %v8340_v52  ;;  %v6470_v48 = vpop.f32.mrb[115].mxu0  ;;  %v2705_v52 = vrot.slane %v8352_v57, 5 }
 0x201   : > { %v6635_v48 = vpop.f32.mrb[53].mxu1 }
 0x202   : > { %6676 = vmatmul.mubr.msk.bf16.vlgmr.msra.gmra.mrb[220].mxu0 %vm534_vm3, %v8249_v18  ;;  %v8673_v10 = vsel %vm2695_vm10, %v2703_v37, %v2705_v52 }
 0x203   : > { %6782 = vmatpush3.bf16.msra.mxu0 %v2763_v56  ;;  %6679 = vmatprep.mubr.msk.bf16.mxu0 %vm7585_vm1, %v10484_v44  ;;  %v8670_v56 = vpop.f32.mrb[54].mxu1 }
 0x205   : > { %v1153_v28 = vpop.f32.mrb[116].mxu0 }
 0x206   : > { %v1238_v22 = vadd.f32 %v1153_v28, %v8360_v62  ;;  %v6473_v4 = vpop.f32.mrb[117].mxu0  ;;  %v10526_v62 = vld [vmem:[#allocation25_spill] sm:$0xff]  ;;  %v6636_v28 = vpop.f32.mrb[55].mxu1 }
 0x207   : > { %v1156_v8 = vpop.f32.mrb[118].mxu0  ;;  %v8693_v48 = vpop.f32.mrb[56].mxu1  ;;  %v10528_v28 = vld [vmem:[#allocation26_spill] sm:$0xff] }
 0x208   : > { %v1239_v34 = vadd.f32 %v1156_v8, %v8371_v3  ;;  %v8668_v13 = vadd.f32 %v10524_v20, %v1238_v22  ;;  %v6474_v18 = vpop.f32.mrb[119].mxu0  ;;  %v2989_v8 = vld [vmem:[%s10411_s9 + $0x10] sm:$0xff]  ;;  %v2987_v20 = vld [vmem:[%s10411_s9] sm:$0xff]  ;;  %10527 = vst [vmem:[#allocation23_spill] sm:$0xff] %v8693_v48  ;;  %v6639_v46 = vpop.f32.mrb[57].mxu1 }
 0x209   : > { %v3043_v22 = vld [vmem:[%s10412_s10] sm:$0xff]  ;;  %v8707_v48 = vpop.f32.mrb[58].mxu1 }
 0x20a   : > { %v8676_v57 = vadd.f32 %v10525_v31, %v1239_v34  ;;  %6680 = vmatmul.mubr.msk.bf16.gmra.mrb[224].mxu0 %vm534_vm3, %v10526_v62  ;;  %v8688_v34 = vstv %s3015_s24  ;;  %10530 = vst [vmem:[#allocation25_spill] sm:$0xff] %v8707_v48  ;;  %vm3069_vm13 = vcmp.gt.f32.partialorder %v3043_v22, 0.5 }
 0x20b   : > { %6683 = vmatprep.mubr.msk.bf16.mxu0 %vm7585_vm1, %v10484_v44  ;;  %v3019_v31 = vadd.f32 %v8688_v34, %v2989_v8  ;;  %v3017_v62 = vadd.f32 %v8688_v34, %v2987_v20  ;;  %v10531_v8 = vrot.slane %v8382_v55, 5 }
 0x20d   : > { %v1161_v3 = vpop.f32.mrb[120].mxu0  ;;  %v8712_v20 = vsel %vm2695_vm10, %v2705_v52, %v10531_v8  ;;  %vm3097_vm12 = vcmp.ge.f32.partialorder %v3019_v31, 0.0  ;;  %vm3149_vm15 = vcmp.le.f32.partialorder %v3019_v31, 15.0  ;;  %vm3095_vm0 = vcmp.ge.f32.partialorder %v3017_v62, 0.0  ;;  %v2992_v31 = vld [vmem:[%s10411_s9 + $0x28] sm:$0xff] }
 0x20e   : > { %v1240_v4 = vadd.f32 %v1161_v3, %v8387_v12  ;;  %v6477_v37 = vpop.f32.mrb[121].mxu0  ;;  %10532 = vst [vmem:[#allocation26_spill] sm:$0xff] %v8712_v20  ;;  %vm3123_vm14 = vmand %vm3071_vm11, %vm3097_vm12  ;;  %vm3147_vm6 = vcmp.le.f32.partialorder %v3017_v62, 15.0  ;;  %v2991_v62 = vld [vmem:[%s10411_s9 + $0x20] sm:$0xff] }
 0x20f   : > { %v1164_v18 = vpop.f32.mrb[122].mxu0  ;;  %vm3175_vm4 = vmand %vm3123_vm14, %vm3149_vm15 }
 0x210   : > { %v1241_v12 = vadd.f32 %v1164_v18, %v8401_v50  ;;  %v8699_v3 = vadd.f32 %v10528_v28, %v1240_v4  ;;  %v6478_v37 = vpop.f32.mrb[123].mxu0  ;;  %v10533_v50 = vld [vmem:[#allocation27_spill] sm:$0xff]  ;;  %v10535_v4 = vld [vmem:[#allocation28_spill] sm:$0xff]  ;;  %v6640_v18 = vpop.f32.mrb[59].mxu1  ;;  %v2990_v28 = vld [vmem:[%s10411_s9 + $0x18] sm:$0xff] }
 0x211   : > { %v3020_v52 = vadd.f32 %v8688_v34, %v2990_v28  ;;  %v10536_v37 = vmov 0   ;;  %vm3121_vm11 = vmand %vm3069_vm13, %vm3095_vm0 }
 0x212   : > { %10529 = vst [vmem:[#allocation24_spill] sm:$0xff] %v8699_v3  ;;  %v8715_v46 = vadd.f32 %v10533_v50, %v1241_v12  ;;  %6684 = vmatmul.mubr.msk.bf16.gmra.mrb[228].mxu0 %vm534_vm3, %v10535_v4  ;;  %v3018_v12 = vadd.f32 %v8688_v34, %v2988_v11  ;;  %v3201_v8 = vsel %vm3175_vm4, 1, %v10536_v37  ;;  %v3046_v50 = vld [vmem:[%s10412_s10 + $0x18] sm:$0xff]  ;;  %v3044_v4 = vld [vmem:[%s10412_s10 + $0x8] sm:$0xff]  ;;  %vm3173_vm12 = vmand %vm3121_vm11, %vm3147_vm6 }
 0x213   : > { %6687 = vmatprep.mubr.msk.bf16.mxu0 %vm7585_vm1, %v10484_v44  ;;  %3232 = vperm.xlu1 %7402, %v3201_v8   ;;  %vm3072_vm14 = vcmp.gt.f32.partialorder %v3046_v50, 0.5  ;;  %vm3098_vm15 = vcmp.ge.f32.partialorder %v3020_v52, 0.0  ;;  %vm3070_vm5 = vcmp.gt.f32.partialorder %v3044_v4, 0.5  ;;  %v3199_v11 = vsel %vm3173_vm12, 1, %v10536_v37  ;;  %v8747_v50 = vpop.f32.mrb[60].mxu1 }
 0x214   : > { %10534 = vst [vmem:[#allocation27_spill] sm:$0xff] %v8715_v46  ;;  %vm3096_vm8 = vcmp.ge.f32.partialorder %v3018_v12, 0.0  ;;  %vm3124_vm4 = vmand %vm3072_vm14, %vm3098_vm15  ;;  %vm3150_vm13 = vcmp.le.f32.partialorder %v3020_v52, 15.0  ;;  %vm3148_vm0 = vcmp.le.f32.partialorder %v3018_v12, 15.0  ;;  %3226 = vperm.xlu0 %7401, %v3199_v11   ;;  %v6643_v46 = vpop.f32.mrb[61].mxu1  ;;  %v3048_v11 = vld [vmem:[%s10412_s10 + $0x28] sm:$0xff] }
 0x215   : > { %v1169_v18 = vpop.f32.mrb[124].mxu0  ;;  %vm3176_vm6 = vmand %vm3124_vm4, %vm3150_vm13  ;;  %v10539_v46 = vrot.slane %v8382_v55, 5  ;;  %v2994_v55 = vld [vmem:[%s10411_s9 + $0x38] sm:$0xff] }
 0x216   : > { %v1242_v28 = vadd.f32 %v1169_v18, %v8417_v35  ;;  %v6481_v22 = vpop.f32.mrb[125].mxu0  ;;  %v3022_v35 = vadd.f32 %v8688_v34, %v2992_v31  ;;  %v3021_v18 = vadd.f32 %v8688_v34, %v2991_v62  ;;  %v3202_v3 = vsel %vm3176_vm6, 1, %v10536_v37  ;;  %vm3122_vm11 = vmand %vm3070_vm5, %vm3096_vm8  ;;  %v3047_v31 = vld [vmem:[%s10412_s10 + $0x20] sm:$0xff]  ;;  %v2993_v62 = vld [vmem:[%s10411_s9 + $0x30] sm:$0xff] }
 0x217   : > { %v1172_v8 = vpop.f32.mrb[126].mxu0  ;;  %v10537_v22 = vld [vmem:[#allocation29_spill] sm:$0xff]  ;;  %3235 = vperm.xlu1 %7402, %v3202_v3   ;;  %vm3174_vm12 = vmand %vm3122_vm11, %vm3148_vm0  ;;  %vm3074_vm5 = vcmp.gt.f32.partialorder %v3048_v11, 0.5  ;;  %vm3073_vm14 = vcmp.gt.f32.partialorder %v3047_v31, 0.5 }
 0x218   : > { %v1243_v52 = vadd.f32 %v1172_v8, %v8431_v40  ;;  %v8753_v20 = vadd.f32 %v10537_v22, %v1242_v28  ;;  %v6482_v48 = vpop.f32.mrb[127].mxu0  ;;  %v8765_v40 = vpop.f32.mrb[62].mxu1  ;;  %vm3100_vm8 = vcmp.ge.f32.partialorder %v3022_v35, 0.0  ;;  %v3200_v3 = vsel %vm3174_vm12, 1, %v10536_v37  ;;  %v3049_v22 = vld [vmem:[%s10412_s10 + $0x30] sm:$0xff] }
 0x219   : > { %v10538_v48 = vrot.slane %v8412_v61, 5  ;;  %vm3126_vm15 = vmand %vm3074_vm5, %vm3100_vm8  ;;  %vm3152_vm4 = vcmp.le.f32.partialorder %v3022_v35, 15.0  ;;  %vm3099_vm13 = vcmp.ge.f32.partialorder %v3021_v18, 0.0  ;;  %v6644_v12 = vpop.f32.mrb[63].mxu1  ;;  %3229 = vperm.xlu0 %7401, %v3200_v3   ;;  %vm3151_vm6 = vcmp.le.f32.partialorder %v3021_v18, 15.0  ;;  %v2995_v3 = vld [vmem:[%s10411_s9 + $0x40] sm:$0xff] }
 0x21a   : > { %v8775_v28 = vadd.f32 %v8342_v38, %v1243_v52  ;;  %6688 = vmatmul.mubr.msk.bf16.gmra.mrb[232].mxu0 %vm534_vm3, %v8345_v60  ;;  %vm3178_vm0 = vmand %vm3126_vm15, %vm3152_vm4  ;;  %v3024_v38 = vadd.f32 %v8688_v34, %v2994_v55  ;;  %v3023_v60 = vadd.f32 %v8688_v34, %v2993_v62  ;;  %v3050_v52 = vld [vmem:[%s10412_s10 + $0x38] sm:$0xff]  ;;  %vm3075_vm15 = vcmp.gt.f32.partialorder %v3049_v22, 0.5  ;;  %v8807_v55 = vpop.f32.mrb[64].mxu1 }
 0x21b   : > { %v8772_v4 = vsel %vm2695_vm10, %v10539_v46, %v10538_v48  ;;  %6691 = vmatprep.mubr.msk.bf16.mxu0 %vm7585_vm1, %v10484_v44  ;;  %v3204_v35 = vsel %vm3178_vm0, 1, %v10536_v37  ;;  %vm3125_vm11 = vmand %vm3073_vm14, %vm3099_vm13  ;;  %vm3076_vm5 = vcmp.gt.f32.partialorder %v3050_v52, 0.5  ;;  %v2996_v46 = vld [vmem:[%s10411_s9 + $0x48] sm:$0xff]  ;;  %v3025_v62 = vadd.f32 %v8688_v34, %v2995_v3 }
 0x21c   : > { %3241 = vperm.xlu1 %7402, %v3204_v35   ;;  %vm3177_vm12 = vmand %vm3125_vm11, %vm3151_vm6  ;;  %vm3102_vm8 = vcmp.ge.f32.partialorder %v3024_v38, 0.0  ;;  %vm3101_vm4 = vcmp.ge.f32.partialorder %v3023_v60, 0.0  ;;  %vm3154_vm13 = vcmp.le.f32.partialorder %v3024_v38, 15.0  ;;  %vm3153_vm0 = vcmp.le.f32.partialorder %v3023_v60, 15.0  ;;  %v10540_v35 = vld [vmem:[#allocation30_spill] sm:$0xff] }
 0x21d   : > { %v1177_v11 = vpop.f32.mrb[128].mxu0  ;;  %v3203_v31 = vsel %vm3177_vm12, 1, %v10536_v37  ;;  %vm3128_vm14 = vmand %vm3076_vm5, %vm3102_vm8  ;;  %v10543_v3 = vrot.slane %v8412_v61, 5  ;;  %v2998_v61 = vld [vmem:[%s10411_s9 + $0x58] sm:$0xff] }
 0x21e   : > { %v1244_v18 = vadd.f32 %v1177_v11, %v8447_v9  ;;  %v6485_v48 = vpop.f32.mrb[129].mxu0  ;;  %3238 = vperm.xlu0 %7401, %v3203_v31   ;;  %vm3180_vm6 = vmand %vm3128_vm14, %vm3154_vm13  ;;  %v3026_v9 = vadd.f32 %v8688_v34, %v2996_v46  ;;  %v3052_v31 = vld [vmem:[%s10412_s10 + $0x48] sm:$0xff]  ;;  %v3051_v46 = vld [vmem:[%s10412_s10 + $0x40] sm:$0xff]  ;;  %vm3103_vm13 = vcmp.ge.f32.partialorder %v3025_v62, 0.0 }
 0x21f   : > { %v1180_v12 = vpop.f32.mrb[130].mxu0  ;;  %v6647_v48 = vpop.f32.mrb[65].mxu1  ;;  %v3206_v8 = vsel %vm3180_vm6, 1, %v10536_v37  ;;  %vm3127_vm11 = vmand %vm3075_vm15, %vm3101_vm4  ;;  %vm3078_vm5 = vcmp.gt.f32.partialorder %v3052_v31, 0.5  ;;  %vm3077_vm15 = vcmp.gt.f32.partialorder %v3051_v46, 0.5  ;;  %vm3155_vm6 = vcmp.le.f32.partialorder %v3025_v62, 15.0 }
 0x220   : > { %v1245_v38 = vadd.f32 %v1180_v12, %v8461_v58  ;;  %v8813_v52 = vadd.f32 %v10540_v35, %v1244_v18  ;;  %v6486_v11 = vpop.f32.mrb[131].mxu0  ;;  %3247 = vperm.xlu1 %7402, %v3206_v8   ;;  %vm3179_vm12 = vmand %vm3127_vm11, %vm3153_vm0  ;;  %v8825_v58 = vpop.f32.mrb[66].mxu1  ;;  %v10542_v18 = vrot.slane %v8442_v19, 5  ;;  %vm3104_vm8 = vcmp.ge.f32.partialorder %v3026_v9, 0.0  ;;  %v10545_v12 = vld [vmem:[#allocation31_spill] sm:$0xff]  ;;  %v2997_v48 = vld [vmem:[%s10411_s9 + $0x50] sm:$0xff] }
 0x221   : > { %10541 = vst [vmem:[#allocation28_spill] sm:$0xff] %v8825_v58  ;;  %v10546_v11 = vld [vmem:[#allocation32_spill] sm:$0xff]  ;;  %v3205_v60 = vsel %vm3179_vm12, 1, %v10536_v37  ;;  %vm3130_vm4 = vmand %vm3078_vm5, %vm3104_vm8  ;;  %vm3156_vm14 = vcmp.le.f32.partialorder %v3026_v9, 15.0  ;;  %v6648_v8 = vpop.f32.mrb[67].mxu1  ;;  %v3027_v9 = vadd.f32 %v8688_v34, %v2997_v48 }
 0x222   : > { %v8832_v22 = vsel %vm2695_vm10, %v10543_v3, %v10542_v18  ;;  %v8835_v35 = vadd.f32 %v10545_v12, %v1245_v38  ;;  %6692 = vmatmul.mubr.msk.bf16.gmra.mrb[236].mxu0 %vm534_vm3, %v10546_v11  ;;  %3244 = vperm.xlu0 %7401, %v3205_v60   ;;  %vm3182_vm0 = vmand %vm3130_vm4, %vm3156_vm14  ;;  %v3028_v38 = vadd.f32 %v8688_v34, %v2998_v61  ;;  %v3054_v3 = vld [vmem:[%s10412_s10 + $0x58] sm:$0xff]  ;;  %v3053_v12 = vld [vmem:[%s10412_s10 + $0x50] sm:$0xff] }
 0x223   : > { %10544 = vst [vmem:[#allocation29_spill] sm:$0xff] %v8832_v22  ;;  %6695 = vmatprep.mubr.msk.bf16.mxu0 %vm7585_vm1, %v10484_v44  ;;  %v3208_v18 = vsel %vm3182_vm0, 1, %v10536_v37  ;;  %vm3129_vm11 = vmand %vm3077_vm15, %vm3103_vm13  ;;  %vm3080_vm5 = vcmp.gt.f32.partialorder %v3054_v3, 0.5  ;;  %vm3079_vm4 = vcmp.gt.f32.partialorder %v3053_v12, 0.5  ;;  %vm3105_vm14 = vcmp.ge.f32.partialorder %v3027_v9, 0.0  ;;  %v3000_v8 = vld [vmem:[%s10411_s9 + $0x68] sm:$0xff] }
 0x224   : > { %3253 = vperm.xlu1 %7402, %v3208_v18   ;;  %vm3181_vm12 = vmand %vm3129_vm11, %vm3155_vm6  ;;  %vm3106_vm8 = vcmp.ge.f32.partialorder %v3028_v38, 0.0  ;;  %vm3158_vm13 = vcmp.le.f32.partialorder %v3028_v38, 15.0  ;;  %vm3157_vm0 = vcmp.le.f32.partialorder %v3027_v9, 15.0  ;;  %v2999_v61 = vld [vmem:[%s10411_s9 + $0x60] sm:$0xff]  ;;  %v8867_v18 = vpop.f32.mrb[68].mxu1 }
 0x225   : > { %v1185_v11 = vpop.f32.mrb[132].mxu0  ;;  %v3207_v46 = vsel %vm3181_vm12, 1, %v10536_v37  ;;  %vm3132_vm15 = vmand %vm3080_vm5, %vm3106_vm8  ;;  %v3029_v3 = vadd.f32 %v8688_v34, %v2999_v61  ;;  %v6651_v22 = vpop.f32.mrb[69].mxu1 }
 0x226   : > { %v1246_v62 = vadd.f32 %v1185_v11, %v8477_v30  ;;  %v6489_v60 = vpop.f32.mrb[133].mxu0  ;;  %3250 = vperm.xlu0 %7401, %v3207_v46   ;;  %vm3184_vm6 = vmand %vm3132_vm15, %vm3158_vm13  ;;  %v3030_v30 = vadd.f32 %v8688_v34, %v3000_v8  ;;  %v10547_v11 = vld [vmem:[#allocation33_spill] sm:$0xff]  ;;  %v3056_v46 = vld [vmem:[%s10412_s10 + $0x68] sm:$0xff]  ;;  %v10549_v22 = vrot.slane %v8472_v23, 5 }
 0x227   : > { %v1188_v48 = vpop.f32.mrb[134].mxu0  ;;  %v3210_v58 = vsel %vm3184_vm6, 1, %v10536_v37  ;;  %vm3131_vm11 = vmand %vm3079_vm4, %vm3105_vm14  ;;  %v3055_v8 = vld [vmem:[%s10412_s10 + $0x60] sm:$0xff]  ;;  %vm3082_vm5 = vcmp.gt.f32.partialorder %v3056_v46, 0.5  ;;  %vm3107_vm13 = vcmp.ge.f32.partialorder %v3029_v3, 0.0  ;;  %vm3159_vm6 = vcmp.le.f32.partialorder %v3029_v3, 15.0 }
 0x228   : > { %v1247_v38 = vadd.f32 %v1188_v48, %v8491_v47  ;;  %v8873_v60 = vadd.f32 %v10547_v11, %v1246_v62  ;;  %v6490_v31 = vpop.f32.mrb[135].mxu0  ;;  %3259 = vperm.xlu1 %7402, %v3210_v58   ;;  %vm3183_vm12 = vmand %vm3131_vm11, %vm3157_vm0  ;;  %v8885_v47 = vpop.f32.mrb[70].mxu1  ;;  %vm3108_vm8 = vcmp.ge.f32.partialorder %v3030_v30, 0.0  ;;  %vm3081_vm4 = vcmp.gt.f32.partialorder %v3055_v8, 0.5  ;;  %v10552_v62 = vld [vmem:[#allocation34_spill] sm:$0xff]  ;;  %v10553_v48 = vld [vmem:[#allocation35_spill] sm:$0xff] }
 0x229   : > { %10548 = vst [vmem:[#allocation30_spill] sm:$0xff] %v8885_v47  ;;  %v10550_v31 = vrot.slane %v8442_v19, 5  ;;  %v3209_v58 = vsel %vm3183_vm12, 1, %v10536_v37  ;;  %vm3134_vm14 = vmand %vm3082_vm5, %vm3108_vm8  ;;  %vm3160_vm15 = vcmp.le.f32.partialorder %v3030_v30, 15.0  ;;  %v6652_v9 = vpop.f32.mrb[71].mxu1  ;;  %v3002_v19 = vld [vmem:[%s10411_s9 + $0x78] sm:$0xff] }
 0x22a   : > { %v8895_v61 = vadd.f32 %v10552_v62, %v1247_v38  ;;  %6696 = vmatmul.mubr.msk.bf16.gmra.mrb[240].mxu0 %vm534_vm3, %v10553_v48  ;;  %v3001_v11 = vld [vmem:[%s10411_s9 + $0x70] sm:$0xff]  ;;  %3256 = vperm.xlu0 %7401, %v3209_v58   ;;  %vm3186_vm0 = vmand %vm3134_vm14, %vm3160_vm15  ;;  %v3032_v38 = vadd.f32 %v8688_v34, %v3002_v19  ;;  %v3004_v58 = vld [vmem:[%s10411_s9 + $0x88] sm:$0xff] }
 0x22b   : > { %v8892_v12 = vsel %vm2695_vm10, %v10550_v31, %v10549_v22  ;;  %6699 = vmatprep.mubr.msk.bf16.mxu0 %vm7585_vm1, %v10484_v44  ;;  %v3031_v30 = vadd.f32 %v8688_v34, %v3001_v11  ;;  %v3212_v46 = vsel %vm3186_vm0, 1, %v10536_v37  ;;  %vm3133_vm11 = vmand %vm3081_vm4, %vm3107_vm13  ;;  %v3058_v22 = vld [vmem:[%s10412_s10 + $0x78] sm:$0xff]  ;;  %v3057_v31 = vld [vmem:[%s10412_s10 + $0x70] sm:$0xff]  ;;  %v8926_v11 = vpop.f32.mrb[72].mxu1 }
 0x22c   : > { %10551 = vst [vmem:[#allocation31_spill] sm:$0xff] %v8892_v12  ;;  %3265 = vperm.xlu1 %7402, %v3212_v46   ;;  %vm3185_vm12 = vmand %vm3133_vm11, %vm3159_vm6  ;;  %vm3084_vm5 = vcmp.gt.f32.partialorder %v3058_v22, 0.5  ;;  %vm3110_vm8 = vcmp.ge.f32.partialorder %v3032_v38, 0.0  ;;  %vm3083_vm14 = vcmp.gt.f32.partialorder %v3057_v31, 0.5  ;;  %vm3162_vm13 = vcmp.le.f32.partialorder %v3032_v38, 15.0  ;;  %v3003_v9 = vld [vmem:[%s10411_s9 + $0x80] sm:$0xff] }
 0x22d   : > { %v1193_v62 = vpop.f32.mrb[136].mxu0  ;;  %vm3109_vm15 = vcmp.ge.f32.partialorder %v3031_v30, 0.0  ;;  %v3211_v8 = vsel %vm3185_vm12, 1, %v10536_v37  ;;  %vm3136_vm4 = vmand %vm3084_vm5, %vm3110_vm8  ;;  %vm3161_vm0 = vcmp.le.f32.partialorder %v3031_v30, 15.0  ;;  %10554 = vst [vmem:[#allocation32_spill] sm:$0xff] %v8926_v11  ;;  %v3033_v46 = vadd.f32 %v8688_v34, %v3003_v9  ;;  %v10555_v22 = vld [vmem:[#allocation36_spill] sm:$0xff] }
 0x22e   : > { %v1248_v3 = vadd.f32 %v1193_v62, %v8505_v5  ;;  %v6493_v48 = vpop.f32.mrb[137].mxu0  ;;  %3262 = vperm.xlu0 %7401, %v3211_v8   ;;  %vm3188_vm6 = vmand %vm3136_vm4, %vm3162_vm13  ;;  %v3034_v5 = vadd.f32 %v8688_v34, %v3004_v58  ;;  %v6655_v12 = vpop.f32.mrb[73].mxu1  ;;  %v3060_v8 = vld [vmem:[%s10412_s10 + $0x88] sm:$0xff]  ;;  %v3059_v58 = vld [vmem:[%s10412_s10 + $0x80] sm:$0xff] }
 0x22f   : > { %v1196_v19 = vpop.f32.mrb[138].mxu0  ;;  %v3214_v47 = vsel %vm3188_vm6, 1, %v10536_v37  ;;  %vm3135_vm11 = vmand %vm3083_vm14, %vm3109_vm15  ;;  %vm3086_vm5 = vcmp.gt.f32.partialorder %v3060_v8, 0.5  ;;  %vm3085_vm4 = vcmp.gt.f32.partialorder %v3059_v58, 0.5  ;;  %v10557_v12 = vld [vmem:[#allocation37_spill] sm:$0xff]  ;;  %v10558_v31 = vld [vmem:[#allocation38_spill] sm:$0xff] }
 0x230   : > { %v1249_v38 = vadd.f32 %v1196_v19, %v8518_v42  ;;  %v8932_v62 = vadd.f32 %v10555_v22, %v1248_v3  ;;  %v6494_v48 = vpop.f32.mrb[139].mxu0  ;;  %3271 = vperm.xlu1 %7402, %v3214_v47   ;;  %vm3187_vm12 = vmand %vm3135_vm11, %vm3161_vm0  ;;  %v8944_v42 = vpop.f32.mrb[74].mxu1  ;;  %vm3112_vm8 = vcmp.ge.f32.partialorder %v3034_v5, 0.0  ;;  %vm3164_vm15 = vcmp.le.f32.partialorder %v3034_v5, 15.0  ;;  %v3006_v47 = vld [vmem:[%s10411_s9 + $0x98] sm:$0xff]  ;;  %v3005_v30 = vld [vmem:[%s10411_s9 + $0x90] sm:$0xff] }
 0x231   : > { %10556 = vst [vmem:[#allocation33_spill] sm:$0xff] %v8944_v42  ;;  %v3213_v9 = vsel %vm3187_vm12, 1, %v10536_v37  ;;  %vm3138_vm14 = vmand %vm3086_vm5, %vm3112_vm8  ;;  %vm3111_vm13 = vcmp.ge.f32.partialorder %v3033_v46, 0.0  ;;  %v6656_v19 = vpop.f32.mrb[75].mxu1  ;;  %vm3163_vm6 = vcmp.le.f32.partialorder %v3033_v46, 15.0  ;;  %v3035_v5 = vadd.f32 %v8688_v34, %v3005_v30  ;;  %v3062_v48 = vld [vmem:[%s10412_s10 + $0x98] sm:$0xff] }
 0x232   : > { %v8947_v3 = vadd.f32 %v10557_v12, %v1249_v38  ;;  %6700 = vmatmul.mubr.msk.bf16.gmra.mrb[244].mxu0 %vm534_vm3, %v10558_v31  ;;  %3268 = vperm.xlu0 %7401, %v3213_v9   ;;  %vm3190_vm0 = vmand %vm3138_vm14, %vm3164_vm15  ;;  %v3036_v38 = vadd.f32 %v8688_v34, %v3006_v47  ;;  %v3061_v8 = vld [vmem:[%s10412_s10 + $0x90] sm:$0xff]  ;;  %vm3088_vm5 = vcmp.gt.f32.partialorder %v3062_v48, 0.5  ;;  %v3008_v9 = vld [vmem:[%s10411_s9 + $0xa8] sm:$0xff]  ;;  %v8978_v30 = vpop.f32.mrb[76].mxu1 }
 0x233   : > { %6703 = vmatprep.mubr.msk.bf16.mxu0 %vm7585_vm1, %v10484_v44  ;;  %v3216_v22 = vsel %vm3190_vm0, 1, %v10536_v37  ;;  %vm3137_vm11 = vmand %vm3085_vm4, %vm3111_vm13  ;;  %vm3087_vm14 = vcmp.gt.f32.partialorder %v3061_v8, 0.5  ;;  %vm3113_vm15 = vcmp.ge.f32.partialorder %v3035_v5, 0.0  ;;  %vm3165_vm0 = vcmp.le.f32.partialorder %v3035_v5, 15.0  ;;  %v3007_v19 = vld [vmem:[%s10411_s9 + $0xa0] sm:$0xff]  ;;  %10559 = vst [vmem:[#allocation34_spill] sm:$0xff] %v8978_v30 }
 0x234   : > { %3277 = vperm.xlu1 %7402, %v3216_v22   ;;  %vm3189_vm12 = vmand %vm3137_vm11, %vm3163_vm6  ;;  %vm3114_vm8 = vcmp.ge.f32.partialorder %v3036_v38, 0.0  ;;  %vm3166_vm13 = vcmp.le.f32.partialorder %v3036_v38, 15.0  ;;  %v3037_v22 = vadd.f32 %v8688_v34, %v3007_v19  ;;  %v10560_v48 = vld [vmem:[#allocation39_spill] sm:$0xff]  ;;  %v6659_v42 = vpop.f32.mrb[77].mxu1  ;;  %v10563_v8 = vld [vmem:[#allocation41_spill] sm:$0xff] }
 0x235   : > { %v1201_v12 = vpop.f32.mrb[140].mxu0  ;;  %v3215_v58 = vsel %vm3189_vm12, 1, %v10536_v37  ;;  %vm3140_vm4 = vmand %vm3088_vm5, %vm3114_vm8  ;;  %v10562_v42 = vld [vmem:[#allocation40_spill] sm:$0xff] }
 0x236   : > { %v1250_v46 = vadd.f32 %v1201_v12, %v8527_v54  ;;  %v6497_v31 = vpop.f32.mrb[141].mxu0  ;;  %3274 = vperm.xlu0 %7401, %v3215_v58   ;;  %vm3192_vm6 = vmand %vm3140_vm4, %vm3166_vm13  ;;  %v3038_v54 = vadd.f32 %v8688_v34, %v3008_v9  ;;  %v3064_v58 = vld [vmem:[%s10412_s10 + $0xa8] sm:$0xff]  ;;  %v3063_v9 = vld [vmem:[%s10412_s10 + $0xa0] sm:$0xff]  ;;  %vm3115_vm13 = vcmp.ge.f32.partialorder %v3037_v22, 0.0 }
 0x237   : > { %v1204_v47 = vpop.f32.mrb[142].mxu0  ;;  %v3218_v11 = vsel %vm3192_vm6, 1, %v10536_v37  ;;  %vm3139_vm11 = vmand %vm3087_vm14, %vm3113_vm15  ;;  %vm3090_vm5 = vcmp.gt.f32.partialorder %v3064_v58, 0.5  ;;  %vm3089_vm4 = vcmp.gt.f32.partialorder %v3063_v9, 0.5  ;;  %v3009_v5 = vld [vmem:[%s10411_s9 + $0xb0] sm:$0xff]  ;;  %vm3167_vm6 = vcmp.le.f32.partialorder %v3037_v22, 15.0 }
 0x238   : > { %v1251_v38 = vadd.f32 %v1204_v47, %v8540_v27  ;;  %v8984_v12 = vadd.f32 %v10560_v48, %v1250_v46  ;;  %v6498_v31 = vpop.f32.mrb[143].mxu0  ;;  %3283 = vperm.xlu1 %7402, %v3218_v11   ;;  %vm3191_vm12 = vmand %vm3139_vm11, %vm3165_vm0  ;;  %v8996_v27 = vpop.f32.mrb[78].mxu1  ;;  %vm3116_vm8 = vcmp.ge.f32.partialorder %v3038_v54, 0.0  ;;  %vm3168_vm15 = vcmp.le.f32.partialorder %v3038_v54, 15.0  ;;  %v3010_v11 = vld [vmem:[%s10411_s9 + $0xb8] sm:$0xff]  ;;  %v3065_v58 = vld [vmem:[%s10412_s10 + $0xb0] sm:$0xff] }
 0x239   : > { %10561 = vst [vmem:[#allocation35_spill] sm:$0xff] %v8996_v27  ;;  %v3217_v19 = vsel %vm3191_vm12, 1, %v10536_v37  ;;  %vm3142_vm14 = vmand %vm3090_vm5, %vm3116_vm8  ;;  %v6660_v47 = vpop.f32.mrb[79].mxu1  ;;  %v3039_v54 = vadd.f32 %v8688_v34, %v3009_v5  ;;  %v3066_v31 = vld [vmem:[%s10412_s10 + $0xb8] sm:$0xff] }
 0x23a   : > { %v8999_v46 = vadd.f32 %v10562_v42, %v1251_v38  ;;  %6704 = vmatmul.mubr.msk.bf16.gmra.mrb[248].mxu0 %vm534_vm3, %v10563_v8  ;;  %3280 = vperm.xlu0 %7401, %v3217_v19   ;;  %vm3194_vm0 = vmand %vm3142_vm14, %vm3168_vm15  ;;  %v3040_v38 = vadd.f32 %v8688_v34, %v3010_v11  ;;  %vm3092_vm5 = vcmp.gt.f32.partialorder %v3066_v31, 0.5  ;;  %vm3091_vm14 = vcmp.gt.f32.partialorder %v3065_v58, 0.5  ;;  %v3012_v19 = vld [vmem:[%s10411_s9 + $0xc8] sm:$0xff]  ;;  %v3011_v47 = vld [vmem:[%s10411_s9 + $0xc0] sm:$0xff]  ;;  %v9030_v5 = vpop.f32.mrb[80].mxu1 }
 0x23b   : > { %6707 = vmatprep.mubr.msk.bf16.mxu0 %vm7585_vm1, %v10484_v44  ;;  %v3220_v48 = vsel %vm3194_vm0, 1, %v10536_v37  ;;  %vm3141_vm11 = vmand %vm3089_vm4, %vm3115_vm13  ;;  %vm3117_vm15 = vcmp.ge.f32.partialorder %v3039_v54, 0.0  ;;  %vm3169_vm0 = vcmp.le.f32.partialorder %v3039_v54, 15.0  ;;  %10564 = vst [vmem:[#allocation36_spill] sm:$0xff] %v9030_v5  ;;  %v10565_v31 = vld [vmem:[#allocation42_spill] sm:$0xff]  ;;  %v6663_v27 = vpop.f32.mrb[81].mxu1 }
 0x23c   : > { %3289 = vperm.xlu1 %7402, %v3220_v48   ;;  %vm3193_vm12 = vmand %vm3141_vm11, %vm3167_vm6  ;;  %vm3118_vm8 = vcmp.ge.f32.partialorder %v3040_v38, 0.0  ;;  %vm3170_vm13 = vcmp.le.f32.partialorder %v3040_v38, 15.0  ;;  %v3041_v48 = vadd.f32 %v8688_v34, %v3011_v47  ;;  %v10567_v27 = vld [vmem:[#allocation43_spill] sm:$0xff] }
 0x23d   : > { %v1209_v42 = vpop.f32.mrb[144].mxu0  ;;  %v3219_v9 = vsel %vm3193_vm12, 1, %v10536_v37  ;;  %vm3144_vm4 = vmand %vm3092_vm5, %vm3118_vm8 }
 0x23e   : > { %v1252_v22 = vadd.f32 %v1209_v42, %v8553_v53  ;;  %v6501_v8 = vpop.f32.mrb[145].mxu0  ;;  %3286 = vperm.xlu0 %7401, %v3219_v9   ;;  %vm3196_vm6 = vmand %vm3144_vm4, %vm3170_vm13  ;;  %v3042_v53 = vadd.f32 %v8688_v34, %v3012_v19  ;;  %v3068_v9 = vld [vmem:[%s10412_s10 + $0xc8] sm:$0xff]  ;;  %v3067_v34 = vld [vmem:[%s10412_s10 + $0xc0] sm:$0xff]  ;;  %vm3119_vm13 = vcmp.ge.f32.partialorder %v3041_v48, 0.0 }
 0x23f   : > { %v1212_v11 = vpop.f32.mrb[146].mxu0  ;;  %v3222_v30 = vsel %vm3196_vm6, 1, %v10536_v37  ;;  %vm3143_vm11 = vmand %vm3091_vm14, %vm3117_vm15  ;;  %vm3094_vm5 = vcmp.gt.f32.partialorder %v3068_v9, 0.5  ;;  %vm3093_vm4 = vcmp.gt.f32.partialorder %v3067_v34, 0.5  ;;  %vm3171_vm6 = vcmp.le.f32.partialorder %v3041_v48, 15.0  ;;  %v5233_v48 = vld [vmem:[%s10413_s11] sm:$0xff] }
 0x240   : > { %v1253_v38 = vadd.f32 %v1212_v11, %v8564_v26  ;;  %v9036_v42 = vadd.f32 %v10565_v31, %v1252_v22  ;;  %v6502_v8 = vpop.f32.mrb[147].mxu0  ;;  %3295 = vperm.xlu1 %7402, %v3222_v30   ;;  %vm3195_vm12 = vmand %vm3143_vm11, %vm3169_vm0  ;;  %v9048_v26 = vpop.f32.mrb[82].mxu1  ;;  %vm3120_vm8 = vcmp.ge.f32.partialorder %v3042_v53, 0.0  ;;  %vm3172_vm15 = vcmp.le.f32.partialorder %v3042_v53, 15.0  ;;  %v9056_v30 = vld [vmem:[#allocation2 + $0x60] sm:$0xff]  ;;  %v5234_v31 = vld [vmem:[%s10413_s11 + $0x8] sm:$0xff] }
 0x241   : > { %10566 = vst [vmem:[#allocation37_spill] sm:$0xff] %v9048_v26  ;;  %v3221_v58 = vsel %vm3195_vm12, 1, %v10536_v37  ;;  %vm3146_vm14 = vmand %vm3094_vm5, %vm3120_vm8  ;;  %v6664_v19 = vpop.f32.mrb[83].mxu1  ;;  %v2143_v54 = vrot.slane %v9056_v30, 4  ;;  %v10568_v8 = vrot.slane %v8472_v23, 4  ;;  %vm5254_vm5 = vcmp.gt.f32.partialorder %v5234_v31, 0.5 }
 0x242   : > { %v9051_v22 = vadd.f32 %v10567_v27, %v1253_v38  ;;  %6708 = vmatmul.mubr.msk.bf16.gmra.mrb[252].mxu0 %vm534_vm3, %v8498_v1  ;;  %3292 = vperm.xlu0 %7401, %v3221_v58   ;;  %vm3198_vm0 = vmand %vm3146_vm14, %vm3172_vm15  ;;  %v9074_v27 = vpop.f32.mrb[84].mxu1  ;;  %vm5253_vm8 = vcmp.gt.f32.partialorder %v5233_v48, 0.5  ;;  %v10570_v58 = vld [vmem:[#allocation44_spill] sm:$0xff] }
 0x243   : > { %6711 = vmatprep.mubr.msk.bf16.mxu0 %vm7585_vm1, %v10484_v44  ;;  %v3224_v47 = vsel %vm3198_vm0, 1, %v10536_v37  ;;  %vm3145_vm11 = vmand %vm3093_vm4, %vm3119_vm13  ;;  %v2144_v9 = vsel %vm2123_vm7, %v10568_v8, %v2143_v54  ;;  %10569 = vst [vmem:[#allocation38_spill] sm:$0xff] %v9074_v27  ;;  %v5313_v26 = vsel %vm5253_vm8, 1, %v10536_v37  ;;  %v9096_v48 = vld [vmem:[#allocation2 + $0x68] sm:$0xff] }
 0x244   : > { %3301 = vperm.xlu1 %7402, %v3224_v47   ;;  %vm3197_vm12 = vmand %vm3145_vm11, %vm3171_vm6  ;;  %v2145_v8 = vrot.slane %v9096_v48, 4 }
 0x245   : > { %v1217_v1 = vpop.f32.mrb[148].mxu0  ;;  %v3223_v38 = vsel %vm3197_vm12, 1, %v10536_v37 }
 0x246   : > { %v1254_v11 = vadd.f32 %v1217_v1, %v8571_v0  ;;  %v6505_v53 = vpop.f32.mrb[149].mxu0  ;;  %3298 = vperm.xlu0 %7401, %v3223_v38   ;;  %v6667_v1 = vpop.f32.mrb[85].mxu1 }
 0x247   : > { %v1220_v34 = vpop.f32.mrb[150].mxu0  ;;  %v5314_v53 = vsel %vm5254_vm5, 1, %v10536_v37  ;;  %v9082_v5 = vpop.f32.mrb[86].mxu1  ;;  %v5237_v1 = vld [vmem:[%s10413_s11 + $0x20] sm:$0xff] }
 0x248   : > { %v1255_v0 = vadd.f32 %v1220_v34, %v8582_v16  ;;  %v9078_v19 = vadd.f32 %v10570_v58, %v1254_v11  ;;  %v6506_v47 = vpop.f32.mrb[151].mxu0  ;;  %5337 = vperm.xlu1 %7402, %v5314_v53   ;;  %10571 = vst [vmem:[#allocation39_spill] sm:$0xff] %v9082_v5  ;;  %v5236_v16 = vld [vmem:[%s10413_s11 + $0x18] sm:$0xff]  ;;  %v5235_v11 = vld [vmem:[%s10413_s11 + $0x10] sm:$0xff]  ;;  %v6668_v31 = vpop.f32.mrb[87].mxu1  ;;  %v2146_v53 = vsel %vm2123_vm7, %v2143_v54, %v2145_v8  ;;  %vm5257_vm13 = vcmp.gt.f32.partialorder %v5237_v1, 0.5 }
 0x249   : > { %vm5256_vm4 = vcmp.gt.f32.partialorder %v5236_v16, 0.5  ;;  %vm5255_vm14 = vcmp.gt.f32.partialorder %v5235_v11, 0.5  ;;  %v5238_v47 = vld [vmem:[%s10413_s11 + $0x28] sm:$0xff]  ;;  %v9109_v16 = vpop.f32.mrb[88].mxu1  ;;  %v5317_v5 = vsel %vm5257_vm13, 1, %v10536_v37 }
 0x24a   : > { %v9085_v38 = vadd.f32 %v8520_v17, %v1255_v0  ;;  %6712 = vmatmul.mubr.msk.bf16.gmra.mrb[0].mxu0 %vm534_vm3, %v2144_v9  ;;  %5334 = vperm.xlu0 %7401, %v5313_v26   ;;  %v5316_v17 = vsel %vm5256_vm4, 1, %v10536_v37  ;;  %v5315_v9 = vsel %vm5255_vm14, 1, %v10536_v37  ;;  %vm5258_vm15 = vcmp.gt.f32.partialorder %v5238_v47, 0.5  ;;  %v9131_v47 = vld [vmem:[#allocation2 + $0x70] sm:$0xff] }
 0x24b   : > { %6715 = vmatprep.mubr.msk.bf16.mxu0 %vm7585_vm1, %v10484_v44  ;;  %v2147_v1 = vrot.slane %v9131_v47, 4 }
 0x24c   : > { %5343 = vperm.xlu1 %7402, %v5316_v17  }
 0x24d   : > { %v1225_v34 = vpop.f32.mrb[152].mxu0 }
 0x24e   : > { %v1256_v0 = vadd.f32 %v1225_v34, %v8589_v21  ;;  %v6509_v58 = vpop.f32.mrb[153].mxu0  ;;  %5340 = vperm.xlu0 %7401, %v5315_v9   ;;  %v10572_v21 = vld [vmem:[#allocation45_spill] sm:$0xff]  ;;  %v6671_v34 = vpop.f32.mrb[89].mxu1 }
 0x24f   : > { %v1228_v26 = vpop.f32.mrb[154].mxu0  ;;  %v5318_v58 = vsel %vm5258_vm15, 1, %v10536_v37  ;;  %v9117_v27 = vpop.f32.mrb[90].mxu1  ;;  %v5239_v9 = vld [vmem:[%s10413_s11 + $0x30] sm:$0xff] }
 0x250   : > { %v1257_v11 = vadd.f32 %v1228_v26, %v8594_v41  ;;  %v9113_v31 = vadd.f32 %v10572_v21, %v1256_v0  ;;  %v6510_v17 = vpop.f32.mrb[155].mxu0  ;;  %5349 = vperm.xlu1 %7402, %v5318_v58   ;;  %v5240_v41 = vld [vmem:[%s10413_s11 + $0x38] sm:$0xff]  ;;  %v6672_v0 = vpop.f32.mrb[91].mxu1  ;;  %vm5259_vm6 = vcmp.gt.f32.partialorder %v5239_v9, 0.5  ;;  %v2148_v58 = vsel %vm2123_vm7, %v2145_v8, %v2147_v1 }
 0x251   : > { %vm5260_vm0 = vcmp.gt.f32.partialorder %v5240_v41, 0.5  ;;  %v5319_v26 = vsel %vm5259_vm6, 1, %v10536_v37  ;;  %v5242_v17 = vld [vmem:[%s10413_s11 + $0x48] sm:$0xff]  ;;  %v2106_v9 = vld [vmem:[#allocation2 + $0x78] sm:$0xf] }
 0x252   : > { %v9120_v54 = vadd.f32 %v8542_v6, %v1257_v11  ;;  %6716 = vmatmul.mubr.msk.bf16.gmra.mrb[4].mxu0 %vm534_vm3, %v2146_v53  ;;  %5346 = vperm.xlu0 %7401, %v5317_v5   ;;  %v5320_v6 = vsel %vm5260_vm0, 1, %v10536_v37  ;;  %v5241_v5 = vld [vmem:[%s10413_s11 + $0x40] sm:$0xff]  ;;  %vm5262_vm11 = vcmp.gt.f32.partialorder %v5242_v17, 0.5  ;;  %v5244_v8 = vld [vmem:[%s10413_s11 + $0x58] sm:$0xff] }
 0x253   : > { %6719 = vmatprep.mubr.msk.bf16.mxu0 %vm7585_vm1, %v10484_v44  ;;  %vm5261_vm12 = vcmp.gt.f32.partialorder %v5241_v5, 0.5  ;;  %v5322_v0 = vsel %vm5262_vm11, 1, %v10536_v37  ;;  %vm5264_vm5 = vcmp.gt.f32.partialorder %v5244_v8, 0.5 }
 0x254   : > { %5355 = vperm.xlu1 %7402, %v5320_v6   ;;  %v5321_v6 = vsel %vm5261_vm12, 1, %v10536_v37  ;;  %v5324_v5 = vsel %vm5264_vm5, 1, %v10536_v37 }
 0x255   : > { %v1392_v53 = vpop.f32.mrb[156].mxu0 }
 0x256   : > { %v9137_v11 = vadd.f32 %v1392_v53, %v8603_v36  ;;  %v6515_v21 = vpop.f32.mrb[157].mxu0  ;;  %5352 = vperm.xlu0 %7401, %v5319_v26   ;;  %v2149_v26 = vrot.slane %v2106_v9, 4  ;;  %v5246_v9 = vld [vmem:[%s10413_s11 + $0x68] sm:$0xff] }
 0x257   : > { %v1395_v34 = vpop.f32.mrb[158].mxu0  ;;  %v9151_v53 = vpop.f32.mrb[92].mxu1  ;;  %vm5266_vm4 = vcmp.gt.f32.partialorder %v5246_v9, 0.5 }
 0x258   : > { %v9147_v41 = vadd.f32 %v1395_v34, %v8610_v7  ;;  %v6516_v36 = vpop.f32.mrb[159].mxu0  ;;  %10573 = vst [vmem:[#allocation40_spill] sm:$0xff] %v9151_v53  ;;  %5361 = vperm.xlu1 %7402, %v5322_v0   ;;  %v6731_v21 = vpop.f32.mrb[93].mxu1  ;;  %v5243_v7 = vld [vmem:[%s10413_s11 + $0x50] sm:$0xff] }
 0x259   : > { %v9162_v17 = vpop.f32.mrb[94].mxu1  ;;  %vm5263_vm8 = vcmp.gt.f32.partialorder %v5243_v7, 0.5  ;;  %v2150_v7 = vsel %vm2123_vm7, %v2147_v1, %v2149_v26  ;;  %v5248_v1 = vld [vmem:[%s10413_s11 + $0x78] sm:$0xff] }
 0x25a   : > { %6720 = vmatmul.mubr.msk.bf16.gmra.mrb[8].mxu0 %vm534_vm3, %v2148_v58  ;;  %5358 = vperm.xlu0 %7401, %v5321_v6   ;;  %10574 = vst [vmem:[#allocation41_spill] sm:$0xff] %v9162_v17  ;;  %v5323_v34 = vsel %vm5263_vm8, 1, %v10536_v37  ;;  %v6732_v58 = vpop.f32.mrb[95].mxu1  ;;  %v5245_v6 = vld [vmem:[%s10413_s11 + $0x60] sm:$0xff]  ;;  %vm5268_vm15 = vcmp.gt.f32.partialorder %v5248_v1, 0.5  ;;  %v10576_v1 = vrot.slane %v8231_v51, 5 }
 0x25b   : > { %6723 = vmatprep.mubr.msk.bf16.mxu0 %vm7585_vm1, %v10484_v44  ;;  %vm5265_vm14 = vcmp.gt.f32.partialorder %v5245_v6, 0.5  ;;  %v2690_v58 = vld [vmem:[#allocation2 + $0x10] sm:$0xe0]  ;;  %v5328_v9 = vsel %vm5268_vm15, 1, %v10536_v37  ;;  %v5252_v51 = vld [vmem:[%s10413_s11 + $0x98] sm:$0xff]  ;;  %vm3463_vm15 = vcmask 130048  }
 0x25c   : > { %5367 = vperm.xlu1 %7402, %v5324_v5   ;;  %v2696_v26 = vrot.slane %v2690_v58, 5  ;;  %v5249_v58 = vld [vmem:[%s10413_s11 + $0x80] sm:$0xff]  ;;  %vm5272_vm11 = vcmp.gt.f32.partialorder %v5252_v51, 0.5 }
 0x25d   : > { %v1400_v36 = vpop.f32.mrb[160].mxu0  ;;  %vm5269_vm6 = vcmp.gt.f32.partialorder %v5249_v58, 0.5 }
 0x25e   : > { %v9167_v0 = vadd.f32 %v1400_v36, %v8624_v24  ;;  %v6519_v21 = vpop.f32.mrb[161].mxu0  ;;  %5364 = vperm.xlu0 %7401, %v5323_v34   ;;  %v5326_v36 = vsel %vm5266_vm4, 1, %v10536_v37 }
 0x25f   : > { %v1403_v8 = vpop.f32.mrb[162].mxu0  ;;  %v5325_v21 = vsel %vm5265_vm14, 1, %v10536_v37  ;;  %v9181_v17 = vpop.f32.mrb[96].mxu1 }
 0x260   : > { %v9177_v5 = vadd.f32 %v1403_v8, %v8630_v63  ;;  %v6520_v24 = vpop.f32.mrb[163].mxu0  ;;  %5373 = vperm.xlu1 %7402, %v5326_v36   ;;  %v6735_v53 = vpop.f32.mrb[97].mxu1  ;;  %v5247_v63 = vld [vmem:[%s10413_s11 + $0x70] sm:$0xff]  ;;  %v5250_v36 = vld [vmem:[%s10413_s11 + $0x88] sm:$0xff] }
 0x261   : > { %v9192_v34 = vpop.f32.mrb[98].mxu1  ;;  %vm5267_vm13 = vcmp.gt.f32.partialorder %v5247_v63, 0.5  ;;  %v2698_v63 = vsel %vm2695_vm10, %v2696_v26, %v10576_v1  ;;  %vm5270_vm0 = vcmp.gt.f32.partialorder %v5250_v36, 0.5  ;;  %v5251_v26 = vld [vmem:[%s10413_s11 + $0x90] sm:$0xff] }
 0x262   : > { %6724 = vmatmul.mubr.msk.bf16.gmra.mrb[12].mxu0 %vm534_vm3, %v2150_v7  ;;  %5370 = vperm.xlu0 %7401, %v5325_v21   ;;  %10575 = vst [vmem:[#allocation42_spill] sm:$0xff] %v9192_v34  ;;  %v5327_v53 = vsel %vm5267_vm13, 1, %v10536_v37  ;;  %v6736_v6 = vpop.f32.mrb[99].mxu1  ;;  %vm5271_vm12 = vcmp.gt.f32.partialorder %v5251_v26, 0.5 }
 0x263   : > { %6783 = vmatprep.mubr.msk.bf16.mxu0 %vm7585_vm1, %v10484_v44  ;;  %v5330_v6 = vsel %vm5270_vm0, 1, %v10536_v37 }
 0x264   : > { %5379 = vperm.xlu1 %7402, %v5328_v9  }
 0x265   : > { %v1408_v8 = vpop.f32.mrb[164].mxu0 }
 0x266   : > { %v1499_v7 = vadd.f32 %v1408_v8, %v8645_v29  ;;  %v6523_v24 = vpop.f32.mrb[165].mxu0  ;;  %5376 = vperm.xlu0 %7401, %v5327_v53   ;;  %v5329_v8 = vsel %vm5269_vm6, 1, %v10536_v37  ;;  %v5332_v53 = vsel %vm5272_vm11, 1, %v10536_v37 }
 0x267   : > { %v1411_v21 = vpop.f32.mrb[166].mxu0  ;;  %v9209_v24 = vpop.f32.mrb[100].mxu1 }
 0x268   : > { %v1500_v9 = vadd.f32 %v1411_v21, %v8650_v33  ;;  %v6524_v29 = vpop.f32.mrb[167].mxu0  ;;  %5385 = vperm.xlu1 %7402, %v5330_v6   ;;  %v6739_v34 = vpop.f32.mrb[101].mxu1 }
 0x269   : > { %v9220_v33 = vpop.f32.mrb[102].mxu1  ;;  %v5331_v34 = vsel %vm5271_vm12, 1, %v10536_v37 }
 0x26a   : > { %6784 = vmatmul.mubr.msk.bf16.vlgmr.msra.gmra.mrb[16].mxu0 %vm534_vm3, %v2698_v63  ;;  %5382 = vperm.xlu0 %7401, %v5329_v8   ;;  %v6740_v36 = vpop.f32.mrb[103].mxu1 }
 0x26b   : > { %6787 = vmatprep.mubr.msk.bf16.mxu0 %vm7585_vm1, %v10484_v44 }
 0x26c   : > { %5391 = vperm.xlu1 %7402, %v5332_v53  }
 0x26d   : > { %v1726_v58 = vpop.f32.mrb[168].mxu0 }
 0x26e   : > { %v1829_v21 = vadd.f32 %v1726_v58, %v9137_v11  ;;  %v6569_v1 = vpop.f32.mrb[169].mxu0  ;;  %5388 = vperm.xlu0 %7401, %v5331_v34  }
 0x26f   : > { %v1729_v63 = vpop.f32.mrb[170].mxu0  ;;  %v9229_v51 = vpop.f32.mrb[104].mxu1 }
 0x270   : > { %v1830_v29 = vadd.f32 %v1729_v63, %v9147_v41  ;;  %v9227_v6 = vadd.f32 %v8607_v39, %v1829_v21  ;;  %v6570_v8 = vpop.f32.mrb[171].mxu0  ;;  %v6743_v37 = vpop.f32.mrb[105].mxu1 }
 0x271   : > { %v9238_v11 = vpop.f32.mrb[106].mxu1 }
 0x272   : > { %v9232_v26 = vadd.f32 %v8612_v15, %v1830_v29  ;;  %6788 = vmatmul.mubr.msk.bf16.gmra.mrb[20].mxu0 %vm534_vm3, %v8617_v49  ;;  %v6744_v53 = vpop.f32.mrb[107].mxu1 }
 0x273   : > { %6791 = vmatprep.mubr.msk.bf16.mxu0 %vm7585_vm1, %v10484_v44 }
 0x275   : > { %v1734_v41 = vpop.f32.mrb[172].mxu0 }
 0x276   : > { %v1831_v39 = vadd.f32 %v1734_v41, %v9167_v0  ;;  %v6573_v34 = vpop.f32.mrb[173].mxu0 }
 0x277   : > { %v1737_v36 = vpop.f32.mrb[174].mxu0  ;;  %v9245_v1 = vpop.f32.mrb[108].mxu1 }
 0x278   : > { %v1832_v58 = vadd.f32 %v1737_v36, %v9177_v5  ;;  %v9243_v15 = vadd.f32 %v8627_v59, %v1831_v39  ;;  %v6574_v21 = vpop.f32.mrb[175].mxu0  ;;  %v6747_v63 = vpop.f32.mrb[109].mxu1 }
 0x279   : > { %v9254_v0 = vpop.f32.mrb[110].mxu1 }
 0x27a   : > { %v9248_v49 = vadd.f32 %v8632_v25, %v1832_v58  ;;  %6792 = vmatmul.mubr.msk.bf16.gmra.mrb[24].mxu0 %vm534_vm3, %v8635_v2  ;;  %v6748_v29 = vpop.f32.mrb[111].mxu1 }
 0x27b   : > { %6795 = vmatprep.mubr.msk.bf16.mxu0 %vm7585_vm1, %v10484_v44 }
 0x27d   : > { %v1742_v5 = vpop.f32.mrb[176].mxu0 }
 0x27e   : > { %v1833_v8 = vadd.f32 %v1742_v5, %v1499_v7  ;;  %v6577_v59 = vpop.f32.mrb[177].mxu0 }
 0x27f   : > { %v1745_v37 = vpop.f32.mrb[178].mxu0  ;;  %v9259_v39 = vpop.f32.mrb[112].mxu1 }
 0x280   : > { %v1834_v53 = vadd.f32 %v1745_v37, %v1500_v9  ;;  %v9257_v41 = vadd.f32 %v8647_v43, %v1833_v8  ;;  %v6578_v25 = vpop.f32.mrb[179].mxu0  ;;  %v6751_v34 = vpop.f32.mrb[113].mxu1  ;;  %v10577_v37 = vld [vmem:[#allocation24_spill] sm:$0xff] }
 0x281   : > { %v9268_v7 = vpop.f32.mrb[114].mxu1  ;;  %v10578_v34 = vld [vmem:[#allocation27_spill] sm:$0xff] }
 0x282   : > { %v9262_v2 = vadd.f32 %v8653_v45, %v1834_v53  ;;  %6796 = vmatmul.mubr.msk.bf16.gmra.mrb[28].mxu0 %vm534_vm3, %v8656_v32  ;;  %v6752_v36 = vpop.f32.mrb[115].mxu1 }
 0x283   : > { %6799 = vmatprep.mubr.msk.bf16.mxu0 %vm7585_vm1, %v10484_v44 }
 0x285   : > { %v1750_v9 = vpop.f32.mrb[180].mxu0 }
 0x286   : > { %v1835_v43 = vadd.f32 %v1750_v9, %v8668_v13  ;;  %v6581_v58 = vpop.f32.mrb[181].mxu0  ;;  %v10579_v9 = vld [vmem:[#allocation23_spill] sm:$0xff] }
 0x287   : > { %v1753_v21 = vpop.f32.mrb[182].mxu0  ;;  %v9275_v5 = vpop.f32.mrb[116].mxu1 }
 0x288   : > { %v1836_v63 = vadd.f32 %v1753_v21, %v8676_v57  ;;  %v9273_v45 = vadd.f32 %v8664_v14, %v1835_v43  ;;  %v6582_v29 = vpop.f32.mrb[183].mxu0  ;;  %v6755_v8 = vpop.f32.mrb[117].mxu1 }
 0x289   : > { %v9284_v13 = vpop.f32.mrb[118].mxu1 }
 0x28a   : > { %v9278_v32 = vadd.f32 %v8670_v56, %v1836_v63  ;;  %6800 = vmatmul.mubr.msk.bf16.gmra.mrb[32].mxu0 %vm534_vm3, %v8673_v10  ;;  %v6756_v59 = vpop.f32.mrb[119].mxu1  ;;  %v10580_v10 = vld [vmem:[#allocation25_spill] sm:$0xff]  ;;  %v10581_v63 = vld [vmem:[#allocation26_spill] sm:$0xff] }
 0x28b   : > { %6803 = vmatprep.mubr.msk.bf16.mxu0 %vm7585_vm1, %v10484_v44 }
 0x28d   : > { %v1758_v57 = vpop.f32.mrb[184].mxu0 }
 0x28e   : > { %v1837_v14 = vadd.f32 %v1758_v57, %v10577_v37  ;;  %v6585_v53 = vpop.f32.mrb[185].mxu0 }
 0x28f   : > { %v1761_v25 = vpop.f32.mrb[186].mxu0  ;;  %v9291_v58 = vpop.f32.mrb[120].mxu1  ;;  %v7403_v53 = vld [vmem:[%s10405_s3 + $0x8] sm:$0xff]  }
 0x290   : > { %v1838_v36 = vadd.f32 %v1761_v25, %v10578_v34  ;;  %v9289_v56 = vadd.f32 %v10579_v9, %v1837_v14  ;;  %v6586_v43 = vpop.f32.mrb[187].mxu0  ;;  %v6759_v29 = vpop.f32.mrb[121].mxu1  ;;  %6835 = vmatprep.subr.bf16.mxu1 %v7403_v53 }
 0x291   : > { %v9300_v8 = vpop.f32.mrb[122].mxu1  ;;  %6836 = vmatpush3.bf16.msra.mxu1 %v7403_v53 }
 0x292   : > { %v9294_v21 = vadd.f32 %v10580_v10, %v1838_v36  ;;  %6804 = vmatmul.mubr.msk.bf16.gmra.mrb[36].mxu0 %vm534_vm3, %v10581_v63  ;;  %v6760_v59 = vpop.f32.mrb[123].mxu1 }
 0x293   : > { %6807 = vmatprep.mubr.msk.bf16.mxu0 %vm7585_vm1, %v10484_v44 }
 0x295   : > { %v1766_v57 = vpop.f32.mrb[188].mxu0 }
 0x296   : > { %v1839_v37 = vadd.f32 %v1766_v57, %v8753_v20  ;;  %v6589_v14 = vpop.f32.mrb[189].mxu0 }
 0x297   : > { %v1769_v25 = vpop.f32.mrb[190].mxu0  ;;  %v9310_v43 = vpop.f32.mrb[124].mxu1 }
 0x298   : > { %v1840_v34 = vadd.f32 %v1769_v25, %v8775_v28  ;;  %v9308_v36 = vadd.f32 %v8747_v50, %v1839_v37  ;;  %v6590_v9 = vpop.f32.mrb[191].mxu0  ;;  %v6763_v20 = vpop.f32.mrb[125].mxu1 }
 0x299   : > { %v9319_v63 = vpop.f32.mrb[126].mxu1 }
 0x29a   : > { %v9313_v10 = vadd.f32 %v8765_v40, %v1840_v34  ;;  %6808 = vmatmul.mubr.msk.bf16.gmra.mrb[40].mxu0 %vm534_vm3, %v8772_v4  ;;  %v6764_v28 = vpop.f32.mrb[127].mxu1  ;;  %v10582_v4 = vld [vmem:[#allocation28_spill] sm:$0xff]  ;;  %v10583_v34 = vld [vmem:[#allocation29_spill] sm:$0xff] }
 0x29b   : > { %6811 = vmatprep.mubr.msk.bf16.mxu0 %vm7585_vm1, %v10484_v44 }
 0x29d   : > { %v1774_v50 = vpop.f32.mrb[192].mxu0 }
 0x29e   : > { %v1841_v29 = vadd.f32 %v1774_v50, %v8813_v52  ;;  %v6593_v59 = vpop.f32.mrb[193].mxu0 }
 0x29f   : > { %v1777_v57 = vpop.f32.mrb[194].mxu0  ;;  %v9326_v53 = vpop.f32.mrb[128].mxu1 }
 0x2a0   : > { %v1842_v37 = vadd.f32 %v1777_v57, %v8835_v35  ;;  %v9324_v40 = vadd.f32 %v8807_v55, %v1841_v29  ;;  %v6594_v14 = vpop.f32.mrb[195].mxu0  ;;  %v6767_v9 = vpop.f32.mrb[129].mxu1 }
 0x2a1   : > { %v9335_v52 = vpop.f32.mrb[130].mxu1  ;;  %v10585_v14 = vld [vmem:[#allocation30_spill] sm:$0xff] }
 0x2a2   : > { %v9329_v25 = vadd.f32 %v10582_v4, %v1842_v37  ;;  %6812 = vmatmul.mubr.msk.bf16.gmra.mrb[44].mxu0 %vm534_vm3, %v10583_v34  ;;  %v6768_v20 = vpop.f32.mrb[131].mxu1  ;;  %v10586_v34 = vld [vmem:[#allocation31_spill] sm:$0xff] }
 0x2a3   : > { %6815 = vmatprep.mubr.msk.bf16.mxu0 %vm7585_vm1, %v10484_v44 }
 0x2a5   : > { %v1782_v35 = vpop.f32.mrb[196].mxu0 }
 0x2a6   : > { %v1843_v55 = vadd.f32 %v1782_v35, %v8873_v60  ;;  %v6597_v28 = vpop.f32.mrb[197].mxu0  ;;  %v2715_v60 = vrot.slane %v9056_v30, 5  ;;  %v10590_v30 = vld [vmem:[#allocation33_spill] sm:$0xff] }
 0x2a7   : > { %v1785_v50 = vpop.f32.mrb[198].mxu0  ;;  %v9342_v37 = vpop.f32.mrb[132].mxu1 }
 0x2a8   : > { %v1844_v29 = vadd.f32 %v1785_v50, %v8895_v61  ;;  %v9340_v59 = vadd.f32 %v8867_v18, %v1843_v55  ;;  %v6598_v57 = vpop.f32.mrb[199].mxu0  ;;  %10584 = vst [vmem:[#allocation43_spill] sm:$0xff] %v9342_v37  ;;  %v6771_v9 = vpop.f32.mrb[133].mxu1  ;;  %v10588_v50 = vrot.slane %v8472_v23, 5  ;;  %v2717_v23 = vrot.slane %v9096_v48, 5 }
 0x2a9   : > { %v9352_v20 = vpop.f32.mrb[134].mxu1 }
 0x2aa   : > { %v9345_v4 = vadd.f32 %v10585_v14, %v1844_v29  ;;  %6816 = vmatmul.mubr.msk.bf16.gmra.mrb[48].mxu0 %vm534_vm3, %v10586_v34  ;;  %10587 = vst [vmem:[#allocation44_spill] sm:$0xff] %v9352_v20  ;;  %v6772_v61 = vpop.f32.mrb[135].mxu1  ;;  %v2716_v29 = vsel %vm2695_vm10, %v10588_v50, %v2715_v60  ;;  %v10589_v14 = vld [vmem:[#allocation32_spill] sm:$0xff]  ;;  %v2718_v50 = vsel %vm2695_vm10, %v2715_v60, %v2717_v23 }
 0x2ab   : > { %6819 = vmatprep.mubr.msk.bf16.mxu0 %vm7585_vm1, %v10484_v44 }
 0x2ad   : > { %v1790_v18 = vpop.f32.mrb[200].mxu0 }
 0x2ae   : > { %v1845_v35 = vadd.f32 %v1790_v18, %v8932_v62  ;;  %v6601_v55 = vpop.f32.mrb[201].mxu0 }
 0x2af   : > { %v1793_v28 = vpop.f32.mrb[202].mxu0  ;;  %v9362_v37 = vpop.f32.mrb[136].mxu1 }
 0x2b0   : > { %v1846_v57 = vadd.f32 %v1793_v28, %v8947_v3  ;;  %v9360_v34 = vadd.f32 %v10589_v14, %v1845_v35  ;;  %v6602_v9 = vpop.f32.mrb[203].mxu0  ;;  %v6775_v62 = vpop.f32.mrb[137].mxu1  ;;  %v10591_v14 = vld [vmem:[#allocation34_spill] sm:$0xff] }
 0x2b1   : > { %v9371_v61 = vpop.f32.mrb[138].mxu1  ;;  %v10593_v62 = vld [vmem:[#allocation35_spill] sm:$0xff] }
 0x2b2   : > { %v9365_v20 = vadd.f32 %v10590_v30, %v1846_v57  ;;  %6820 = vmatmul.mubr.msk.bf16.gmra.mrb[52].mxu0 %vm534_vm3, %v2716_v29  ;;  %v6776_v3 = vpop.f32.mrb[139].mxu1 }
 0x2b3   : > { %6823 = vmatprep.mubr.msk.bf16.mxu0 %vm7585_vm1, %v10484_v44 }
 0x2b5   : > { %v1798_v18 = vpop.f32.mrb[204].mxu0 }
 0x2b6   : > { %v1847_v35 = vadd.f32 %v1798_v18, %v8984_v12  ;;  %v6605_v55 = vpop.f32.mrb[205].mxu0  ;;  %v2719_v12 = vrot.slane %v9131_v47, 5  ;;  %v7416_v47 = vld [vmem:[#allocation2 + $0x78] sm:$0x1f] }
 0x2b7   : > { %v1801_v28 = vpop.f32.mrb[206].mxu0  ;;  %v9379_v30 = vpop.f32.mrb[140].mxu1 }
 0x2b8   : > { %v1848_v57 = vadd.f32 %v1801_v28, %v8999_v46  ;;  %v9377_v29 = vadd.f32 %v10591_v14, %v1847_v35  ;;  %v6606_v9 = vpop.f32.mrb[207].mxu0  ;;  %10592 = vst [vmem:[#allocation45_spill] sm:$0xff] %v9379_v30  ;;  %v6779_v3 = vpop.f32.mrb[141].mxu1  ;;  %v2720_v14 = vsel %vm2695_vm10, %v2717_v23, %v2719_v12 }
 0x2b9   : > { %v9388_v60 = vpop.f32.mrb[142].mxu1  ;;  %v10594_v9 = vld [vmem:[#allocation36_spill] sm:$0xff]  ;;  %v10595_v3 = vld [vmem:[#allocation37_spill] sm:$0xff] }
 0x2ba   : > { %v9382_v48 = vadd.f32 %v10593_v62, %v1848_v57  ;;  %6824 = vmatmul.mubr.msk.bf16.gmra.mrb[56].mxu0 %vm534_vm3, %v2718_v50  ;;  %v6780_v46 = vpop.f32.mrb[143].mxu1 }
 0x2bb   : > { %6827 = vmatprep.mubr.msk.bf16.mxu0 %vm7585_vm1, %v10484_v44  ;;  %v2721_v46 = vrot.slane %v7416_v47, 5 }
 0x2bd   : > { %v1806_v18 = vpop.f32.mrb[208].mxu0 }
 0x2be   : > { %v1849_v35 = vadd.f32 %v1806_v18, %v9036_v42  ;;  %v6609_v55 = vpop.f32.mrb[209].mxu0 }
 0x2bf   : > { %v1809_v28 = vpop.f32.mrb[210].mxu0 }
 0x2c0   : > { %v1850_v57 = vadd.f32 %v1809_v28, %v9051_v22  ;;  %v9394_v50 = vadd.f32 %v10594_v9, %v1849_v35  ;;  %v6610_v62 = vpop.f32.mrb[211].mxu0  ;;  %v2722_v22 = vsel %vm2695_vm10, %v2719_v12, %v2721_v46  ;;  %v10596_v28 = vld [vmem:[#allocation38_spill] sm:$0xff] }
 0x2c1   : > { %v10597_v62 = vld [vmem:[#allocation39_spill] sm:$0xff] }
 0x2c2   : > { %v9397_v30 = vadd.f32 %v10595_v3, %v1850_v57  ;;  %6828 = vmatmul.mubr.msk.bf16.gmra.mrb[60].mxu0 %vm534_vm3, %v2720_v14 }
 0x2c3   : > { %6831 = vmatprep.mubr.msk.bf16.mxu0 %vm7585_vm1, %v10484_v44 }
 0x2c5   : > { %v1814_v42 = vpop.f32.mrb[212].mxu0 }
 0x2c6   : > { %v1851_v18 = vadd.f32 %v1814_v42, %v9078_v19  ;;  %v6613_v23 = vpop.f32.mrb[213].mxu0 }
 0x2c7   : > { %v1817_v55 = vpop.f32.mrb[214].mxu0 }
 0x2c8   : > { %v1852_v35 = vadd.f32 %v1817_v55, %v9085_v38  ;;  %v9406_v9 = vadd.f32 %v10596_v28, %v1851_v18  ;;  %v6614_v57 = vpop.f32.mrb[215].mxu0  ;;  %v10598_v28 = vld [vmem:[#allocation40_spill] sm:$0xff] }
 0x2ca   : > { %v9409_v14 = vadd.f32 %v10597_v62, %v1852_v35  ;;  %6832 = vmatmul.mubr.msk.bf16.gmra.mrb[64].mxu0 %vm534_vm3, %v2722_v22  ;;  %v10599_v62 = vld [vmem:[#allocation41_spill] sm:$0xff] }
 0x2cd   : > { %v1822_v3 = vpop.f32.mrb[216].mxu0 }
 0x2ce   : > { %v1853_v44 = vadd.f32 %v1822_v3, %v9113_v31  ;;  %v6617_v47 = vpop.f32.mrb[217].mxu0 }
 0x2cf   : > { %v1825_v19 = vpop.f32.mrb[218].mxu0 }
 0x2d0   : > { %v1854_v42 = vadd.f32 %v1825_v19, %v9120_v54  ;;  %v9415_v12 = vadd.f32 %v9109_v16, %v1853_v44  ;;  %v6618_v38 = vpop.f32.mrb[219].mxu0 }
 0x2d2   : > { %v9418_v46 = vadd.f32 %v9117_v27, %v1854_v42  ;;  %v10600_v42 = vld [vmem:[#allocation42_spill] sm:$0xff] }
 0x2d5   : > { %v2227_v18 = vpop.f32.mrb[220].mxu0 }
 0x2d6   : > { %v2330_v23 = vadd.f32 %v2227_v18, %v9227_v6  ;;  %v6677_v55 = vpop.f32.mrb[221].mxu0 }
 0x2d7   : > { %v2230_v35 = vpop.f32.mrb[222].mxu0 }
 0x2d8   : > { %v2331_v22 = vadd.f32 %v2230_v35, %v9232_v26  ;;  %v9423_v31 = vadd.f32 %v10598_v28, %v2330_v23  ;;  %v6678_v57 = vpop.f32.mrb[223].mxu0 }
 0x2da   : > { %v9426_v54 = vadd.f32 %v10599_v62, %v2331_v22 }
 0x2dd   : > { %v2235_v16 = vpop.f32.mrb[224].mxu0 }
 0x2de   : > { %v2332_v3 = vadd.f32 %v2235_v16, %v9243_v15  ;;  %v6681_v44 = vpop.f32.mrb[225].mxu0 }
 0x2df   : > { %v2238_v27 = vpop.f32.mrb[226].mxu0 }
 0x2e0   : > { %v2333_v47 = vadd.f32 %v2238_v27, %v9248_v49  ;;  %v9431_v6 = vadd.f32 %v9181_v17, %v2332_v3  ;;  %v6682_v19 = vpop.f32.mrb[227].mxu0 }
 0x2e2   : > { %v9434_v26 = vadd.f32 %v10600_v42, %v2333_v47 }
 0x2e5   : > { %v2243_v38 = vpop.f32.mrb[228].mxu0 }
 0x2e6   : > { %v2334_v18 = vadd.f32 %v2243_v38, %v9257_v41  ;;  %v6685_v23 = vpop.f32.mrb[229].mxu0 }
 0x2e7   : > { %v2246_v55 = vpop.f32.mrb[230].mxu0 }
 0x2e8   : > { %v2335_v35 = vadd.f32 %v2246_v55, %v9262_v2  ;;  %v9439_v15 = vadd.f32 %v9209_v24, %v2334_v18  ;;  %v6686_v22 = vpop.f32.mrb[231].mxu0 }
 0x2ea   : > { %v9442_v49 = vadd.f32 %v9220_v33, %v2335_v35 }
 0x2ed   : > { %v2251_v17 = vpop.f32.mrb[232].mxu0 }
 0x2ee   : > { %v2336_v28 = vadd.f32 %v2251_v17, %v9273_v45  ;;  %v6689_v57 = vpop.f32.mrb[233].mxu0 }
 0x2ef   : > { %v2254_v62 = vpop.f32.mrb[234].mxu0 }
 0x2f0   : > { %v2337_v16 = vadd.f32 %v2254_v62, %v9278_v32  ;;  %v9447_v41 = vadd.f32 %v9229_v51, %v2336_v28  ;;  %v6690_v3 = vpop.f32.mrb[235].mxu0 }
 0x2f2   : > { %v9450_v2 = vadd.f32 %v9238_v11, %v2337_v16 }
 0x2f5   : > { %v2259_v24 = vpop.f32.mrb[236].mxu0 }
 0x2f6   : > { %v2338_v44 = vadd.f32 %v2259_v24, %v9289_v56  ;;  %v6693_v27 = vpop.f32.mrb[237].mxu0 }
 0x2f7   : > { %v2262_v33 = vpop.f32.mrb[238].mxu0 }
 0x2f8   : > { %v2339_v47 = vadd.f32 %v2262_v33, %v9294_v21  ;;  %v9455_v45 = vadd.f32 %v9245_v1, %v2338_v44  ;;  %v6694_v19 = vpop.f32.mrb[239].mxu0  ;;  %v9471_v1 = vld [vmem:[%s10405_s3] sm:$0xff]  }
 0x2f9   : > { %6857 = vmatprep.subr.bf16.mxu1 %v9471_v1 }
 0x2fa   : > { %v9458_v32 = vadd.f32 %v9254_v0, %v2339_v47 }
 0x2fd   : > { %v2267_v51 = vpop.f32.mrb[240].mxu0 }
 0x2fe   : > { %v2340_v42 = vadd.f32 %v2267_v51, %v9308_v36  ;;  %v6697_v38 = vpop.f32.mrb[241].mxu0 }
 0x2ff   : > { %v2270_v11 = vpop.f32.mrb[242].mxu0 }
 0x300   : > { %v2341_v18 = vadd.f32 %v2270_v11, %v9313_v10  ;;  %v9463_v56 = vadd.f32 %v9259_v39, %v2340_v42  ;;  %v6698_v23 = vpop.f32.mrb[243].mxu0 }
 0x301   : > { %v10601_v23 = vld [vmem:[#allocation43_spill] sm:$0xff] }
 0x302   : > { %v9466_v21 = vadd.f32 %v9268_v7, %v2341_v18 }
 0x305   : > { %v2275_v0 = vpop.f32.mrb[244].mxu0 }
 0x306   : > { %v2342_v55 = vadd.f32 %v2275_v0, %v9324_v40  ;;  %v6701_v36 = vpop.f32.mrb[245].mxu0 }
 0x307   : > { %v2278_v35 = vpop.f32.mrb[246].mxu0 }
 0x308   : > { %v2343_v10 = vadd.f32 %v2278_v35, %v9329_v25  ;;  %v9477_v39 = vadd.f32 %v9275_v5, %v2342_v55  ;;  %v6702_v22 = vpop.f32.mrb[247].mxu0  ;;  %v10602_v55 = vld [vmem:[#allocation44_spill] sm:$0xff] }
 0x30a   : > { %v9480_v7 = vadd.f32 %v9284_v13, %v2343_v10 }
 0x30d   : > { %v2283_v17 = vpop.f32.mrb[248].mxu0 }
 0x30e   : > { %v2344_v28 = vadd.f32 %v2283_v17, %v9340_v59  ;;  %v6705_v57 = vpop.f32.mrb[249].mxu0 }
 0x30f   : > { %v2286_v62 = vpop.f32.mrb[250].mxu0 }
 0x310   : > { %v2345_v40 = vadd.f32 %v2286_v62, %v9345_v4  ;;  %v9485_v16 = vadd.f32 %v9291_v58, %v2344_v28  ;;  %v6706_v3 = vpop.f32.mrb[251].mxu0 }
 0x311   : > { %v10603_v3 = vld [vmem:[#allocation45_spill] sm:$0xff] }
 0x312   : > { %v9488_v25 = vadd.f32 %v9300_v8, %v2345_v40 }
 0x315   : > { %v2291_v5 = vpop.f32.mrb[252].mxu0 }
 0x316   : > { %v2346_v24 = vadd.f32 %v2291_v5, %v9360_v34  ;;  %v6709_v44 = vpop.f32.mrb[253].mxu0 }
 0x317   : > { %v2294_v13 = vpop.f32.mrb[254].mxu0 }
 0x318   : > { %v2347_v27 = vadd.f32 %v2294_v13, %v9365_v20  ;;  %v9493_v59 = vadd.f32 %v9310_v43, %v2346_v24  ;;  %v6710_v33 = vpop.f32.mrb[255].mxu0 }
 0x31a   : > { %v9496_v4 = vadd.f32 %v9319_v63, %v2347_v27 }
 0x31d   : > { %v2299_v58 = vpop.f32.mrb[0].mxu0 }
 0x31e   : > { %v2348_v47 = vadd.f32 %v2299_v58, %v9377_v29  ;;  %v6713_v19 = vpop.f32.mrb[1].mxu0 }
 0x31f   : > { %v2302_v8 = vpop.f32.mrb[2].mxu0  ;;  %v3233_v19 = vpop.permute.xlu1 %3232 }
 0x320   : > { %v2349_v51 = vadd.f32 %v2302_v8, %v9382_v48  ;;  %v9501_v34 = vadd.f32 %v9326_v53, %v2348_v47  ;;  %v6714_v42 = vpop.f32.mrb[3].mxu0  ;;  %vm3305_vm5 = vcmp.eq.s32.totalorder %v3233_v19, 1 }
 0x322   : > { %v9504_v20 = vadd.f32 %v9335_v52, %v2349_v51 }
 0x325   : > { %v2307_v43 = vpop.f32.mrb[4].mxu0 }
 0x326   : > { %v2350_v38 = vadd.f32 %v2307_v43, %v9394_v50  ;;  %v6717_v11 = vpop.f32.mrb[5].mxu0 }
 0x327   : > { %v2310_v63 = vpop.f32.mrb[6].mxu0 }
 0x328   : > { %v2351_v18 = vadd.f32 %v2310_v63, %v9397_v30  ;;  %v9509_v29 = vadd.f32 %v10601_v23, %v2350_v38  ;;  %v6718_v0 = vpop.f32.mrb[7].mxu0 }
 0x329   : > { %v3236_v0 = vpop.permute.xlu1 %3235 }
 0x32a   : > { %v9512_v48 = vadd.f32 %v10602_v55, %v2351_v18  ;;  %vm3306_vm8 = vcmp.eq.s32.totalorder %v3236_v0, 1 }
 0x32d   : > { %v2315_v53 = vpop.f32.mrb[8].mxu0 }
 0x32e   : > { %v2352_v36 = vadd.f32 %v2315_v53, %v9406_v9  ;;  %v6721_v35 = vpop.f32.mrb[9].mxu0 }
 0x32f   : > { %v2318_v52 = vpop.f32.mrb[10].mxu0 }
 0x330   : > { %v2353_v10 = vadd.f32 %v2318_v52, %v9409_v14  ;;  %v9517_v50 = vadd.f32 %v9362_v37, %v2352_v36  ;;  %v6722_v22 = vpop.f32.mrb[11].mxu0  ;;  %v3227_v37 = vpop.permute.xlu0 %3226 }
 0x331   : > { %vm3303_vm1 = vcmp.eq.s32.totalorder %v3227_v37, 1 }
 0x332   : > { %v9520_v30 = vadd.f32 %v9371_v61, %v2353_v10  ;;  %v9533_v61 = vld [vmem:[%s10404_s2] ss:$0 sm:$0xff] }
 0x334   : > { %v3230_v58 = vpop.permute.xlu0 %3229 }
 0x335   : > { %v2323_v17 = vpop.f32.mrb[12].mxu0  ;;  %vm3304_vm3 = vcmp.eq.s32.totalorder %v3230_v58, 1 }
 0x336   : > { %v2354_v28 = vadd.f32 %v2323_v17, %v9415_v12  ;;  %v6725_v57 = vpop.f32.mrb[13].mxu0 }
 0x337   : > { %v2326_v62 = vpop.f32.mrb[14].mxu0 }
 0x338   : > { %v2355_v40 = vadd.f32 %v2326_v62, %v9418_v46  ;;  %v9525_v9 = vadd.f32 %v10603_v3, %v2354_v28  ;;  %v6726_v5 = vpop.f32.mrb[15].mxu0  ;;  %v3242_v62 = vpop.permute.xlu1 %3241 }
 0x339   : > { %vm3308_vm4 = vcmp.eq.s32.totalorder %v3242_v62, 1  ;;  %v3239_v37 = vpop.permute.xlu0 %3238 }
 0x33a   : > { %v9528_v14 = vadd.f32 %v9388_v60, %v2355_v40  ;;  %vm3307_vm14 = vcmp.eq.s32.totalorder %v3239_v37, 1 }
 0x33d   : > { %v2799_v24 = vpop.f32.mrb[16].mxu0 }
 0x33e   : > { %v2902_v12 = vadd.f32 %v2799_v24, %v9423_v31  ;;  %v6785_v44 = vpop.f32.mrb[17].mxu0 }
 0x33f   : > { %v2802_v13 = vpop.f32.mrb[18].mxu0 }
 0x340   : > { %v2935_v46 = vadd.f32 %v9533_v61, %v2902_v12  ;;  %v2903_v27 = vadd.f32 %v2802_v13, %v9426_v54  ;;  %v6786_v33 = vpop.f32.mrb[19].mxu0 }
 0x342   : > { %v2961_v47 = vmax.f32 %v2935_v46, 0.0  ;;  %v2936_v60 = vadd.f32 %v9533_v61, %v2903_v27 }
 0x344   : > { %v2962_v8 = vmax.f32 %v2936_v60, 0.0  ;;  %v3329_v42 = vsel %vm3303_vm1, %v2961_v47, 0.0 }
 0x345   : > { %v2807_v51 = vpop.f32.mrb[20].mxu0 }
 0x346   : > { %v3330_v43 = vsel %vm3304_vm3, %v2962_v8, 0.0  ;;  %v2904_v31 = vadd.f32 %v2807_v51, %v9431_v6  ;;  %v6789_v38 = vpop.f32.mrb[21].mxu0  ;;  %vm10604_vm3 = vsmask.f32 3328 }
 0x347   : > { %v9540_v11 = vpack.c.bf16 %v3330_v43, %v3329_v42  ;;  %v2810_v63 = vpop.f32.mrb[22].mxu0 }
 0x348   : > { %v2937_v54 = vadd.f32 %v9533_v61, %v2904_v31  ;;  %v2905_v18 = vadd.f32 %v2810_v63, %v9434_v26  ;;  %v6790_v23 = vpop.f32.mrb[23].mxu0 }
 0x349   : > { %v3376_v36 = vshll.u32 %v9540_v11, 16  ;;  %v3374_v24 = vshrl.u32 %v9540_v11, 16  ;;  %v3248_v23 = vpop.permute.xlu1 %3247 }
 0x34a   : > { %v2963_v55 = vmax.f32 %v2937_v54, 0.0  ;;  %v2938_v53 = vadd.f32 %v9533_v61, %v2905_v18  ;;  %vm3310_vm13 = vcmp.eq.s32.totalorder %v3248_v23, 1 }
 0x34b   : > { %v3378_v26 = vrot.slane %v3376_v36, 1 }
 0x34c   : > { %v2964_v35 = vmax.f32 %v2938_v53, 0.0  ;;  %v3331_v6 = vsel %vm3305_vm5, %v2963_v55, 0.0  ;;  %v3245_v53 = vpop.permute.xlu0 %3244 }
 0x34d   : > { %v2815_v52 = vpop.f32.mrb[24].mxu0  ;;  %v3379_v46 = vor.u32 %v3378_v26, %v3374_v24  ;;  %vm3309_vm0 = vcmp.eq.s32.totalorder %v3245_v53, 1 }
 0x34e   : > { %v3332_v10 = vsel %vm3306_vm8, %v2964_v35, 0.0  ;;  %v2906_v22 = vadd.f32 %v2815_v52, %v9439_v15  ;;  %v6793_v17 = vpop.f32.mrb[25].mxu0 }
 0x34f   : > { %v9547_v28 = vpack.c.bf16 %v3332_v10, %v3331_v6  ;;  %v2818_v57 = vpop.f32.mrb[26].mxu0 }
 0x350   : > { %v2939_v40 = vadd.f32 %v9533_v61, %v2906_v22  ;;  %v2907_v3 = vadd.f32 %v2818_v57, %v9442_v49  ;;  %v6794_v5 = vpop.f32.mrb[27].mxu0 }
 0x351   : > { %v3381_v12 = vshll.u32 %v9547_v28, 16  ;;  %v3385_v44 = vshrl.u32 %v9547_v28, 16 }
 0x352   : > { %v2965_v15 = vmax.f32 %v2939_v40, 0.0  ;;  %v2940_v13 = vadd.f32 %v9533_v61, %v2907_v3 }
 0x353   : > { %v3383_v27 = vrot.slane %v3381_v12, 1  ;;  %v4147_v33 = vrot.slane %v3385_v44, 2  ;;  %v4148_v58 = vrot.slane %v3381_v12, 3 }
 0x354   : > { %v2966_v47 = vmax.f32 %v2940_v13, 0.0  ;;  %v3333_v8 = vsel %vm3307_vm14, %v2965_v15, 0.0 }
 0x355   : > { %v2823_v49 = vpop.f32.mrb[28].mxu0  ;;  %v3384_v60 = vsel %vm553_vm2, %v3379_v46, %v3383_v27  ;;  %v4149_v19 = vor.u32 %v4148_v58, %v4147_v33  ;;  %v3387_v35 = vor.u32 %v3385_v44, %v3383_v27 }
 0x356   : > { %v3334_v51 = vsel %vm3308_vm4, %v2966_v47, 0.0  ;;  %v2908_v42 = vadd.f32 %v2823_v49, %v9447_v41  ;;  %v6797_v43 = vpop.f32.mrb[29].mxu0  ;;  %6837 = vmatprep.mubr.msk.bf16.mxu1 %vm3463_vm15, %v3384_v60  ;;  %v3254_v49 = vpop.permute.xlu1 %3253  ;;  %vm10606_vm4 = vmmov %vm10604_vm3 }
 0x357   : > { %v9559_v31 = vpack.c.bf16 %v3334_v51, %v3333_v8  ;;  %v2826_v38 = vpop.f32.mrb[30].mxu0  ;;  %vm3312_vm11 = vcmp.eq.s32.totalorder %v3254_v49, 1 }
 0x358   : > { %v2941_v63 = vadd.f32 %v9533_v61, %v2908_v42  ;;  %v2909_v54 = vadd.f32 %v2826_v38, %v9450_v2  ;;  %v6798_v18 = vpop.f32.mrb[31].mxu0  ;;  %v9569_v2 = vld [vmem:[%s10405_s3 + $0x10] sm:$0xff]  }
 0x359   : > { %v3389_v0 = vshll.u32 %v9559_v31, 16  ;;  %v3393_v55 = vshrl.u32 %v9559_v31, 16 }
 0x35a   : > { %v2967_v36 = vmax.f32 %v2941_v63, 0.0  ;;  %v2942_v41 = vadd.f32 %v9533_v61, %v2909_v54 }
 0x35b   : > { %v3391_v52 = vrot.slane %v3389_v0, 1  ;;  %v4150_v6 = vrot.slane %v3393_v55, 2  ;;  %v4151_v22 = vrot.slane %v3389_v0, 3  ;;  %v4756_v26 = vrot.slane %v3393_v55, 4 }
 0x35c   : > { %v2968_v10 = vmax.f32 %v2942_v41, 0.0  ;;  %v4757_v62 = vrot.slane %v3389_v0, 5  ;;  %v3335_v40 = vsel %vm3309_vm0, %v2967_v36, 0.0 }
 0x35d   : > { %v2831_v17 = vpop.f32.mrb[32].mxu0  ;;  %v3392_v57 = vsel %vm553_vm2, %v3387_v35, %v3391_v52  ;;  %v4152_v24 = vor.u32 %v4151_v22, %v4150_v6  ;;  %v3395_v8 = vor.u32 %v3393_v55, %v3391_v52 }
 0x35e   : > { %v3336_v3 = vsel %vm3310_vm13, %v2968_v10, 0.0  ;;  %v2910_v5 = vadd.f32 %v2831_v17, %v9455_v45  ;;  %v6801_v37 = vpop.f32.mrb[33].mxu0  ;;  %6838 = vmatmul.mubr.msk.bf16.vlgmr.msra.gmra.mrb[144].mxu1 %vm3463_vm15, %v3392_v57  ;;  %v4758_v15 = vor.u32 %v4757_v62, %v4756_v26  ;;  %v3251_v45 = vpop.permute.xlu0 %3250 }
 0x35f   : > { %v9575_v12 = vpack.c.bf16 %v3336_v3, %v3335_v40  ;;  %v2834_v44 = vpop.f32.mrb[34].mxu0  ;;  %6858 = vmatpush3.bf16.msra.mxu1 %v9471_v1  ;;  %v9582_v33 = vsel %vm1524_vm9, %v4149_v19, %v4152_v24  ;;  %vm3311_vm6 = vcmp.eq.s32.totalorder %v3251_v45, 1  ;;  %v3260_v17 = vpop.permute.xlu1 %3259 }
 0x360   : > { %v2943_v13 = vadd.f32 %v9533_v61, %v2910_v5  ;;  %v2911_v46 = vadd.f32 %v2834_v44, %v9458_v32  ;;  %v6802_v27 = vpop.f32.mrb[35].mxu0  ;;  %6879 = vmatprep.subr.bf16.mxu1 %v9569_v2  ;;  %vm3314_vm12 = vcmp.eq.s32.totalorder %v3260_v17, 1 }
 0x361   : > { %v3397_v58 = vshll.u32 %v9575_v12, 16  ;;  %v3401_v47 = vshrl.u32 %v9575_v12, 16 }
 0x362   : > { %v2969_v60 = vmax.f32 %v2943_v13, 0.0  ;;  %v2944_v1 = vadd.f32 %v9533_v61, %v2911_v46  ;;  %v3257_v57 = vpop.permute.xlu0 %3256 }
 0x363   : > { %v3399_v51 = vrot.slane %v3397_v58, 1  ;;  %v4154_v32 = vrot.slane %v3401_v47, 2  ;;  %v4155_v43 = vrot.slane %v3397_v58, 3  ;;  %v4759_v54 = vrot.slane %v3401_v47, 4 }
 0x364   : > { %v2970_v42 = vmax.f32 %v2944_v1, 0.0  ;;  %v3337_v38 = vsel %vm3311_vm6, %v2969_v60, 0.0  ;;  %v4760_v36 = vrot.slane %v3397_v58, 5  ;;  %vm3313_vm1 = vcmp.eq.s32.totalorder %v3257_v57, 1 }
 0x365   : > { %v2839_v63 = vpop.f32.mrb[36].mxu0  ;;  %v3400_v19 = vsel %vm553_vm2, %v3395_v8, %v3399_v51  ;;  %v4156_v53 = vor.u32 %v4155_v43, %v4154_v32  ;;  %v3403_v3 = vor.u32 %v3401_v47, %v3399_v51  ;;  %v3266_v51 = vpop.permute.xlu1 %3265 }
 0x366   : > { %v3338_v18 = vsel %vm3312_vm11, %v2970_v42, 0.0  ;;  %v2912_v23 = vadd.f32 %v2839_v63, %v9463_v56  ;;  %v6805_v0 = vpop.f32.mrb[37].mxu0  ;;  %6841 = vmatprep.mubr.msk.bf16.mxu1 %vm3463_vm15, %v3400_v19  ;;  %v4761_v22 = vor.u32 %v4760_v36, %v4759_v54  ;;  %v3263_v1 = vpop.permute.xlu0 %3262  ;;  %vm3316_vm5 = vcmp.eq.s32.totalorder %v3266_v51, 1  ;;  %vm10608_vm11 = vmmov %vm10604_vm3 }
 0x367   : > { %v9590_v41 = vpack.c.bf16 %v3338_v18, %v3337_v38  ;;  %v2842_v55 = vpop.f32.mrb[38].mxu0  ;;  %v9595_v10 = vsel %vm1524_vm9, %v4152_v24, %v4156_v53  ;;  %vm3315_vm8 = vcmp.eq.s32.totalorder %v3263_v1, 1 }
 0x368   : > { %v2945_v35 = vadd.f32 %v9533_v61, %v2912_v23  ;;  %v2913_v52 = vadd.f32 %v2842_v55, %v9466_v21  ;;  %v6806_v6 = vpop.f32.mrb[39].mxu0  ;;  %v9602_v46 = vsel %vm10604_vm3, %v4758_v15, %v4761_v22  ;;  %vm10611_vm3 = vcmask 1045504  }
 0x369   : > { %v3405_v56 = vshll.u32 %v9590_v41, 16  ;;  %v3409_v26 = vshrl.u32 %v9590_v41, 16  ;;  %10605 = vst [vmem:[#allocation24_spill] sm:$0xff] %v9602_v46  ;;  %v3272_v17 = vpop.permute.xlu1 %3271 }
 0x36a   : > { %v2971_v62 = vmax.f32 %v2945_v35, 0.0  ;;  %v2946_v40 = vadd.f32 %v9533_v61, %v2913_v52  ;;  %vm3318_vm14 = vcmp.eq.s32.totalorder %v3272_v17, 1 }
 0x36b   : > { %v3407_v5 = vrot.slane %v3405_v56, 1  ;;  %v4158_v37 = vrot.slane %v3409_v26, 2  ;;  %v4159_v44 = vrot.slane %v3405_v56, 3  ;;  %v4763_v63 = vrot.slane %v3409_v26, 4 }
 0x36c   : > { %v2972_v21 = vmax.f32 %v2946_v40, 0.0  ;;  %v3339_v27 = vsel %vm3313_vm1, %v2971_v62, 0.0  ;;  %v4764_v19 = vrot.slane %v3405_v56, 5  ;;  %vm10610_vm1 = vcmask 1046528  }
 0x36d   : > { %v2847_v13 = vpop.f32.mrb[40].mxu0  ;;  %v3408_v24 = vsel %vm553_vm2, %v3403_v3, %v3407_v5  ;;  %v4160_v60 = vor.u32 %v4159_v44, %v4158_v37  ;;  %v3411_v23 = vor.u32 %v3409_v26, %v3407_v5  ;;  %v3278_v51 = vpop.permute.xlu1 %3277 }
 0x36e   : > { %v3340_v45 = vsel %vm3314_vm12, %v2972_v21, 0.0  ;;  %v2914_v58 = vadd.f32 %v2847_v13, %v9477_v39  ;;  %v6809_v49 = vpop.f32.mrb[41].mxu0  ;;  %6842 = vmatmul.mubr.msk.bf16.gmra.mrb[148].mxu1 %vm3463_vm15, %v3408_v24  ;;  %v4765_v6 = vor.u32 %v4764_v19, %v4763_v63  ;;  %vm3320_vm6 = vcmp.eq.s32.totalorder %v3278_v51, 1 }
 0x36f   : > { %v9606_v47 = vpack.c.bf16 %v3340_v45, %v3339_v27  ;;  %v2850_v8 = vpop.f32.mrb[42].mxu0  ;;  %v9611_v15 = vsel %vm1524_vm9, %v4156_v53, %v4160_v60 }
 0x370   : > { %v2947_v32 = vadd.f32 %v9533_v61, %v2914_v58  ;;  %v2915_v42 = vadd.f32 %v2850_v8, %v9480_v7  ;;  %v6810_v43 = vpop.f32.mrb[43].mxu0  ;;  %v3269_v7 = vpop.permute.xlu0 %3268  ;;  %v9622_v37 = vsel %vm10606_vm4, %v4761_v22, %v4765_v6 }
 0x371   : > { %v3413_v38 = vshll.u32 %v9606_v47, 16  ;;  %v3417_v39 = vshrl.u32 %v9606_v47, 16  ;;  %10607 = vst [vmem:[#allocation27_spill] sm:$0xff] %v9622_v37  ;;  %vm3317_vm13 = vcmp.eq.s32.totalorder %v3269_v7, 1 }
 0x372   : > { %v2973_v54 = vmax.f32 %v2947_v32, 0.0  ;;  %v2948_v18 = vadd.f32 %v9533_v61, %v2915_v42 }
 0x373   : > { %v3415_v0 = vrot.slane %v3413_v38, 1  ;;  %v4162_v36 = vrot.slane %v3417_v39, 2  ;;  %v4163_v35 = vrot.slane %v3413_v38, 3  ;;  %v4767_v45 = vrot.slane %v3417_v39, 4 }
 0x374   : > { %v2974_v55 = vmax.f32 %v2948_v18, 0.0  ;;  %v3341_v57 = vsel %vm3315_vm8, %v2973_v54, 0.0  ;;  %v4768_v58 = vrot.slane %v3413_v38, 5  ;;  %v3275_v1 = vpop.permute.xlu0 %3274 }
 0x375   : > { %v2855_v52 = vpop.f32.mrb[44].mxu0  ;;  %v3416_v53 = vsel %vm553_vm2, %v3411_v23, %v3415_v0  ;;  %v4164_v26 = vor.u32 %v4163_v35, %v4162_v36  ;;  %v3419_v8 = vor.u32 %v3417_v39, %v3415_v0  ;;  %vm3319_vm0 = vcmp.eq.s32.totalorder %v3275_v1, 1 }
 0x376   : > { %v3342_v62 = vsel %vm3316_vm5, %v2974_v55, 0.0  ;;  %v2916_v56 = vadd.f32 %v2855_v52, %v9485_v16  ;;  %v6813_v40 = vpop.f32.mrb[45].mxu0  ;;  %6845 = vmatprep.mubr.msk.bf16.mxu1 %vm3463_vm15, %v3416_v53  ;;  %v4769_v18 = vor.u32 %v4768_v58, %v4767_v45  ;;  %vm10612_vm5 = vcmask 1044480  }
 0x377   : > { %v9619_v3 = vpack.c.bf16 %v3342_v62, %v3341_v57  ;;  %v2858_v5 = vpop.f32.mrb[46].mxu0  ;;  %v9627_v24 = vsel %vm1524_vm9, %v4160_v60, %v4164_v26 }
 0x378   : > { %v2949_v21 = vadd.f32 %v9533_v61, %v2916_v56  ;;  %v2917_v44 = vadd.f32 %v2858_v5, %v9488_v25  ;;  %v6814_v13 = vpop.f32.mrb[47].mxu0  ;;  %v9652_v62 = vsel %vm10608_vm11, %v4765_v6, %v4769_v18 }
 0x379   : > { %v9630_v16 = vshll.u32 %v9619_v3, 16  ;;  %v9633_v27 = vshrl.u32 %v9619_v3, 16  ;;  %v10461_v42 = vrot.slane %v9619_v3, 1  ;;  %v10460_v43 = vrot.slane %v9619_v3, 2  ;;  %10609 = vst [vmem:[#allocation23_spill] sm:$0xff] %v9652_v62 }
 0x37a   : > { %v2975_v49 = vmax.f32 %v2949_v21, 0.0  ;;  %v2950_v22 = vadd.f32 %v9533_v61, %v2917_v44  ;;  %v10459_v54 = vrot.slane %v9619_v3, 3  ;;  %v10458_v39 = vrot.slane %v9619_v3, 4 }
 0x37b   : > { %v3423_v25 = vrot.slane %v9630_v16, 1  ;;  %v4166_v60 = vrot.slane %v9633_v27, 2  ;;  %v4167_v38 = vrot.slane %v9630_v16, 3  ;;  %v4771_v56 = vrot.slane %v9633_v27, 4 }
 0x37c   : > { %v2976_v32 = vmax.f32 %v2950_v22, 0.0  ;;  %v3343_v23 = vsel %vm3317_vm13, %v2975_v49, 0.0  ;;  %v4772_v5 = vrot.slane %v9630_v16, 5  ;;  %vm10615_vm13 = vmmov %vm10610_vm1 }
 0x37d   : > { %v2863_v63 = vpop.f32.mrb[48].mxu0  ;;  %v3424_v19 = vsel %vm553_vm2, %v3419_v8, %v3423_v25  ;;  %v4168_v35 = vor.u32 %v4167_v38, %v4166_v60  ;;  %v3427_v57 = vor.u32 %v9633_v27, %v3423_v25  ;;  %v3281_v27 = vpop.permute.xlu0 %3280 }
 0x37e   : > { %v3344_v0 = vsel %vm3318_vm14, %v2976_v32, 0.0  ;;  %v2918_v36 = vadd.f32 %v2863_v63, %v9493_v59  ;;  %v6817_v55 = vpop.f32.mrb[49].mxu0  ;;  %6846 = vmatmul.mubr.msk.bf16.gmra.mrb[152].mxu1 %vm3463_vm15, %v3424_v19  ;;  %vm3321_vm12 = vcmp.eq.s32.totalorder %v3281_v27, 1  ;;  %v3284_v25 = vpop.permute.xlu1 %3283 }
 0x37f   : > { %v9648_v52 = vpack.c.bf16 %v3344_v0, %v3343_v23  ;;  %v2866_v53 = vpop.f32.mrb[50].mxu0  ;;  %v9658_v59 = vsel %vm1524_vm9, %v4164_v26, %v4168_v35  ;;  %vm3322_vm8 = vcmp.eq.s32.totalorder %v3284_v25, 1  ;;  %v4773_v55 = vor.u32 %v4772_v5, %v4771_v56 }
 0x380   : > { %v2951_v7 = vadd.f32 %v9533_v61, %v2918_v36  ;;  %v2919_v17 = vadd.f32 %v2866_v53, %v9496_v4  ;;  %v6818_v40 = vpop.f32.mrb[51].mxu0  ;;  %v10622_v25 = vrot.slane %v9619_v3, 5 }
 0x381   : > { %v9662_v21 = vshll.u32 %v9648_v52, 16  ;;  %v9665_v44 = vshrl.u32 %v9648_v52, 16  ;;  %v3773_v6 = vrot.slane %v9648_v52, 1  ;;  %v3965_v13 = vrot.slane %v9648_v52, 2 }
 0x382   : > { %v2977_v45 = vmax.f32 %v2951_v7, 0.0  ;;  %v2952_v4 = vadd.f32 %v9533_v61, %v2919_v17  ;;  %v4380_v58 = vrot.slane %v9648_v52, 3  ;;  %v4572_v26 = vrot.slane %v9648_v52, 4 }
 0x383   : > { %v3431_v16 = vrot.slane %v9662_v21, 1  ;;  %v9676_v49 = vsel %vm10610_vm1, %v10461_v42, %v3773_v6  ;;  %v9681_v22 = vsel %vm10611_vm3, %v10460_v43, %v3965_v13  ;;  %v4170_v8 = vrot.slane %v9665_v44, 2 }
 0x384   : > { %v2978_v60 = vmax.f32 %v2952_v4, 0.0  ;;  %v4171_v32 = vrot.slane %v9662_v21, 3  ;;  %v9688_v38 = vsel %vm10612_vm5, %v10459_v54, %v4380_v58  ;;  %v3345_v19 = vsel %vm3319_vm0, %v2977_v45, 0.0  ;;  %vm10616_vm0 = vmmov %vm10611_vm3 }
 0x385   : > { %v2871_v23 = vpop.f32.mrb[52].mxu0  ;;  %v3432_v0 = vsel %vm553_vm2, %v3427_v57, %v3431_v16  ;;  %v9696_v36 = vsel %vm2123_vm7, %v10458_v39, %v4572_v26  ;;  %v3435_v40 = vor.u32 %v9665_v44, %v3431_v16  ;;  %v9705_v57 = vsel %vm10606_vm4, %v4769_v18, %v4773_v55  ;;  %vm10624_vm3 = vmmov %vm10615_vm13 }
 0x386   : > { %10613 = vst [vmem:[#allocation25_spill] sm:$0xff] %v9696_v36  ;;  %v3346_v53 = vsel %vm3320_vm6, %v2978_v60, 0.0  ;;  %v2920_v7 = vadd.f32 %v2871_v23, %v9501_v34  ;;  %v6821_v17 = vpop.f32.mrb[53].mxu0  ;;  %6849 = vmatprep.mubr.msk.bf16.mxu1 %vm3463_vm15, %v3432_v0  ;;  %v4172_v1 = vor.u32 %v4171_v32, %v4170_v8  ;;  %10614 = vst [vmem:[#allocation26_spill] sm:$0xff] %v9705_v57  ;;  %v4775_v39 = vrot.slane %v9665_v44, 4  ;;  %v3287_v32 = vpop.permute.xlu0 %3286 }
 0x387   : > { %v9702_v45 = vpack.c.bf16 %v3346_v53, %v3345_v19  ;;  %v2874_v4 = vpop.f32.mrb[54].mxu0  ;;  %v4776_v56 = vrot.slane %v9662_v21, 5  ;;  %vm3323_vm14 = vcmp.eq.s32.totalorder %v3287_v32, 1  ;;  %vm10617_vm6 = vmmov %vm10612_vm5 }
 0x388   : > { %v2953_v51 = vadd.f32 %v9533_v61, %v2920_v7  ;;  %v2921_v34 = vadd.f32 %v2874_v4, %v9504_v20  ;;  %v6822_v5 = vpop.f32.mrb[55].mxu0  ;;  %v9712_v60 = vsel %vm1524_vm9, %v4168_v35, %v4172_v1  ;;  %v3290_v4 = vpop.permute.xlu1 %3289  ;;  %vm10625_vm5 = vmmov %vm10616_vm0 }
 0x389   : > { %v9716_v8 = vshll.u32 %v9702_v45, 16  ;;  %v9719_v18 = vshrl.u32 %v9702_v45, 16  ;;  %v3775_v44 = vrot.slane %v9702_v45, 1  ;;  %v3967_v21 = vrot.slane %v9702_v45, 2 }
 0x38a   : > { %v2979_v19 = vmax.f32 %v2953_v51, 0.0  ;;  %v2954_v20 = vadd.f32 %v9533_v61, %v2921_v34  ;;  %v4382_v23 = vrot.slane %v9702_v45, 3  ;;  %v4574_v35 = vrot.slane %v9702_v45, 4 }
 0x38b   : > { %v3439_v0 = vrot.slane %v9716_v8, 1  ;;  %v9728_v53 = vsel %vm10615_vm13, %v3773_v6, %v3775_v44  ;;  %v9731_v7 = vsel %vm10616_vm0, %v3965_v13, %v3967_v21  ;;  %v4174_v17 = vrot.slane %v9719_v18, 2  ;;  %vm10634_vm13 = vmmov %vm10624_vm3 }
 0x38c   : > { %v3347_v51 = vsel %vm3321_vm12, %v2979_v19, 0.0  ;;  %v2980_v5 = vmax.f32 %v2954_v20, 0.0  ;;  %v4175_v34 = vrot.slane %v9716_v8, 3  ;;  %v9737_v54 = vsel %vm10617_vm6, %v4380_v58, %v4382_v23  ;;  %vm10619_vm12 = vmmov %vm10606_vm4 }
 0x38d   : > { %vm3324_vm11 = vcmp.eq.s32.totalorder %v3290_v4, 1  ;;  %v2879_v43 = vpop.f32.mrb[56].mxu0  ;;  %v3440_v42 = vsel %vm553_vm2, %v3435_v40, %v3439_v0  ;;  %v3443_v6 = vor.u32 %v9719_v18, %v3439_v0  ;;  %v9742_v13 = vsel %vm2123_vm7, %v4572_v26, %v4574_v35 }
 0x38e   : > { %10618 = vst [vmem:[#allocation28_spill] sm:$0xff] %v9742_v13  ;;  %v4777_v63 = vor.u32 %v4776_v56, %v4775_v39  ;;  %v3348_v16 = vsel %vm3322_vm8, %v2980_v5, 0.0  ;;  %v2922_v27 = vadd.f32 %v2879_v43, %v9509_v29  ;;  %v6825_v19 = vpop.f32.mrb[57].mxu0  ;;  %6850 = vmatmul.mubr.msk.bf16.gmra.mrb[156].mxu1 %vm3463_vm15, %v3440_v42  ;;  %v4176_v20 = vor.u32 %v4175_v34, %v4174_v17  ;;  %vm10626_vm8 = vmmov %vm10617_vm6 }
 0x38f   : > { %v4779_v58 = vrot.slane %v9719_v18, 4  ;;  %v9748_v57 = vpack.c.bf16 %v3348_v16, %v3347_v51  ;;  %v2882_v62 = vpop.f32.mrb[58].mxu0  ;;  %v4780_v26 = vrot.slane %v9716_v8, 5  ;;  %v10621_v39 = vrot.slane %v9648_v52, 5  ;;  %v3293_v51 = vpop.permute.xlu0 %3292 }
 0x390   : > { %v9751_v40 = vsel %vm10619_vm12, %v4773_v55, %v4777_v63  ;;  %v2955_v42 = vadd.f32 %v9533_v61, %v2922_v27  ;;  %v2923_v43 = vadd.f32 %v2882_v62, %v9512_v48  ;;  %v6826_v56 = vpop.f32.mrb[59].mxu0  ;;  %v9764_v16 = vsel %vm1524_vm9, %v4172_v1, %v4176_v20 }
 0x391   : > { %10620 = vst [vmem:[#allocation29_spill] sm:$0xff] %v9751_v40  ;;  %v9759_v29 = vsel %vm2695_vm10, %v10622_v25, %v10621_v39  ;;  %v9768_v18 = vshll.u32 %v9748_v57, 16  ;;  %v3449_v8 = vshrl.u32 %v9748_v57, 16  ;;  %v3777_v0 = vrot.slane %v9748_v57, 1  ;;  %v3296_v25 = vpop.permute.xlu1 %3295 }
 0x392   : > { %10623 = vst [vmem:[#allocation30_spill] sm:$0xff] %v9759_v29  ;;  %v3969_v17 = vrot.slane %v9748_v57, 2  ;;  %v2981_v5 = vmax.f32 %v2955_v42, 0.0  ;;  %v2956_v34 = vadd.f32 %v9533_v61, %v2923_v43  ;;  %v4384_v48 = vrot.slane %v9748_v57, 3 }
 0x393   : > { %v4576_v62 = vrot.slane %v9748_v57, 4  ;;  %vm3325_vm1 = vcmp.eq.s32.totalorder %v3293_v51, 1  ;;  %v3447_v1 = vrot.slane %v9768_v18, 1  ;;  %v9778_v27 = vsel %vm10624_vm3, %v3775_v44, %v3777_v0  ;;  %vm10640_vm3 = vmmov %vm10617_vm6 }
 0x394   : > { %v9781_v19 = vsel %vm10625_vm5, %v3967_v21, %v3969_v17  ;;  %v4178_v39 = vrot.slane %v3449_v8, 2  ;;  %v3349_v56 = vsel %vm3323_vm14, %v2981_v5, 0.0  ;;  %v2982_v42 = vmax.f32 %v2956_v34, 0.0  ;;  %vm10629_vm14 = vmmov %vm10619_vm12 }
 0x395   : > { %v4179_v43 = vrot.slane %v9768_v18, 3  ;;  %v9786_v55 = vsel %vm10626_vm8, %v4382_v23, %v4384_v48  ;;  %vm3326_vm4 = vcmp.eq.s32.totalorder %v3296_v25, 1  ;;  %v2887_v29 = vpop.f32.mrb[60].mxu0  ;;  %v3448_v40 = vsel %vm553_vm2, %v3443_v6, %v3447_v1 }
 0x396   : > { %10627 = vst [vmem:[#allocation31_spill] sm:$0xff] %v9786_v55  ;;  %v3451_v37 = vor.u32 %v3449_v8, %v3447_v1  ;;  %v9790_v44 = vsel %vm2123_vm7, %v4574_v35, %v4576_v62  ;;  %v4781_v21 = vor.u32 %v4780_v26, %v4779_v58  ;;  %v3350_v46 = vsel %vm3324_vm11, %v2982_v42, 0.0  ;;  %v6829_v5 = vpop.f32.mrb[61].mxu0  ;;  %6853 = vmatprep.mubr.msk.bf16.mxu1 %vm3463_vm15, %v3448_v40 }
 0x397   : > { %10628 = vst [vmem:[#allocation32_spill] sm:$0xff] %v9790_v44  ;;  %v2924_v32 = vadd.f32 %v2887_v29, %v9517_v50  ;;  %v4180_v34 = vor.u32 %v4179_v43, %v4178_v39  ;;  %v4783_v13 = vrot.slane %v3449_v8, 4  ;;  %v9795_v23 = vpack.c.bf16 %v3350_v46, %v3349_v56  ;;  %v2890_v36 = vpop.f32.mrb[62].mxu0  ;;  %v3302_v5 = vpop.permute.xlu1 %3301 }
 0x398   : > { %v9798_v55 = vsel %vm10629_vm14, %v4777_v63, %v4781_v21  ;;  %v4784_v6 = vrot.slane %v9768_v18, 5  ;;  %v10631_v35 = vrot.slane %v9702_v45, 5  ;;  %v10632_v4 = vrot.slane %v9648_v52, 5  ;;  %v6830_v26 = vpop.f32.mrb[63].mxu0 }
 0x399   : > { %10630 = vst [vmem:[#allocation33_spill] sm:$0xff] %v9798_v55  ;;  %v2957_v50 = vadd.f32 %v9533_v61, %v2924_v32  ;;  %v2925_v40 = vadd.f32 %v2890_v36, %v9520_v30  ;;  %v9811_v46 = vsel %vm1524_vm9, %v4176_v20, %v4180_v34  ;;  %v4989_v63 = vrot.slane %v9748_v57, 5 }
 0x39a   : > { %v9806_v58 = vsel %vm2695_vm10, %v10632_v4, %v10631_v35  ;;  %v3453_v29 = vshll.u32 %v9795_v23, 16  ;;  %v3779_v18 = vrot.slane %v9795_v23, 1  ;;  %v3971_v8 = vrot.slane %v9795_v23, 2 }
 0x39b   : > { %10633 = vst [vmem:[#allocation34_spill] sm:$0xff] %v9806_v58  ;;  %v4182_v1 = vshrl.u32 %v9795_v23, 16  ;;  %v2983_v39 = vmax.f32 %v2957_v50, 0.0  ;;  %v2958_v56 = vadd.f32 %v9533_v61, %v2925_v40  ;;  %v4386_v42 = vrot.slane %v9795_v23, 3 }
 0x39c   : > { %v4578_v30 = vrot.slane %v9795_v23, 4  ;;  %v3455_v36 = vrot.slane %v3453_v29, 1  ;;  %v9822_v20 = vsel %vm10634_vm13, %v3777_v0, %v3779_v18  ;;  %v9825_v43 = vsel %vm10616_vm0, %v3969_v17, %v3971_v8 }
 0x39d   : > { %v4184_v32 = vrot.slane %v4182_v1, 2  ;;  %v3351_v35 = vsel %vm3325_vm1, %v2983_v39, 0.0  ;;  %v2984_v4 = vmax.f32 %v2958_v56, 0.0  ;;  %v4185_v26 = vrot.slane %v3453_v29, 3  ;;  %v2895_v40 = vpop.f32.mrb[64].mxu0  ;;  %vm10639_vm1 = vmmov %vm10616_vm0 }
 0x39e   : > { %v9829_v50 = vsel %vm10617_vm6, %v4384_v48, %v4386_v42  ;;  %vm3328_vm11 = vcmp.eq.s32.totalorder %v3302_v5, 1  ;;  %v3456_v58 = vsel %vm553_vm2, %v3451_v37, %v3455_v36  ;;  %v9833_v55 = vsel %vm2123_vm7, %v4576_v62, %v4578_v30  ;;  %v6833_v51 = vpop.f32.mrb[65].mxu0  ;;  %vm10636_vm2 = vmmov %vm10619_vm12 }
 0x39f   : > { %10635 = vst [vmem:[#allocation35_spill] sm:$0xff] %v9829_v50  ;;  %v4785_v0 = vor.u32 %v4784_v6, %v4783_v13  ;;  %v4787_v18 = vrot.slane %v4182_v1, 4  ;;  %v3352_v17 = vsel %vm3326_vm4, %v2984_v4, 0.0  ;;  %v2926_v44 = vadd.f32 %v2895_v40, %v9525_v9  ;;  %6854 = vmatmul.mubr.msk.bf16.gmra.mrb[160].mxu1 %vm3463_vm15, %v3456_v58  ;;  %v2898_v50 = vpop.f32.mrb[66].mxu0  ;;  %vm10638_vm12 = vmmov %vm10636_vm2  ;;  %v7406_v51 = vld [vmem:[%s10405_s3 + $0x18] sm:$0xff]  }
 0x3a0   : > { %v4186_v39 = vor.u32 %v4185_v26, %v4184_v32  ;;  %v4788_v56 = vrot.slane %v3453_v29, 5  ;;  %v3366_v48 = vpack.c.bf16 %v3352_v17, %v3351_v35  ;;  %6859 = vmatprep.mubr.msk.bf16.mxu1 %vm3463_vm15, %v9540_v11  ;;  %v10637_v13 = vrot.slane %v9702_v45, 5  ;;  %v6834_v29 = vpop.f32.mrb[67].mxu0  ;;  %vm10641_vm8 = vmmov %vm10636_vm2 }
 0x3a1   : > { %v9841_v37 = vsel %vm10636_vm2, %v4781_v21, %v4785_v0  ;;  %v4991_v9 = vrot.slane %v9795_v23, 5  ;;  %v2959_v25 = vadd.f32 %v9533_v61, %v2926_v44  ;;  %v2927_v6 = vadd.f32 %v2898_v50, %v9528_v14  ;;  %v3299_v23 = vpop.permute.xlu0 %3298  ;;  %vm10643_vm4 = vmmov %vm10634_vm13 }
 0x3a2   : > { %v9846_v62 = vsel %vm2695_vm10, %v10637_v13, %v4989_v63  ;;  %v9852_v58 = vsel %vm1524_vm9, %v4180_v34, %v4186_v39  ;;  %v4789_v1 = vor.u32 %v4788_v56, %v4787_v18  ;;  %v3973_v36 = vrot.slane %v3366_v48, 2  ;;  %vm10644_vm14 = vmmov %vm10643_vm4 }
 0x3a3   : > { %v4189_v32 = vshrl.u32 %v3366_v48, 16  ;;  %v4192_v21 = vshll.u32 %v3366_v48, 16  ;;  %v4388_v35 = vrot.slane %v3366_v48, 3  ;;  %v2985_v4 = vmax.f32 %v2959_v25, 0.0  ;;  %vm10645_vm13 = vmmov %vm10643_vm4 }
 0x3a4   : > { %v2960_v26 = vadd.f32 %v9533_v61, %v2927_v6  ;;  %v4580_v40 = vrot.slane %v3366_v48, 4  ;;  %v9856_v17 = vsel %vm10638_vm12, %v4785_v0, %v4789_v1  ;;  %v9859_v44 = vsel %vm10639_vm1, %v3971_v8, %v3973_v36  ;;  %vm10646_vm0 = vmmov %vm10643_vm4 }
 0x3a5   : > { %v4191_v14 = vrot.slane %v4189_v32, 2  ;;  %v4194_v34 = vrot.slane %v4192_v21, 3  ;;  %v9862_v50 = vsel %vm10640_vm3, %v4386_v42, %v4388_v35  ;;  %vm3327_vm5 = vcmp.eq.s32.totalorder %v3299_v23, 1  ;;  %vm10647_vm6 = vmmov %vm10646_vm0 }
 0x3a6   : > { %v2986_v18 = vmax.f32 %v2960_v26, 0.0  ;;  %v9868_v61 = vsel %vm2123_vm7, %v4578_v30, %v4580_v40  ;;  %v4791_v0 = vrot.slane %v4189_v32, 4  ;;  %v4792_v13 = vrot.slane %v4192_v21, 5  ;;  %vm10651_vm12 = vmmov %vm10639_vm1 }
 0x3a7   : > { %v4195_v56 = vor.u32 %v4194_v34, %v4191_v14  ;;  %v9871_v8 = vsel %vm2695_vm10, %v4989_v63, %v4991_v9  ;;  %v4993_v25 = vrot.slane %v3366_v48, 5  ;;  %v3353_v6 = vsel %vm3327_vm5, %v2985_v4, 0.0  ;;  %6860 = vmatmul.mubr.msk.bf16.vlgmr.msra.gmra.mrb[144].mxu1 %vm3463_vm15, %v9547_v28  ;;  %vm10652_vm3 = vmmov %vm10639_vm1 }
 0x3a8   : > { %v3354_v42 = vsel %vm3328_vm11, %v2986_v18, 0.0  ;;  %6880 = vmatpush3.bf16.msra.mxu1 %v9569_v2  ;;  %6863 = vmatprep.mubr.msk.bf16.mxu1 %vm3463_vm15, %v9559_v31  ;;  %v4793_v36 = vor.u32 %v4792_v13, %v4791_v0  ;;  %v3763_v34 = vrot.slane %v9559_v31, 1  ;;  %v3765_v18 = vrot.slane %v9575_v12, 1  ;;  %vm10649_vm11 = vmmov %vm10646_vm0 }
 0x3a9   : > { %v3367_v29 = vpack.c.bf16 %v3354_v42, %v3353_v6  ;;  %v9880_v30 = vsel %vm1524_vm9, %v4186_v39, %v4195_v56  ;;  %6901 = vmatprep.subr.bf16.mxu1 %v7406_v51  ;;  %v9883_v63 = vsel %vm2695_vm10, %v4991_v9, %v4993_v25  ;;  %vm10642_vm9 = vmmov %vm10636_vm2  ;;  %v3769_v0 = vrot.slane %v9606_v47, 1 }
 0x3aa   : > { %v9886_v5 = vsel %vm10641_vm8, %v4789_v1, %v4793_v36  ;;  %v3761_v1 = vrot.slane %v9547_v28, 1  ;;  %v3954_v42 = vrot.slane %v9547_v28, 2  ;;  %vm10650_vm2 = vmmov %vm10639_vm1  ;;  %vm10655_vm8 = vcmask 1044480  }
 0x3ab   : > { %v4582_v48 = vrot.slane %v3367_v29, 4  ;;  %v4796_v32 = vshrl.u32 %v3367_v29, 16  ;;  %v4799_v21 = vshll.u32 %v3367_v29, 16  ;;  %v4995_v35 = vrot.slane %v3367_v29, 5  ;;  %vm10654_vm5 = vmmov %vm10639_vm1 }
 0x3ad   : > { %v9889_v2 = vsel %vm2123_vm7, %v4580_v40, %v4582_v48  ;;  %v4798_v4 = vrot.slane %v4796_v32, 4  ;;  %v4801_v26 = vrot.slane %v4799_v21, 5  ;;  %v9892_v39 = vsel %vm2695_vm10, %v4993_v25, %v4995_v35 }
 0x3ae   : > { %v3760_v40 = vrot.slane %v9540_v11, 1  ;;  %v3766_v11 = vsel %vm10645_vm13, %v3763_v34, %v3765_v18  ;;  %v10648_v25 = vrot.slane %v9619_v3, 1  ;;  %v10653_v21 = vrot.slane %v9619_v3, 2 }
 0x3af   : > { %v4802_v23 = vor.u32 %v4801_v26, %v4798_v4  ;;  %6864 = vmatmul.mubr.msk.bf16.gmra.mrb[148].mxu1 %vm3463_vm15, %v9575_v12  ;;  %v7409_v4 = vld [vmem:[%s10405_s3 + $0x30] sm:$0xff]  }
 0x3b0   : > { %6867 = vmatprep.mubr.msk.bf16.mxu1 %vm3463_vm15, %v9590_v41  ;;  %v3762_v14 = vsel %vm10643_vm4, %v3760_v40, %v3761_v1  ;;  %v3772_v6 = vsel %vm10649_vm11, %v3769_v0, %v10648_v25  ;;  %vm10657_vm4 = vmmov %vm10655_vm8  ;;  %v4979_v25 = vrot.slane %v9590_v41, 5 }
 0x3b1   : > { %v9899_v9 = vsel %vm10642_vm9, %v4793_v36, %v4802_v23  ;;  %v3957_v36 = vrot.slane %v9575_v12, 2  ;;  %vm10656_vm9 = vmmov %vm10655_vm8  ;;  %v7411_v23 = vld [vmem:[%s10405_s3 + $0x40] sm:$0xff]  }
 0x3b2   : > { %vm10660_vm13 = vmmov %vm10657_vm4 }
 0x3b7   : > { %6868 = vmatmul.mubr.msk.bf16.gmra.mrb[152].mxu1 %vm3463_vm15, %v9606_v47 }
 0x3b8   : > { %6871 = vmatprep.mubr.msk.bf16.mxu1 %vm3463_vm15, %v9619_v3 }
 0x3bf   : > { %6872 = vmatmul.mubr.msk.bf16.gmra.mrb[156].mxu1 %vm3463_vm15, %v9648_v52  ;;  %v7407_v52 = vld [vmem:[%s10405_s3 + $0x20] sm:$0xff]  }
 0x3c0   : > { %6875 = vmatprep.mubr.msk.bf16.mxu1 %vm3463_vm15, %v9702_v45  ;;  %v3764_v45 = vsel %vm10644_vm14, %v3761_v1, %v3763_v34  ;;  %vm10658_vm14 = vmmov %vm10657_vm4  ;;  %v10664_v34 = vld [vmem:[#allocation25_spill] sm:$0xff] }
 0x3c7   : > { %6876 = vmatmul.mubr.msk.bf16.gmra.mrb[160].mxu1 %vm3463_vm15, %v9748_v57  ;;  %v3767_v57 = vrot.slane %v9590_v41, 1 }
 0x3c8   : > { %6881 = vmatprep.mubr.msk.bf16.mxu1 %vm3463_vm15, %v3762_v14 }
 0x3c9   : > { %v3768_v56 = vsel %vm10646_vm0, %v3765_v18, %v3767_v57  ;;  %v3770_v13 = vsel %vm10647_vm6, %v3767_v57, %v3769_v0  ;;  %v10665_v18 = vld [vmem:[#allocation28_spill] sm:$0xff]  ;;  %v10669_v57 = vld [vmem:[#allocation23_spill] sm:$0xff]  ;;  %v10670_v0 = vld [vmem:[#allocation26_spill] sm:$0xff] }
 0x3cf   : > { %6882 = vmatmul.mubr.msk.bf16.vlgmr.msra.gmra.mrb[144].mxu1 %vm3463_vm15, %v3764_v45  ;;  %v10667_v45 = vld [vmem:[#allocation24_spill] sm:$0xff] }
 0x3d0   : > { %6902 = vmatpush3.bf16.msra.mxu1 %v7406_v51  ;;  %6885 = vmatprep.mubr.msk.bf16.mxu1 %vm3463_vm15, %v3766_v11  ;;  %v3955_v51 = vrot.slane %v9559_v31, 2  ;;  %v10668_v11 = vld [vmem:[#allocation27_spill] sm:$0xff] }
 0x3d1   : > { %6923 = vmatprep.subr.bf16.mxu1 %v7407_v52 }
 0x3d2   : > { %v3956_v29 = vsel %vm10650_vm2, %v3954_v42, %v3955_v51 }
 0x3d7   : > { %6886 = vmatmul.mubr.msk.bf16.gmra.mrb[148].mxu1 %vm3463_vm15, %v3768_v56  ;;  %v4976_v56 = vrot.slane %v9559_v31, 5 }
 0x3d8   : > { %6889 = vmatprep.mubr.msk.bf16.mxu1 %vm3463_vm15, %v3770_v13 }
 0x3df   : > { %6890 = vmatmul.mubr.msk.bf16.gmra.mrb[152].mxu1 %vm3463_vm15, %v3772_v6 }
 0x3e0   : > { %6893 = vmatprep.mubr.msk.bf16.mxu1 %vm3463_vm15, %v9676_v49  ;;  %v3959_v49 = vrot.slane %v9590_v41, 2 }
 0x3e2   : > { %v3960_v48 = vsel %vm10639_vm1, %v3957_v36, %v3959_v49 }
 0x3e7   : > { %6894 = vmatmul.mubr.msk.bf16.gmra.mrb[156].mxu1 %vm3463_vm15, %v9728_v53  ;;  %v7408_v53 = vld [vmem:[%s10405_s3 + $0x28] sm:$0xff]  }
 0x3e8   : > { %6897 = vmatprep.mubr.msk.bf16.mxu1 %vm3463_vm15, %v9778_v27  ;;  %v3958_v27 = vsel %vm10651_vm12, %v3955_v51, %v3957_v36  ;;  %v10103_v51 = vld [vmem:[%s10406_s4] ss:$0 sm:$0xff] }
 0x3ef   : > { %6898 = vmatmul.mubr.msk.bf16.gmra.mrb[160].mxu1 %vm3463_vm15, %v9822_v20  ;;  %v3961_v20 = vrot.slane %v9606_v47, 2 }
 0x3f0   : > { %6903 = vmatprep.mubr.msk.bf16.mxu1 %vm3463_vm15, %v3956_v29 }
 0x3f1   : > { %v3962_v32 = vsel %vm10652_vm3, %v3959_v49, %v3961_v20  ;;  %v3964_v35 = vsel %vm10654_vm5, %v3961_v20, %v10653_v21 }
 0x3f7   : > { %6904 = vmatmul.mubr.msk.bf16.vlgmr.msra.gmra.mrb[144].mxu1 %vm3463_vm15, %v3958_v27 }
 0x3f8   : > { %6924 = vmatpush3.bf16.msra.mxu1 %v7407_v52  ;;  %6907 = vmatprep.mubr.msk.bf16.mxu1 %vm3463_vm15, %v3960_v48  ;;  %v10666_v52 = vld [vmem:[#allocation32_spill] sm:$0xff] }
 0x3f9   : > { %6945 = vmatprep.subr.bf16.mxu1 %v7408_v53 }
 0x3ff   : > { %6908 = vmatmul.mubr.msk.bf16.gmra.mrb[148].mxu1 %vm3463_vm15, %v3962_v32 }
 0x400   : > { %6911 = vmatprep.mubr.msk.bf16.mxu1 %vm3463_vm15, %v3964_v35 }
 0x407   : > { %6912 = vmatmul.mubr.msk.bf16.gmra.mrb[152].mxu1 %vm3463_vm15, %v9681_v22  ;;  %v7410_v22 = vld [vmem:[%s10405_s3 + $0x38] sm:$0xff]  }
 0x408   : > { %6915 = vmatprep.mubr.msk.bf16.mxu1 %vm3463_vm15, %v9731_v7  ;;  %v4376_v7 = vrot.slane %v9606_v47, 3 }
 0x40f   : > { %6916 = vmatmul.mubr.msk.bf16.gmra.mrb[156].mxu1 %vm3463_vm15, %v9781_v19  ;;  %v10659_v19 = vrot.slane %v9619_v3, 3 }
 0x410   : > { %6919 = vmatprep.mubr.msk.bf16.mxu1 %vm3463_vm15, %v9825_v43  ;;  %v10661_v43 = vld [vmem:[#allocation31_spill] sm:$0xff] }
 0x417   : > { %6920 = vmatmul.mubr.msk.bf16.gmra.mrb[160].mxu1 %vm3463_vm15, %v9859_v44  ;;  %v4564_v44 = vrot.slane %v9575_v12, 4 }
 0x418   : > { %6925 = vmatprep.mubr.msk.bf16.mxu1 %vm3463_vm15, %v9582_v33  ;;  %v4370_v33 = vrot.slane %v9559_v31, 3 }
 0x41f   : > { %6926 = vmatmul.mubr.msk.bf16.vlgmr.msra.gmra.mrb[144].mxu1 %vm3463_vm15, %v9595_v10  ;;  %v4369_v10 = vrot.slane %v9547_v28, 3 }
 0x420   : > { %6946 = vmatpush3.bf16.msra.mxu1 %v7408_v53  ;;  %6929 = vmatprep.mubr.msk.bf16.mxu1 %vm3463_vm15, %v9611_v15 }
 0x421   : > { %6967 = vmatprep.subr.bf16.mxu1 %v7409_v4  ;;  %v4371_v15 = vsel %vm10655_vm8, %v4369_v10, %v4370_v33 }
 0x427   : > { %6930 = vmatmul.mubr.msk.bf16.gmra.mrb[148].mxu1 %vm3463_vm15, %v9627_v24  ;;  %v4372_v24 = vrot.slane %v9575_v12, 3 }
 0x428   : > { %6933 = vmatprep.mubr.msk.bf16.mxu1 %vm3463_vm15, %v9658_v59  ;;  %v4374_v59 = vrot.slane %v9590_v41, 3 }
 0x42a   : > { %v4375_v28 = vsel %vm10657_vm4, %v4372_v24, %v4374_v59 }
 0x42f   : > { %6934 = vmatmul.mubr.msk.bf16.gmra.mrb[152].mxu1 %vm3463_vm15, %v9712_v60  ;;  %v4373_v60 = vsel %vm10656_vm9, %v4370_v33, %v4372_v24 }
 0x430   : > { %6937 = vmatprep.mubr.msk.bf16.mxu1 %vm3463_vm15, %v9764_v16  ;;  %v4377_v16 = vsel %vm10658_vm14, %v4374_v59, %v4376_v7 }
 0x437   : > { %6938 = vmatmul.mubr.msk.bf16.gmra.mrb[156].mxu1 %vm3463_vm15, %v9811_v46  ;;  %v4379_v46 = vsel %vm10660_vm13, %v4376_v7, %v10659_v19 }
 0x438   : > { %6941 = vmatprep.mubr.msk.bf16.mxu1 %vm3463_vm15, %v9852_v58  ;;  %v10662_v58 = vld [vmem:[#allocation35_spill] sm:$0xff] }
 0x43f   : > { %6942 = vmatmul.mubr.msk.bf16.gmra.mrb[160].mxu1 %vm3463_vm15, %v9880_v30  ;;  %v4563_v30 = vrot.slane %v9559_v31, 4  ;;  %v10673_v31 = vrot.slane %v9619_v3, 5 }
 0x440   : > { %6947 = vmatprep.mubr.msk.bf16.mxu1 %vm3463_vm15, %v4371_v15 }
 0x441   : > { %v4565_v26 = vsel %vm2123_vm7, %v4563_v30, %v4564_v44 }
 0x447   : > { %6948 = vmatmul.mubr.msk.bf16.vlgmr.msra.gmra.mrb[144].mxu1 %vm3463_vm15, %v4373_v60 }
 0x448   : > { %6968 = vmatpush3.bf16.msra.mxu1 %v7409_v4  ;;  %6951 = vmatprep.mubr.msk.bf16.mxu1 %vm3463_vm15, %v4375_v28 }
 0x449   : > { %6989 = vmatprep.subr.bf16.mxu1 %v7410_v22 }
 0x44f   : > { %6952 = vmatmul.mubr.msk.bf16.gmra.mrb[148].mxu1 %vm3463_vm15, %v4377_v16 }
 0x450   : > { %6955 = vmatprep.mubr.msk.bf16.mxu1 %vm3463_vm15, %v4379_v46 }
 0x457   : > { %6956 = vmatmul.mubr.msk.bf16.gmra.mrb[152].mxu1 %vm3463_vm15, %v9688_v38  ;;  %v4566_v38 = vrot.slane %v9590_v41, 4  ;;  %v10675_v41 = vld [vmem:[#allocation34_spill] sm:$0xff] }
 0x458   : > { %6959 = vmatprep.mubr.msk.bf16.mxu1 %vm3463_vm15, %v9737_v54  ;;  %v4568_v54 = vrot.slane %v9606_v47, 4 }
 0x459   : > { %v4567_v1 = vsel %vm2123_vm7, %v4564_v44, %v4566_v38 }
 0x45a   : > { %v4569_v40 = vsel %vm2123_vm7, %v4566_v38, %v4568_v54 }
 0x45f   : > { %6960 = vmatmul.mubr.msk.bf16.gmra.mrb[156].mxu1 %vm3463_vm15, %v10661_v43 }
 0x460   : > { %6963 = vmatprep.mubr.msk.bf16.mxu1 %vm3463_vm15, %v10662_v58 }
 0x467   : > { %6964 = vmatmul.mubr.msk.bf16.gmra.mrb[160].mxu1 %vm3463_vm15, %v9862_v50  ;;  %v10663_v50 = vrot.slane %v9619_v3, 4  ;;  %v5338_v3 = vpop.permute.xlu1 %5337 }
 0x468   : > { %6969 = vmatprep.mubr.msk.bf16.mxu1 %vm3463_vm15, %v4565_v26 }
 0x469   : > { %v4571_v14 = vsel %vm2123_vm7, %v4568_v54, %v10663_v50  ;;  %vm5394_vm7 = vcmp.eq.s32.totalorder %v5338_v3, 1 }
 0x46b   : > { %v5344_v42 = vpop.permute.xlu1 %5343 }
 0x46c   : > { %vm5396_vm0 = vcmp.eq.s32.totalorder %v5344_v42, 1 }
 0x46f   : > { %6970 = vmatmul.mubr.msk.bf16.vlgmr.msra.gmra.mrb[144].mxu1 %vm3463_vm15, %v4567_v1  ;;  %v10111_v32 = vpop.permute.xlu1 %5349 }
 0x470   : > { %6990 = vmatpush3.bf16.msra.mxu1 %v7410_v22  ;;  %6973 = vmatprep.mubr.msk.bf16.mxu1 %vm3463_vm15, %v4569_v40  ;;  %vm5398_vm11 = vcmp.eq.s32.totalorder %v10111_v32, 1 }
 0x471   : > { %7011 = vmatprep.subr.bf16.mxu1 %v7411_v23 }
 0x473   : > { %v10117_v44 = vpop.permute.xlu1 %5355 }
 0x474   : > { %vm5400_vm12 = vcmp.eq.s32.totalorder %v10117_v44, 1 }
 0x477   : > { %6974 = vmatmul.mubr.msk.bf16.gmra.mrb[148].mxu1 %vm3463_vm15, %v4571_v14 }
 0x478   : > { %6977 = vmatprep.mubr.msk.bf16.mxu1 %vm3463_vm15, %v10664_v34 }
 0x47f   : > { %6978 = vmatmul.mubr.msk.bf16.gmra.mrb[152].mxu1 %vm3463_vm15, %v10665_v18 }
 0x480   : > { %6981 = vmatprep.mubr.msk.bf16.mxu1 %vm3463_vm15, %v10666_v52 }
 0x487   : > { %6982 = vmatmul.mubr.msk.bf16.gmra.mrb[156].mxu1 %vm3463_vm15, %v9833_v55  ;;  %v10671_v55 = vld [vmem:[#allocation29_spill] sm:$0xff] }
 0x488   : > { %6985 = vmatprep.mubr.msk.bf16.mxu1 %vm3463_vm15, %v9868_v61  ;;  %v10672_v61 = vld [vmem:[#allocation33_spill] sm:$0xff] }
 0x48f   : > { %6986 = vmatmul.mubr.msk.bf16.gmra.mrb[160].mxu1 %vm3463_vm15, %v9889_v2  ;;  %v4977_v2 = vrot.slane %v9575_v12, 5 }
 0x490   : > { %6991 = vmatprep.mubr.msk.bf16.mxu1 %vm3463_vm15, %v10667_v45 }
 0x491   : > { %v4978_v13 = vsel %vm2695_vm10, %v4976_v56, %v4977_v2 }
 0x497   : > { %6992 = vmatmul.mubr.msk.bf16.vlgmr.msra.gmra.mrb[144].mxu1 %vm3463_vm15, %v10668_v11 }
 0x498   : > { %7012 = vmatpush3.bf16.msra.mxu1 %v7411_v23  ;;  %6995 = vmatprep.mubr.msk.bf16.mxu1 %vm3463_vm15, %v10669_v57 }
 0x49f   : > { %6996 = vmatmul.mubr.msk.bf16.gmra.mrb[148].mxu1 %vm3463_vm15, %v10670_v0 }
 0x4a0   : > { %6999 = vmatprep.mubr.msk.bf16.mxu1 %vm3463_vm15, %v10671_v55 }
 0x4a7   : > { %7000 = vmatmul.mubr.msk.bf16.gmra.mrb[152].mxu1 %vm3463_vm15, %v10672_v61 }
 0x4a8   : > { %7003 = vmatprep.mubr.msk.bf16.mxu1 %vm3463_vm15, %v9841_v37  ;;  %v4981_v37 = vrot.slane %v9606_v47, 5  ;;  %v5335_v47 = vpop.permute.xlu0 %5334 }
 0x4aa   : > { %v4984_v12 = vsel %vm2695_vm10, %v4981_v37, %v10673_v31 }
 0x4ac   : > { %v5341_v6 = vpop.permute.xlu0 %5340 }
 0x4af   : > { %7004 = vmatmul.mubr.msk.bf16.gmra.mrb[156].mxu1 %vm3463_vm15, %v9856_v17  ;;  %v4980_v17 = vsel %vm2695_vm10, %v4977_v2, %v4979_v25 }
 0x4b0   : > { %7007 = vmatprep.mubr.msk.bf16.mxu1 %vm3463_vm15, %v9886_v5  ;;  %v4982_v5 = vsel %vm2695_vm10, %v4979_v25, %v4981_v37  ;;  %vm5393_vm10 = vcmp.eq.s32.totalorder %v5335_v47, 1  ;;  %v10123_v37 = vpop.permute.xlu1 %5361 }
 0x4b1   : > { %vm5402_vm3 = vcmp.eq.s32.totalorder %v10123_v37, 1 }
 0x4b7   : > { %7008 = vmatmul.mubr.msk.bf16.gmra.mrb[160].mxu1 %vm3463_vm15, %v9899_v9  ;;  %v10674_v9 = vld [vmem:[#allocation30_spill] sm:$0xff] }
 0x4b8   : > { %7013 = vmatprep.mubr.msk.bf16.mxu1 %vm3463_vm15, %v4978_v13 }
 0x4bf   : > { %7014 = vmatmul.mubr.msk.bf16.vlgmr.msra.gmra.mrb[144].mxu1 %vm3463_vm15, %v4980_v17 }
 0x4c0   : > { %7017 = vmatprep.mubr.msk.bf16.mxu1 %vm3463_vm15, %v4982_v5 }
 0x4c7   : > { %7018 = vmatmul.mubr.msk.bf16.gmra.mrb[148].mxu1 %vm3463_vm15, %v4984_v12 }
 0x4c8   : > { %7021 = vmatprep.mubr.msk.bf16.mxu1 %vm3463_vm15, %v10674_v9 }
 0x4cf   : > { %7022 = vmatmul.mubr.msk.bf16.gmra.mrb[152].mxu1 %vm3463_vm15, %v10675_v41 }
 0x4d0   : > { %7025 = vmatprep.mubr.msk.bf16.mxu1 %vm3463_vm15, %v9846_v62 }
 0x4d7   : > { %7026 = vmatmul.mubr.msk.bf16.gmra.mrb[156].mxu1 %vm3463_vm15, %v9871_v8 }
 0x4d8   : > { %7029 = vmatprep.mubr.msk.bf16.mxu1 %vm3463_vm15, %v9883_v63  ;;  %v10107_v63 = vpop.permute.xlu0 %5346 }
 0x4d9   : > { %vm5397_vm6 = vcmp.eq.s32.totalorder %v10107_v63, 1 }
 0x4dc   : > { %v10113_v60 = vpop.permute.xlu0 %5352 }
 0x4dd   : > { %vm5399_vm2 = vcmp.eq.s32.totalorder %v10113_v60, 1 }
 0x4df   : > { %7030 = vmatmul.mubr.msk.bf16.gmra.mrb[160].mxu1 %vm3463_vm15, %v9892_v39  ;;  %vm5395_vm15 = vcmp.eq.s32.totalorder %v5341_v6, 1 }
 0x4e0   : > { %v10121_v57 = vpop.permute.xlu0 %5358 }
 0x4e1   : > { %vm5401_vm1 = vcmp.eq.s32.totalorder %v10121_v57, 1 }
 0x592   : > { %v7015_v29 = vpop.f32.mrb[144].mxu1 }
 0x593   : > { %v5175_v62 = vadd.f32 %v7015_v29, %v10103_v51  ;;  %v5067_v36 = vpop.f32.mrb[145].mxu1 }
 0x594   : > { %v5173_v8 = vadd.f32 %v10103_v51, %v5067_v36  ;;  %v7016_v49 = vpop.f32.mrb[146].mxu1 }
 0x595   : > { %v5195_v53 = vmax.f32 %v5175_v62, 0.0  ;;  %v5176_v39 = vadd.f32 %v7016_v49, %v10103_v51  ;;  %v5070_v27 = vpop.f32.mrb[147].mxu1 }
 0x596   : > { %v5193_v48 = vmax.f32 %v5173_v8, 0.0  ;;  %v5174_v20 = vadd.f32 %v10103_v51, %v5070_v27  ;;  %v5365_v27 = vpop.permute.xlu0 %5364 }
 0x597   : > { %v5215_v21 = vmax.f32 %v5195_v53, 1e-06  ;;  %v5196_v35 = vmax.f32 %v5176_v39, 0.0  ;;  %vm5403_vm8 = vcmp.eq.s32.totalorder %v5365_v27, 1 }
 0x598   : > { %v5213_v4 = vmax.f32 %v5193_v48, 1e-06  ;;  %v5194_v33 = vmax.f32 %v5174_v20, 0.0 }
 0x599   : > { %v5216_v10 = vmax.f32 %v5196_v35, 1e-06  ;;  %v5275_v15 = vmul.f32 %v5215_v21, %v5215_v21 }
 0x59a   : > { %v5273_v24 = vmul.f32 %v5213_v4, %v5213_v4  ;;  %v5214_v59 = vmax.f32 %v5194_v33, 1e-06  ;;  %v7019_v22 = vpop.f32.mrb[148].mxu1 }
 0x59b   : > { %v5276_v28 = vmul.f32 %v5216_v10, %v5216_v10  ;;  %v5179_v7 = vadd.f32 %v7019_v22, %v10103_v51  ;;  %v5083_v16 = vpop.f32.mrb[149].mxu1  ;;  %v5295_v54 = vmul.f32 %v5275_v15, %v5215_v21 }
 0x59c   : > { %v5293_v19 = vmul.f32 %v5273_v24, %v5213_v4  ;;  %v5274_v46 = vmul.f32 %v5214_v59, %v5214_v59  ;;  %v5177_v43 = vadd.f32 %v10103_v51, %v5083_v16  ;;  %v7020_v58 = vpop.f32.mrb[150].mxu1 }
 0x59d   : > { %v5199_v30 = vmax.f32 %v5179_v7, 0.0  ;;  %v5180_v26 = vadd.f32 %v7020_v58, %v10103_v51  ;;  %v5086_v38 = vpop.f32.mrb[151].mxu1  ;;  %v5296_v50 = vmul.f32 %v5276_v28, %v5216_v10  ;;  %v5415_v2 = vsel %vm5395_vm15, %v5295_v54, 0.0  ;;  %v5368_v10 = vpop.permute.xlu1 %5367 }
 0x59e   : > { %v5294_v23 = vmul.f32 %v5274_v46, %v5214_v59  ;;  %v5197_v1 = vmax.f32 %v5177_v43, 0.0  ;;  %v5178_v40 = vadd.f32 %v10103_v51, %v5086_v38  ;;  %v5413_v18 = vsel %vm5393_vm10, %v5293_v19, 0.0  ;;  %v5371_v54 = vpop.permute.xlu0 %5370 }
 0x59f   : > { %v5219_v14 = vmax.f32 %v5199_v30, 1e-06  ;;  %v5200_v34 = vmax.f32 %v5180_v26, 0.0  ;;  %v5416_v17 = vsel %vm5396_vm0, %v5296_v50, 0.0  ;;  %vm5404_vm5 = vcmp.eq.s32.totalorder %v5368_v10, 1 }
 0x5a0   : > { %v5414_v52 = vsel %vm5394_vm7, %v5294_v23, 0.0  ;;  %v5217_v45 = vmax.f32 %v5197_v1, 1e-06  ;;  %v5198_v11 = vmax.f32 %v5178_v40, 0.0  ;;  %vm5405_vm9 = vcmp.eq.s32.totalorder %v5371_v54, 1 }
 0x5a1   : > { %v5434_v0 = vadd.f32 %v5414_v52, %v5413_v18  ;;  %v5279_v55 = vmul.f32 %v5219_v14, %v5219_v14  ;;  %v5220_v61 = vmax.f32 %v5200_v34, 1e-06  ;;  %v5374_v52 = vpop.permute.xlu1 %5373 }
 0x5a2   : > { %v5277_v56 = vmul.f32 %v5217_v45, %v5217_v45  ;;  %v5218_v13 = vmax.f32 %v5198_v11, 1e-06  ;;  %v7023_v25 = vpop.f32.mrb[152].mxu1  ;;  %vm5406_vm4 = vcmp.eq.s32.totalorder %v5374_v52, 1 }
 0x5a3   : > { %v5435_v5 = vadd.f32 %v5434_v0, %v5415_v2  ;;  %v5183_v31 = vadd.f32 %v7023_v25, %v10103_v51  ;;  %v5099_v12 = vpop.f32.mrb[153].mxu1  ;;  %v5280_v41 = vmul.f32 %v5220_v61, %v5220_v61  ;;  %v5299_v42 = vmul.f32 %v5279_v55, %v5219_v14 }
 0x5a4   : > { %v5297_v9 = vmul.f32 %v5277_v56, %v5217_v45  ;;  %v5278_v47 = vmul.f32 %v5218_v13, %v5218_v13  ;;  %v5181_v3 = vadd.f32 %v10103_v51, %v5099_v12  ;;  %v7024_v6 = vpop.f32.mrb[154].mxu1 }
 0x5a5   : > { %v5436_v29 = vadd.f32 %v5435_v5, %v5416_v17  ;;  %v5203_v62 = vmax.f32 %v5183_v31, 0.0  ;;  %v5102_v36 = vpop.f32.mrb[155].mxu1  ;;  %v5184_v39 = vadd.f32 %v7024_v6, %v10103_v51  ;;  %v5300_v35 = vmul.f32 %v5280_v41, %v5220_v61 }
 0x5a6   : > { %v5417_v8 = vsel %vm5397_vm6, %v5297_v9, 0.0  ;;  %v5298_v49 = vmul.f32 %v5278_v47, %v5218_v13  ;;  %v5201_v53 = vmax.f32 %v5181_v3, 0.0  ;;  %v5182_v21 = vadd.f32 %v10103_v51, %v5102_v36  ;;  %v5377_v9 = vpop.permute.xlu0 %5376 }
 0x5a7   : > { %v5437_v48 = vadd.f32 %v5436_v29, %v5417_v8  ;;  %v5223_v20 = vmax.f32 %v5203_v62, 1e-06  ;;  %v5204_v63 = vmax.f32 %v5184_v39, 0.0  ;;  %v5419_v59 = vsel %vm5399_vm2, %v5299_v42, 0.0  ;;  %v5380_v8 = vpop.permute.xlu1 %5379 }
 0x5a8   : > { %v5418_v4 = vsel %vm5398_vm11, %v5298_v49, 0.0  ;;  %v5221_v33 = vmax.f32 %v5201_v53, 1e-06  ;;  %v5202_v24 = vmax.f32 %v5182_v21, 0.0  ;;  %v5420_v58 = vsel %vm5400_vm12, %v5300_v35, 0.0 }
 0x5a9   : > { %v5438_v15 = vadd.f32 %v5437_v48, %v5418_v4  ;;  %v5283_v22 = vmul.f32 %v5223_v20, %v5223_v20  ;;  %v5224_v7 = vmax.f32 %v5204_v63, 1e-06  ;;  %vm5407_vm14 = vcmp.eq.s32.totalorder %v5377_v9, 1  ;;  %v5476_v9 = vld [vmem:[%s10407_s5] sm:$0xff] (!%p6082_p13) }
 0x5aa   : > { %v5281_v28 = vmul.f32 %v5221_v33, %v5221_v33  ;;  %v7027_v16 = vpop.f32.mrb[156].mxu1  ;;  %v5222_v19 = vmax.f32 %v5202_v24, 1e-06  ;;  %vm5408_vm13 = vcmp.eq.s32.totalorder %v5380_v8, 1  ;;  %v5566_v8 = vld [vmem:[%s10409_s7 + $0x18] sm:$0xff] (!%p6082_p13)  ;;  %vm7588_vm6 = vmmov (!%p6082_p13), 0  }
 0x5ab   : > { %v5439_v32 = vadd.f32 %v5438_v15, %v5419_v59  ;;  %v5187_v46 = vadd.f32 %v7027_v16, %v10103_v51  ;;  %v5115_v43 = vpop.f32.mrb[157].mxu1  ;;  %v5284_v26 = vmul.f32 %v5224_v7, %v5224_v7  ;;  %v5303_v14 = vmul.f32 %v5283_v22, %v5223_v20  ;;  %v5383_v22 = vpop.permute.xlu0 %5382 }
 0x5ac   : > { %v5301_v30 = vmul.f32 %v5281_v28, %v5221_v33  ;;  %v5185_v60 = vadd.f32 %v10103_v51, %v5115_v43  ;;  %v7028_v38 = vpop.f32.mrb[158].mxu1  ;;  %v5282_v1 = vmul.f32 %v5222_v19, %v5222_v19  ;;  %v5386_v43 = vpop.permute.xlu1 %5385  ;;  %vm5409_vm7 = vcmp.eq.s32.totalorder %v5383_v22, 1 }
 0x5ad   : > { %v5440_v23 = vadd.f32 %v5439_v32, %v5420_v58  ;;  %v5207_v40 = vmax.f32 %v5187_v46, 0.0  ;;  %v5118_v50 = vpop.f32.mrb[159].mxu1  ;;  %v5188_v18 = vadd.f32 %v7028_v38, %v10103_v51  ;;  %v5304_v61 = vmul.f32 %v5284_v26, %v5224_v7 }
 0x5ae   : > { %v5421_v44 = vsel %vm5401_vm1, %v5301_v30, 0.0  ;;  %v5205_v34 = vmax.f32 %v5185_v60, 0.0  ;;  %v5302_v11 = vmul.f32 %v5282_v1, %v5222_v19  ;;  %v5186_v55 = vadd.f32 %v10103_v51, %v5118_v50 }
 0x5af   : > { %v5441_v45 = vadd.f32 %v5440_v23, %v5421_v44  ;;  %v5227_v0 = vmax.f32 %v5207_v40, 1e-06  ;;  %v5208_v2 = vmax.f32 %v5188_v18, 0.0  ;;  %v5423_v41 = vsel %vm5403_vm8, %v5303_v14, 0.0  ;;  %v5389_v50 = vpop.permute.xlu0 %5388 }
 0x5b0   : > { %v5225_v57 = vmax.f32 %v5205_v34, 1e-06  ;;  %v5422_v56 = vsel %vm5402_vm3, %v5302_v11, 0.0  ;;  %v5206_v13 = vmax.f32 %v5186_v55, 0.0  ;;  %v5424_v37 = vsel %vm5404_vm5, %v5304_v61, 0.0  ;;  %v5392_v18 = vpop.permute.xlu1 %5391 }
 0x5b1   : > { %v5442_v25 = vadd.f32 %v5441_v45, %v5422_v56  ;;  %v5287_v17 = vmul.f32 %v5227_v0, %v5227_v0  ;;  %v5228_v31 = vmax.f32 %v5208_v2, 1e-06  ;;  %vm5410_vm10 = vcmp.eq.s32.totalorder %v5386_v43, 1 }
 0x5b2   : > { %v5285_v5 = vmul.f32 %v5225_v57, %v5225_v57  ;;  %v7031_v12 = vpop.f32.mrb[160].mxu1  ;;  %v5226_v47 = vmax.f32 %v5206_v13, 1e-06  ;;  %vm5411_vm15 = vcmp.eq.s32.totalorder %v5389_v50, 1  ;;  %vm5412_vm0 = vcmp.eq.s32.totalorder %v5392_v18, 1  ;;  %v5491_v18 = vld [vmem:[%s10407_s5 + $0x78] sm:$0xff] (!%p6082_p13) }
 0x5b3   : > { %v5191_v3 = vadd.f32 %v7031_v12, %v10103_v51  ;;  %v5131_v6 = vpop.f32.mrb[161].mxu1  ;;  %v5443_v42 = vadd.f32 %v5442_v25, %v5423_v41  ;;  %v5288_v49 = vmul.f32 %v5228_v31, %v5228_v31  ;;  %v5307_v20 = vmul.f32 %v5287_v17, %v5227_v0  ;;  %v5477_v41 = vld [vmem:[%s10407_s5 + $0x8] sm:$0xff] (!%p6082_p13) }
 0x5b4   : > { %v5305_v29 = vmul.f32 %v5285_v5, %v5225_v57  ;;  %v5189_v62 = vadd.f32 %v10103_v51, %v5131_v6  ;;  %v7032_v36 = vpop.f32.mrb[162].mxu1  ;;  %v5286_v53 = vmul.f32 %v5226_v47, %v5226_v47  ;;  %v5433_v5 = vld [vmem:[#allocation3] sm:$0x1]  ;;  %v7104_v6 = vpack.c.bf16 (!%p6082_p13), %v5477_v41, %v5476_v9 }
 0x5b5   : > { %v5211_v39 = vmax.f32 %v5191_v3, 0.0  ;;  %v5192_v27 = vadd.f32 %v7032_v36, %v10103_v51  ;;  %v5134_v48 = vpop.f32.mrb[163].mxu1  ;;  %v5444_v35 = vadd.f32 %v5443_v42, %v5424_v37  ;;  %v5308_v28 = vmul.f32 %v5288_v49, %v5228_v31  ;;  %v5564_v37 = vld [vmem:[%s10409_s7 + $0x8] sm:$0xff] (!%p6082_p13)  ;;  %v5478_v42 = vld [vmem:[%s10407_s5 + $0x10] sm:$0xff] (!%p6082_p13) }
 0x5b6   : > { %v5425_v21 = vsel %vm5405_vm9, %v5305_v29, 0.0  ;;  %v5209_v4 = vmax.f32 %v5189_v62, 0.0  ;;  %v5306_v33 = vmul.f32 %v5286_v53, %v5226_v47  ;;  %v5190_v15 = vadd.f32 %v10103_v51, %v5134_v48  ;;  %v5563_v47 = vld [vmem:[%s10409_s7] sm:$0xff] (!%p6082_p13)  ;;  %v5479_v29 = vld [vmem:[%s10407_s5 + $0x18] sm:$0xff] (!%p6082_p13)  ;;  %v5565_v36 = vld [vmem:[%s10409_s7 + $0x10] sm:$0xff] (!%p6082_p13) }
 0x5b7   : > { %v5231_v63 = vmax.f32 %v5211_v39, 1e-06  ;;  %v5212_v10 = vmax.f32 %v5192_v27, 0.0  ;;  %v5445_v24 = vadd.f32 %v5444_v35, %v5425_v21  ;;  %v5427_v58 = vsel %vm5407_vm14, %v5307_v20, 0.0  ;;  %v5480_v27 = vld [vmem:[%s10407_s5 + $0x20] sm:$0xff] (!%p6082_p13)  ;;  %v5481_v48 = vld [vmem:[%s10407_s5 + $0x28] sm:$0xff] (!%p6082_p13) }
 0x5b8   : > { %v5229_v59 = vmax.f32 %v5209_v4, 1e-06  ;;  %v5426_v7 = vsel %vm5406_vm4, %v5306_v33, 0.0  ;;  %v5210_v32 = vmax.f32 %v5190_v15, 0.0  ;;  %v5428_v51 = vsel %vm5408_vm13, %v5308_v28, 0.0  ;;  %v5567_v20 = vld [vmem:[%s10409_s7 + $0x20] sm:$0xff] (!%p6082_p13) }
 0x5b9   : > { %v5232_v16 = vmax.f32 %v5212_v10, 1e-06  ;;  %v5446_v19 = vadd.f32 %v5445_v24, %v5426_v7  ;;  %v5291_v30 = vmul.f32 %v5231_v63, %v5231_v63  ;;  %v7587_v3 = vmov (!%p6082_p13), 0.0|0.0   ;;  %v5568_v21 = vld [vmem:[%s10409_s7 + $0x28] sm:$0xff] (!%p6082_p13)  ;;  %v5482_v33 = vld [vmem:[%s10407_s5 + $0x30] sm:$0xff] (!%p6082_p13)  ;;  %v5570_v15 = vld [vmem:[%s10409_s7 + $0x38] sm:$0xff] (!%p6082_p13) }
 0x5ba   : > { %v5289_v46 = vmul.f32 %v5229_v59, %v5229_v59  ;;  %v5230_v26 = vmax.f32 %v5210_v32, 1e-06  ;;  %7103 = vmatprep.subr.bf16.mxu0 (!%p6082_p13), %v7587_v3  ;;  %7127 = vmatprep.subr.bf16.mxu1 (!%p6082_p13), %v7587_v3  ;;  %v7128_v62 = vpack.c.bf16 (!%p6082_p13), %v5564_v37, %v5563_v47  ;;  %v7589_v49 = vmov (!%p6082_p13), 0.0   ;;  %v5569_v10 = vld [vmem:[%s10409_s7 + $0x30] sm:$0xff] (!%p6082_p13)  ;;  %v5484_v7 = vld [vmem:[%s10407_s5 + $0x40] sm:$0xff] (!%p6082_p13) }
 0x5bb   : > { %v5447_v60 = vadd.f32 %v5446_v19, %v5427_v58  ;;  %v5292_v54 = vmul.f32 %v5232_v16, %v5232_v16  ;;  %v5311_v14 = vmul.f32 %v5291_v30, %v5231_v63  ;;  %7065 = vmatprep.mubr.msk.f32.mxu0 (!%p6082_p13), %vm7588_vm6, %v7589_v49  ;;  %7100 = vmatprep.mubr.msk.f32.mxu1 (!%p6082_p13), %vm7588_vm6, %v7589_v49  ;;  %v5483_v63 = vld [vmem:[%s10407_s5 + $0x38] sm:$0xff] (!%p6082_p13)  ;;  %v5571_v32 = vld [vmem:[%s10409_s7 + $0x40] sm:$0xff] (!%p6082_p13)  ;;  %v5572_v19 = vld [vmem:[%s10409_s7 + $0x48] sm:$0xff] (!%p6082_p13)  ;;  %vm5651_vm2 = vcmask (!%p6082_p13), 1040384  }
 0x5bc   : > { %v5309_v38 = vmul.f32 %v5289_v46, %v5229_v59  ;;  %v5290_v23 = vmul.f32 %v5230_v26, %v5230_v26  ;;  %7105 = vmatpush3.bf16.msra.mxu0 (!%p6082_p13), %v7104_v6  ;;  %v7107_v53 = vpack.c.bf16 (!%p6082_p13), %v5479_v29, %v5478_v42  ;;  %7129 = vmatpush3.bf16.msra.mxu1 (!%p6082_p13), %v7128_v62  ;;  %v5486_v58 = vld [vmem:[%s10407_s5 + $0x50] sm:$0xff] (!%p6082_p13)  ;;  %v5487_v30 = vld [vmem:[%s10407_s5 + $0x58] sm:$0xff] (!%p6082_p13)  ;;  %v5492_v29 = vld [vmem:[%s10408_s6] sm:$0x1] (!%p6082_p13) }
 0x5bd   : > { %v5448_v40 = vadd.f32 %v5447_v60, %v5428_v51  ;;  %v5312_v52 = vmul.f32 %v5292_v54, %v5232_v16  ;;  %v5431_v0 = vsel %vm5411_vm15, %v5311_v14, 0.0  ;;  %7106 = vmatprep.subr.bf16.mxu0 (!%p6082_p13), %v7587_v3  ;;  %v7131_v39 = vpack.c.bf16 (!%p6082_p13), %v5566_v8, %v5565_v36  ;;  %7130 = vmatprep.subr.bf16.mxu1 (!%p6082_p13), %v7587_v3  ;;  %v5485_v16 = vld [vmem:[%s10407_s5 + $0x48] sm:$0xff] (!%p6082_p13)  ;;  %v5574_v60 = vld [vmem:[%s10409_s7 + $0x58] sm:$0xff] (!%p6082_p13)  ;;  %v5488_v54 = vld [vmem:[%s10407_s5 + $0x60] sm:$0xff] (!%p6082_p13) }
 0x5be   : > { %v5429_v1 = vsel %vm5409_vm7, %v5309_v38, 0.0  ;;  %v5310_v44 = vmul.f32 %v5290_v23, %v5230_v26  ;;  %v7110_v35 = vpack.c.bf16 (!%p6082_p13), %v5481_v48, %v5480_v27  ;;  %v7134_v4 = vpack.c.bf16 (!%p6082_p13), %v5568_v21, %v5567_v20  ;;  %v5573_v26 = vld [vmem:[%s10409_s7 + $0x50] sm:$0xff] (!%p6082_p13)  ;;  %v5489_v23 = vld [vmem:[%s10407_s5 + $0x68] sm:$0xff] (!%p6082_p13)  ;;  %v5579_v62 = vld [vmem:[%s10410_s8] sm:$0x1] (!%p6082_p13) }
 0x5bf   : > { %v5449_v34 = vadd.f32 %v5448_v40, %v5429_v1  ;;  %v5432_v61 = vsel %vm5412_vm0, %v5312_v52, 0.0  ;;  %v7113_v59 = vpack.c.bf16 (!%p6082_p13), %v5483_v63, %v5482_v33  ;;  %v7137_v28 = vpack.c.bf16 (!%p6082_p13), %v5570_v15, %v5569_v10  ;;  %v5575_v1 = vld [vmem:[%s10409_s7 + $0x60] sm:$0xff] (!%p6082_p13)  ;;  %v5576_v40 = vld [vmem:[%s10409_s7 + $0x68] sm:$0xff] (!%p6082_p13) }
 0x5c0   : > { %v5430_v45 = vsel %vm5410_vm10, %v5310_v44, 0.0  ;;  %7108 = vmatpush3.bf16.msra.mxu0 (!%p6082_p13), %v7107_v53  ;;  %7132 = vmatpush3.bf16.msra.mxu1 (!%p6082_p13), %v7131_v39  ;;  %v7116_v46 = vpack.c.bf16 (!%p6082_p13), %v5485_v16, %v5484_v7  ;;  %v7140_v43 = vpack.c.bf16 (!%p6082_p13), %v5572_v19, %v5571_v32  ;;  %v7119_v38 = vpack.c.bf16 (!%p6082_p13), %v5487_v30, %v5486_v58 }
 0x5c1   : > { %v5450_v11 = vadd.f32 %v5449_v34, %v5430_v45  ;;  %7109 = vmatprep.subr.bf16.mxu0 (!%p6082_p13), %v7587_v3  ;;  %7133 = vmatprep.subr.bf16.mxu1 (!%p6082_p13), %v7587_v3  ;;  %v7143_v51 = vpack.c.bf16 (!%p6082_p13), %v5574_v60, %v5573_v26  ;;  %v7122_v14 = vpack.c.bf16 (!%p6082_p13), %v5489_v23, %v5488_v54  ;;  %v5490_v34 = vld [vmem:[%s10407_s5 + $0x70] sm:$0xff] (!%p6082_p13) }
 0x5c2   : > { %v7146_v44 = vpack.c.bf16 (!%p6082_p13), %v5576_v40, %v5575_v1  ;;  %v5577_v45 = vld [vmem:[%s10409_s7 + $0x70] sm:$0xff] (!%p6082_p13) }
 0x5c3   : > { %v5451_v55 = vadd.f32 %v5450_v11, %v5431_v0  ;;  %v5578_v11 = vld [vmem:[%s10409_s7 + $0x78] sm:$0xff] (!%p6082_p13) }
 0x5c4   : > { %7111 = vmatpush3.bf16.msra.mxu0 (!%p6082_p13), %v7110_v35  ;;  %7135 = vmatpush3.bf16.msra.mxu1 (!%p6082_p13), %v7134_v4 }
 0x5c5   : > { %v5452_v57 = vadd.f32 %v5451_v55, %v5432_v61  ;;  %7112 = vmatprep.subr.bf16.mxu0 (!%p6082_p13), %v7587_v3  ;;  %7136 = vmatprep.subr.bf16.mxu1 (!%p6082_p13), %v7587_v3  ;;  %v7125_v55 = vpack.c.bf16 (!%p6082_p13), %v5491_v18, %v5490_v34  ;;  %v7149_v61 = vpack.c.bf16 (!%p6082_p13), %v5578_v11, %v5577_v45 }
 0x5c7   : > { %v5453_v2 = vrot.slane %v5452_v57, 4 }
 0x5c8   : > { %7114 = vmatpush3.bf16.msra.mxu0 (!%p6082_p13), %v7113_v59  ;;  %7138 = vmatpush3.bf16.msra.mxu1 (!%p6082_p13), %v7137_v28 }
 0x5c9   : > { %v5454_v56 = vadd.f32 %v5453_v2, %v5452_v57  ;;  %7115 = vmatprep.subr.bf16.mxu0 (!%p6082_p13), %v7587_v3  ;;  %7139 = vmatprep.subr.bf16.mxu1 (!%p6082_p13), %v7587_v3  ;;  %v5472_v2 = vlaneseq (!%p6082_p13) }
 0x5cb   : > { %v5455_v13 = vrot.slane %v5454_v56, 2 }
 0x5cc   : > { %7117 = vmatpush3.bf16.msra.mxu0 (!%p6082_p13), %v7116_v46  ;;  %7141 = vmatpush3.bf16.msra.mxu1 (!%p6082_p13), %v7140_v43 }
 0x5cd   : > { %v5456_v25 = vadd.f32 %v5455_v13, %v5454_v56  ;;  %7118 = vmatprep.subr.bf16.mxu0 (!%p6082_p13), %v7587_v3  ;;  %7142 = vmatprep.subr.bf16.mxu1 (!%p6082_p13), %v7587_v3  ;;  %v5473_v56 = vand.u32 (!%p6082_p13), 127, %v5472_v2 }
 0x5cf   : > { %v5457_v17 = vrot.slane %v5456_v25, 1  ;;  %5464 = sbr.rel (%p6082_p13) target bundleno = 1746 (0x6d2), region = 107  ;;  %vm5474_vm11 = vcmp.lt.s32.totalorder (!%p6082_p13), %v5473_v56, 32 }
 0x5d0   : > { %7120 = vmatpush3.bf16.msra.mxu0 (!%p6082_p13), %v7119_v38  ;;  %7144 = vmatpush3.bf16.msra.mxu1 (!%p6082_p13), %v7143_v51 }
 0x5d1   : > { %v5458_v31 = vadd.f32 %v5457_v17, %v5456_v25  ;;  %7121 = vmatprep.subr.bf16.mxu0 (!%p6082_p13), %v7587_v3  ;;  %7145 = vmatprep.subr.bf16.mxu1 (!%p6082_p13), %v7587_v3 }
 0x5d3   : > { %v5459_v12 = vadd.f32 %v5458_v31, %v5433_v5 }
 0x5d4   : > { %7123 = vmatpush3.bf16.msra.mxu0 (!%p6082_p13), %v7122_v14  ;;  %7147 = vmatpush3.bf16.msra.mxu1 (!%p6082_p13), %v7146_v44 }
 0x5d5   : > { %5460 = vst [vmem:[#allocation3] sm:$0x1] %v5459_v12  ;;  %7124 = vmatprep.subr.bf16.mxu0 (!%p6082_p13), %v7587_v3  ;;  %7148 = vmatprep.subr.bf16.mxu1 (!%p6082_p13), %v7587_v3 }
 0x5d8   : > { %7126 = vmatpush3.bf16.msra.mxu0 %v7125_v55  ;;  %7150 = vmatpush3.bf16.msra.mxu1 %v7149_v61 }
 0x5dc   : > { %v5465_v24 = vld [vmem:[#allocation3] sm:$0x1] }
 0x5dd   : > { %v5466_v22 = vmul.f32 0.00390625, %v5465_v24 }
 0x5df   : > { %7417 = vlog2.f32 %v5466_v22 }
 0x5e9   : > { %v7418_v50 = vpop.eup %7417 }
 0x5ea   : > { %v5468_v52 = vmul.f32 0.6931472, %v7418_v50 }
 0x5ec   : > { %v5469_v0 = vmul.f32 0.33333334, %v5468_v52 }
 0x5ee   : > { %v5470_v57 = vmul.f32 1.442695, %v5469_v0 }
 0x5f0   : > { %7419 = vpow2.f32 %v5470_v57 }
 0x5fa   : > { %v7420_v13 = vpop.eup %7419 }
 0x5fb   : > { %7066 = vmatmul.mubr.msk.f32.vlgmr.msra.gmra.mrb[0].mxu0 %vm5474_vm11, %v7420_v13  ;;  %7101 = vmatmul.mubr.msk.f32.vlgmr.msra.gmra.mrb[0].mxu1 %vm5474_vm11, %v7420_v13  ;;  %v5475_v25 = vsel %vm5474_vm11, %v7420_v13, 0.0 }
 0x5fc   : > { %v5650_v17 = vmul.f32 %v5475_v25, %v5475_v25 }
 0x5fe   : > { %v5652_v5 = vsel %vm5651_vm2, %v5650_v17, 0.0 }
 0x5ff   : > { %5653 = vadd.xlane.f32.xlu0 %v5652_v5 }
 0x68c   : > { %v5654_v31 = vpop.xlane.xlu0 %5653 }
 0x68d   : > { %7421 = vrsqrt.f32 %v5654_v31  ;;  %vm5657_vm12 = vcmp.eq.f32.partialorder %v5654_v31, inf  ;;  %v5660_v9 = vand.u32 2147483648, %v5654_v31  ;;  %vm5659_vm1 = vcmp.eq.f32.partialorder %v5654_v31, 0.0 }
 0x697   : > { %v7422_v12 = vpop.eup %7421 }
 0x698   : > { %v5656_v41 = vmul.f32 %v7422_v12, %v5654_v31 }
 0x69a   : > { %v5658_v47 = vsel %vm5657_vm12, %v5654_v31, %v5656_v41 }
 0x69b   : > { %v5661_v3 = vsel %vm5659_vm1, %v5660_v9, %v5658_v47 }
 0x69c   : > { %v5662_v6 = vadd.f32 1e-06, %v5661_v3 }
 0x69e   : > { %7423 = vrcp.f32 %v5662_v6 }
 0x6a8   : > { %v7424_v37 = vpop.eup %7423 }
 0x6a9   : > { %v5664_v42 = vmul.f32 %v7424_v37, %v5475_v25 }
 0x6ab   : > { %5665 = vst [vmem:[%s10462_s22] sm:$0x1] %v5664_v42 }
 0x6ce   : > { %v5559_v36 = vpop.f32.mrb[0].mxu0  ;;  %v5646_v8 = vpop.f32.mrb[0].mxu1 }
 0x6cf   : > { %v5560_v49 = vadd.f32 %v5559_v36, %v5492_v29  ;;  %v5647_v53 = vadd.f32 %v5646_v8, %v5579_v62  ;;  %v7067_v39 = vpop.f32.mrb[1].mxu0  ;;  %v7102_v27 = vpop.f32.mrb[1].mxu1 }
 0x6d1   : > { %5666 = vst [vmem:[%s440_s18] sm:$0x1] %v5560_v49  ;;  %5667 = vst [vmem:[%s10676_s19] sm:$0x1] %v5647_v53 }
 0x6d2 PF: > { %s10677_s21 = sadd.s32 4294967295, %s7581_s20   ;;  %s10274_s24 = sshll.u32 %s7569_s17, 4 }
 0x6d3   : > { %s10271_s29 = sand.u32 1, %s10677_s21   ;;  %s10280_s28 = scalar_lea.hbm %s10415_s13, %s10274_s24 }
 0x6d4   : > { %s5702_s30 = sshll.u32 %s440_s18, 4  ;;  %s10290_s19 = scalar_lea.hbm %s10414_s12, %s10274_s24  ;;  %s10284_s30 = int_to_ptr.vmem [resolvable:$true] %s5702_s30 }
 0x6d5   : > { %s7425_s21 = scalar_lea.vmem %s10284_s30, 16  ;;  %s7590_s26 = smov [#allocation6]  }
 0x6d6   : > { %p7426_p0 = scmp.ne.s32.totalorder %s10284_s30, %s7425_s21  ;;  %s7429_s27 = sshll.u32 %s7590_s26, 4  ;;  %s7430_s27 = int_to_ptr.vmem [resolvable:$false] %s7429_s27 }
 0x6d7   : > { %s7431_s18 = scalar_lea.vmem %s7430_s27, 32  ;;  %p7432_p4 = scmp.lt.s32.totalorder %s10284_s30, %s7430_s27 }
 0x6d8   : > { %p7427_p1 = pnand %p7426_p0, %p7719_p3  ;;  %p7433_p5 = scmp.lt.s32.totalorder %s7431_s18, %s7425_s21 }
 0x6da   : > { %p7428_p2 = pneg %p7427_p1  ;;  %p7434_p6 = por %p7433_p5, %p7432_p4 }
 0x6dc   : > { %p7435_p7 = pnand %p7434_p6, %p7428_p2 }
 0x6de   : > { %7438 = shalt.err (!%p7435_p7)
}
 0x6df   : > { %s7439_s16 = scalar_lea.hbm %s10280_s28, 16  ;;  %s7443_s26 = scalar_lea.hbm %s10415_s13, 32 }
 0x6e0   : > { %p7440_p8 = scmp.ne.s32.totalorder %s10280_s28, %s7439_s16  ;;  %p7444_p12 = scmp.lt.u32.totalorder %s10280_s28, %s10415_s13 }
 0x6e1   : > { %p7445_p13 = scmp.lt.u32.totalorder %s7443_s26, %s7439_s16  ;;  %p7447_p1 = scmp.lt.u32.totalorder %s7439_s16, %s10280_s28 }
 0x6e2   : > { %p7441_p10 = pnand %p7440_p8, %p7719_p3 }
 0x6e3   : > { %p7446_p0 = por %p7445_p13, %p7444_p12 }
 0x6e4   : > { %p7442_p11 = pneg %p7441_p10 }
 0x6e5   : > { %p7448_p2 = por %p7447_p1, %p7446_p0 }
 0x6e7   : > { %p7449_p4 = pnand %p7448_p2, %p7442_p11 }
 0x6e9   : > { %7452 = shalt.err (!%p7449_p4)
}
 0x6ea   : > { %s10678_s21 = scalar_lea.sflag [#allocation7], %s10271_s29  ;;  %s10679_s22 = scalar_lea.vmem [#allocation4], %s7742_s23 }
 0x6eb   : > { %7314 = dma.vmem_to_hbm [thread:$0]  (%p7719_p3), %s10284_s30, 16, %s10280_s28, %s10678_s21  }
 0x6ec   : > { %s5689_s17 = sshll.u32 %s10679_s22, 4  ;;  %s10322_s16 = scalar_lea.hbm %s10416_s14, %s10274_s24  ;;  %s10324_s17 = int_to_ptr.vmem [resolvable:$true] %s5689_s17 }
 0x6ed   : > { %s10680_s26 = scalar_lea.vmem [#allocation8], %s7742_s23  ;;  %s5669_s0 = scalar_lea.sflag [#allocation5], %s7742_s23 }
 0x6ee   : > { %s10328_s27 = sshll.u32 %s10680_s26, 4  ;;  %s7453_s1 = scalar_lea.vmem %s10324_s17, 16  ;;  %s5716_s27 = int_to_ptr.vmem [resolvable:$true] %s10328_s27 }
 0x6ef   : > { %p7454_p5 = scmp.ne.s32.totalorder %s10324_s17, %s7453_s1  ;;  %s7591_s28 = smov [#allocation4]  }
 0x6f0   : > { %s7457_s30 = sshll.u32 %s7591_s28, 4  ;;  %s7458_s30 = int_to_ptr.vmem [resolvable:$false] %s7457_s30 }
 0x6f1   : > { %p7455_p6 = pnand %p7454_p5, %p7719_p3  ;;  %s7459_s21 = scalar_lea.vmem %s7458_s30, 32 }
 0x6f2   : > { %p7460_p8 = scmp.lt.s32.totalorder %s10324_s17, %s7458_s30  ;;  %p7461_p10 = scmp.lt.s32.totalorder %s7459_s21, %s7453_s1 }
 0x6f3   : > { %p7456_p7 = pneg %p7455_p6 }
 0x6f4   : > { %p7462_p11 = por %p7461_p10, %p7460_p8 }
 0x6f6   : > { %p7463_p12 = pnand %p7462_p11, %p7456_p7 }
 0x6f8   : > { %7466 = shalt.err (!%p7463_p12)
}
 0x6f9   : > { %s7467_s23 = scalar_lea.hbm %s10290_s19, 16  ;;  %s7471_s18 = scalar_lea.hbm %s10414_s12, 32 }
 0x6fa   : > { %p7468_p13 = scmp.ne.s32.totalorder %s10290_s19, %s7467_s23  ;;  %p7472_p2 = scmp.lt.u32.totalorder %s10290_s19, %s10414_s12 }
 0x6fb   : > { %p7473_p4 = scmp.lt.u32.totalorder %s7471_s18, %s7467_s23  ;;  %p7475_p6 = scmp.lt.u32.totalorder %s7467_s23, %s10290_s19 }
 0x6fc   : > { %p7469_p0 = pnand %p7468_p13, %p7719_p3 }
 0x6fd   : > { %p7474_p5 = por %p7473_p4, %p7472_p2 }
 0x6fe   : > { %p7470_p1 = pneg %p7469_p0 }
 0x6ff   : > { %p7476_p7 = por %p7475_p6, %p7474_p5 }
 0x701   : > { %p7477_p8 = pnand %p7476_p7, %p7470_p1 }
 0x703   : > { %7480 = shalt.err (!%p7477_p8)
}
 0x704   : > { %7313 = dma.vmem_to_hbm [thread:$0]  (%p7719_p3), %s10324_s17, 16, %s10290_s19, %s5669_s0  }
 0x705   : > { %s7481_s1 = scalar_lea.vmem %s5716_s27, 16  ;;  %s7592_s28 = smov [#allocation8]  }
 0x706   : > { %p7482_p10 = scmp.ne.s32.totalorder %s5716_s27, %s7481_s1  ;;  %s7485_s30 = sshll.u32 %s7592_s28, 4  ;;  %s7486_s30 = int_to_ptr.vmem [resolvable:$false] %s7485_s30 }
 0x707   : > { %s7487_s21 = scalar_lea.vmem %s7486_s30, 32  ;;  %p7488_p13 = scmp.lt.s32.totalorder %s5716_s27, %s7486_s30 }
 0x708   : > { %p7483_p11 = pnand %p7482_p10, %p7719_p3  ;;  %p7489_p0 = scmp.lt.s32.totalorder %s7487_s21, %s7481_s1 }
 0x70a   : > { %p7484_p12 = pneg %p7483_p11  ;;  %p7490_p1 = por %p7489_p0, %p7488_p13 }
 0x70c   : > { %p7491_p2 = pnand %p7490_p1, %p7484_p12 }
 0x70e   : > { %7494 = shalt.err (!%p7491_p2)
}
 0x70f   : > { %s7495_s0 = scalar_lea.hbm %s10322_s16, 16  ;;  %s7499_s23 = scalar_lea.hbm %s10416_s14, 32 }
 0x710   : > { %p7496_p4 = scmp.ne.s32.totalorder %s10322_s16, %s7495_s0  ;;  %p7500_p7 = scmp.lt.u32.totalorder %s10322_s16, %s10416_s14 }
 0x711   : > { %p7501_p8 = scmp.lt.u32.totalorder %s7499_s23, %s7495_s0  ;;  %p7503_p11 = scmp.lt.u32.totalorder %s7495_s0, %s10322_s16 }
 0x712   : > { %p7497_p5 = pnand %p7496_p4, %p7719_p3 }
 0x713   : > { %p7502_p10 = por %p7501_p8, %p7500_p7 }
 0x714   : > { %p7498_p6 = pneg %p7497_p5 }
 0x715   : > { %p7504_p12 = por %p7503_p11, %p7502_p10 }
 0x717   : > { %p7505_p13 = pnand %p7504_p12, %p7498_p6 }
 0x719   : > { %7508 = shalt.err (!%p7505_p13)
}
 0x71a   : > { %s10681_s18 = scalar_lea.sflag [#allocation7], %s10271_s29 }
 0x71b   : > { %7315 = dma.vmem_to_hbm [thread:$0]  (%p7719_p3), %s5716_s27, 16, %s10322_s16, %s10681_s18  }
 0x71c PF: > { %s10682_s15 = sld [smem:[#allocation14_spill]]  ;;  %p7329_p0 = scmp.ge.s32.totalorder %s7581_s20, 2 }
 0x71e   : > { %p7320_p1 = pnand %p7329_p0, %p7731_p9 }
 0x722   : > { %s5727_s1 = sand.u32 1, %s10682_s15  }
 0x723   : > { %s5728_s28 = scalar_lea.sflag [#allocation5], %s5727_s1 }
 0x724   : > { %7544 = dma.done.wait (!%p7320_p1), %s5728_s28, 16  }
 0x725   : > { %7546 = vsyncadd (!%p7320_p1), %s5728_s28, 4294967280  ;;  %s10684_s30 = sadd.s32 4294967294, %s7581_s20  }
 0x726   : > { %s5735_s21 = sand.u32 1, %s10684_s30  }
 0x727   : > { %s5736_s0 = scalar_lea.sflag [#allocation7], %s5735_s21 }
 0x728   : > { %7548 = dma.done.wait (!%p7320_p1), %s5736_s0, 32  }
 0x729   : > { %7550 = vsyncadd (!%p7320_p1), %s5736_s0, 4294967264  ;;  %s31_s20 = sadd.s32 1, %s7581_s20   ;;  %s10685_s29 = sld [smem:[#allocation15_spill]] }
 0x72a   : > { %p28_p3 = scmp.ge.s32.totalorder %s31_s20, 6   ;;  %s10686_s30 = sld [smem:[#allocation16_spill]] }
 0x72b   : > { %s10687_s15 = sld [smem:[#allocation22_spill]]  ;;  %s10688_s16 = sld [smem:[#allocation17_spill]] }
 0x72c   : > { %s10689_s17 = sld [smem:[#allocation18_spill]]  ;;  %s10690_s18 = sld [smem:[#allocation19_spill]] }
 0x72d   : > { %s10691_s19 = sld [smem:[#allocation20_spill]]  ;;  %30 = sbr.rel (!%p28_p3) target bundleno = 10 (0xa), region = 196 }
 0x734   :  { %5748 = vsyncpa [#allocation5], 1 }
 0x735   :  { %5750 = vsyncpa [#allocation5 + $0x1], 1 }
 0x736   :  { %5751 = vsyncpa [#allocation7], 1 }
 0x737   :  { %5753 = vsyncpa [#allocation7 + $0x1], 1 }

</bundles_post_ra>
